<compile_context>
chip_gen: v7x
topology: tpu7x:2x2x1
jax: 0.10.0
libtpu: 0.0.40
codegen_flags: <defaults>
</compile_context>

<pallas_src>
import functools
import math

import jax
import jax.numpy as jnp
from jax.experimental import pallas as pl
from jax.experimental.pallas import tpu as pltpu


_VMEM_LIMIT = 32 * 1024 * 1024  # >= default scoped limit, far below physical on all chips


def _cparams(sem):
    return pltpu.CompilerParams(dimension_semantics=sem,
                                vmem_limit_bytes=_VMEM_LIMIT)


def _row_tile(m, cap=256):
    """Row tile: 256 (full MXU height on v6e/v7x) for large M, else M rounded to sublanes."""
    if m >= cap:
        return cap
    return max(8, ((m + 7) // 8) * 8)


# ----------------------------------------------------------------------------
# In-kernel helpers (fp32 statistics, bf16 MXU inputs)
# ----------------------------------------------------------------------------
def _softmax_rows(s):
    s = s - jnp.max(s, axis=-1, keepdims=True)
    p = jnp.exp(s)
    return p * pl.reciprocal(jnp.sum(p, axis=-1, keepdims=True), approx=True)


def _layernorm(y, g, b, eps):
    mean = jnp.mean(y, axis=-1, keepdims=True)
    var = jnp.mean((y - mean) ** 2, axis=-1, keepdims=True)
    return (y - mean) * jax.lax.rsqrt(var + eps) * g + b


def _mha_heads(q_all, k_all, v_all, *, h, dk, dv, scale):
    """q_all: (Sq, h*dk), k_all: (Sk, h*dk), v_all: (Sk, h*dv) fp32 -> (Sq, h*dv) fp32."""
    outs = []
    for i in range(h):                              # static unroll over heads
        q = (q_all[:, i * dk:(i + 1) * dk] * scale).astype(jnp.bfloat16)
        k = k_all[:, i * dk:(i + 1) * dk].astype(jnp.bfloat16)
        v = v_all[:, i * dv:(i + 1) * dv].astype(jnp.bfloat16)
        s = jnp.dot(q, k.T, preferred_element_type=jnp.float32)
        p = _softmax_rows(s).astype(jnp.bfloat16)
        outs.append(jnp.dot(p, v, preferred_element_type=jnp.float32))
    return jnp.concatenate(outs, axis=-1)


# ----------------------------------------------------------------------------
# Pallas kernels
# ----------------------------------------------------------------------------
def _linear_kernel(x_ref, w_ref, b_ref, o_ref):
    acc = jnp.dot(x_ref[...].astype(jnp.bfloat16), w_ref[...],
                  preferred_element_type=jnp.float32)
    o_ref[...] = (acc + b_ref[...].astype(jnp.float32)).astype(o_ref.dtype)


def linear_pallas(x, w, b):
    """x: [M, Din] @ w: [Din, Dout] + b: [Dout] (bf16 MXU, fp32 accumulate)."""
    M, Din = x.shape
    Dout = w.shape[1]
    tm = _row_tile(M)
    return pl.pallas_call(
        _linear_kernel,
        out_shape=jax.ShapeDtypeStruct((M, Dout), jnp.float32),
        grid_spec=pltpu.PrefetchScalarGridSpec(
            num_scalar_prefetch=0,
            grid=(pl.cdiv(M, tm),),
            in_specs=[
                pl.BlockSpec((tm, Din), lambda i: (i, 0)),
                pl.BlockSpec((Din, Dout), lambda i: (0, 0)),
                pl.BlockSpec((1, Dout), lambda i: (0, 0)),
            ],
            out_specs=pl.BlockSpec((tm, Dout), lambda i: (i, 0)),
        ),
        compiler_params=_cparams(("parallel",)),
    )(x, w, b.reshape(1, Dout))


def _dual_linear_kernel(xa_ref, xb_ref, w_ref, b_ref, oa_ref, ob_ref):
    w = w_ref[...]
    b = b_ref[...].astype(jnp.float32)
    oa_ref[...] = (jnp.dot(xa_ref[...].astype(jnp.bfloat16), w,
                           preferred_element_type=jnp.float32) + b).astype(oa_ref.dtype)
    ob_ref[...] = (jnp.dot(xb_ref[...].astype(jnp.bfloat16), w,
                           preferred_element_type=jnp.float32) + b).astype(ob_ref.dtype)


def dual_linear_pallas(xa, xb, w, b):
    """Applies the same Linear to two [M, Din] inputs; weight loaded once."""
    M, Din = xa.shape
    Dout = w.shape[1]
    tm = _row_tile(M)
    return pl.pallas_call(
        _dual_linear_kernel,
        out_shape=(jax.ShapeDtypeStruct((M, Dout), jnp.float32),
                   jax.ShapeDtypeStruct((M, Dout), jnp.float32)),
        grid_spec=pltpu.PrefetchScalarGridSpec(
            num_scalar_prefetch=0,
            grid=(pl.cdiv(M, tm),),
            in_specs=[
                pl.BlockSpec((tm, Din), lambda i: (i, 0)),
                pl.BlockSpec((tm, Din), lambda i: (i, 0)),
                pl.BlockSpec((Din, Dout), lambda i: (0, 0)),
                pl.BlockSpec((1, Dout), lambda i: (0, 0)),
            ],
            out_specs=(pl.BlockSpec((tm, Dout), lambda i: (i, 0)),
                       pl.BlockSpec((tm, Dout), lambda i: (i, 0))),
        ),
        compiler_params=_cparams(("parallel",)),
    )(xa, xb, w, b.reshape(1, Dout))


def _encoder_layer_kernel(x_ref, wqkv_ref, bqkv_ref, wo_ref, bo_ref,
                          g1_ref, be1_ref, w1_ref, bf1_ref, w2_ref, bf2_ref,
                          g2_ref, be2_ref, o_ref, *, h, dk, dv, scale, eps):
    """Full encoder layer for one batch element, entirely in VMEM."""
    x = x_ref[0].astype(jnp.float32)                                  # (S, D)

    # --- self-attention sublayer (fused Q|K|V projection) ---
    qkv = jnp.dot(x.astype(jnp.bfloat16), wqkv_ref[...],
                  preferred_element_type=jnp.float32) + bqkv_ref[...].astype(jnp.float32)
    k_off, v_off = h * dk, 2 * h * dk
    att = _mha_heads(qkv[:, :k_off], qkv[:, k_off:v_off], qkv[:, v_off:],
                     h=h, dk=dk, dv=dv, scale=scale)                  # (S, h*dv)
    proj = jnp.dot(att.astype(jnp.bfloat16), wo_ref[...],
                   preferred_element_type=jnp.float32)
    y = _layernorm(x + proj + bo_ref[...].astype(jnp.float32),
                   g1_ref[...], be1_ref[...], eps)

    # --- feed-forward sublayer (d_ff intermediate never leaves VMEM) ---
    hdn = jnp.dot(y.astype(jnp.bfloat16), w1_ref[...],
                  preferred_element_type=jnp.float32) + bf1_ref[...].astype(jnp.float32)
    hdn = jnp.maximum(hdn, 0.0)
    ff = jnp.dot(hdn.astype(jnp.bfloat16), w2_ref[...],
                 preferred_element_type=jnp.float32) + bf2_ref[...].astype(jnp.float32)
    z = _layernorm(y + ff, g2_ref[...], be2_ref[...], eps)
    o_ref[0] = z.astype(o_ref.dtype)


def encoder_layer_pallas(x, p, *, h, dk, dv, eps=1e-5):
    BT, S, D = x.shape
    Cqkv = p["wqkv"].shape[1]
    F = p["ff_w1"].shape[1]
    scale = 1.0 / math.sqrt(dk)
    kernel = functools.partial(_encoder_layer_kernel, h=h, dk=dk, dv=dv,
                               scale=scale, eps=eps)
    row = lambda i: (i, 0, 0)
    const2 = lambda i: (0, 0)
    return pl.pallas_call(
        kernel,
        out_shape=jax.ShapeDtypeStruct((BT, S, D), jnp.float32),
        grid_spec=pltpu.PrefetchScalarGridSpec(
            num_scalar_prefetch=0,
            grid=(BT,),
            in_specs=[
                pl.BlockSpec((1, S, D), row),
                pl.BlockSpec((D, Cqkv), const2),
                pl.BlockSpec((1, Cqkv), const2),
                pl.BlockSpec((h * dv, D), const2),
                pl.BlockSpec((1, D), const2),
                pl.BlockSpec((1, D), const2),
                pl.BlockSpec((1, D), const2),
                pl.BlockSpec((D, F), const2),
                pl.BlockSpec((1, F), const2),
                pl.BlockSpec((F, D), const2),
                pl.BlockSpec((1, D), const2),
                pl.BlockSpec((1, D), const2),
                pl.BlockSpec((1, D), const2),
            ],
            out_specs=pl.BlockSpec((1, S, D), row),
        ),
        compiler_params=_cparams(("parallel",)),
    )(x, p["wqkv"], p["bqkv"].reshape(1, -1), p["wo"], p["bo"].reshape(1, -1),
      p["ln1_g"].reshape(1, -1), p["ln1_b"].reshape(1, -1),
      p["ff_w1"], p["ff_b1"].reshape(1, -1), p["ff_w2"], p["ff_b2"].reshape(1, -1),
      p["ln2_g"].reshape(1, -1), p["ln2_b"].reshape(1, -1))


def _decoder_layer_kernel(x_ref, m_ref,
                          swqkv_ref, sbqkv_ref, swo_ref, sbo_ref, g1_ref, be1_ref,
                          cwq_ref, cbq_ref, cwkv_ref, cbkv_ref, cwo_ref, cbo_ref,
                          g2_ref, be2_ref,
                          w1_ref, bf1_ref, w2_ref, bf2_ref, g3_ref, be3_ref,
                          o_ref, *, h, dk, dv, scale, eps):
    """Full decoder layer (self-attn + cross-attn + FFN) for one batch element."""
    x = x_ref[0].astype(jnp.float32)                                  # (S, D)
    mem = m_ref[0].astype(jnp.float32)                                # (Sk, D)

    # --- self-attention sublayer ---
    qkv = jnp.dot(x.astype(jnp.bfloat16), swqkv_ref[...],
                  preferred_element_type=jnp.float32) + sbqkv_ref[...].astype(jnp.float32)
    k_off, v_off = h * dk, 2 * h * dk
    att = _mha_heads(qkv[:, :k_off], qkv[:, k_off:v_off], qkv[:, v_off:],
                     h=h, dk=dk, dv=dv, scale=scale)
    proj = jnp.dot(att.astype(jnp.bfloat16), swo_ref[...],
                   preferred_element_type=jnp.float32)
    y = _layernorm(x + proj + sbo_ref[...].astype(jnp.float32),
                   g1_ref[...], be1_ref[...], eps)

    # --- cross-attention sublayer (Q from decoder state, fused K|V from memory) ---
    q = jnp.dot(y.astype(jnp.bfloat16), cwq_ref[...],
                preferred_element_type=jnp.float32) + cbq_ref[...].astype(jnp.float32)
    kv = jnp.dot(mem.astype(jnp.bfloat16), cwkv_ref[...],
                 preferred_element_type=jnp.float32) + cbkv_ref[...].astype(jnp.float32)
    att = _mha_heads(q, kv[:, :h * dk], kv[:, h * dk:],
                     h=h, dk=dk, dv=dv, scale=scale)
    proj = jnp.dot(att.astype(jnp.bfloat16), cwo_ref[...],
                   preferred_element_type=jnp.float32)
    z = _layernorm(y + proj + cbo_ref[...].astype(jnp.float32),
                   g2_ref[...], be2_ref[...], eps)

    # --- feed-forward sublayer ---
    hdn = jnp.dot(z.astype(jnp.bfloat16), w1_ref[...],
                  preferred_element_type=jnp.float32) + bf1_ref[...].astype(jnp.float32)
    hdn = jnp.maximum(hdn, 0.0)
    ff = jnp.dot(hdn.astype(jnp.bfloat16), w2_ref[...],
                 preferred_element_type=jnp.float32) + bf2_ref[...].astype(jnp.float32)
    out = _layernorm(z + ff, g3_ref[...], be3_ref[...], eps)
    o_ref[0] = out.astype(o_ref.dtype)


def decoder_layer_pallas(x, memory, p, *, h, dk, dv, eps=1e-5):
    BT, S, D = x.shape
    Sk = memory.shape[1]
    Cqkv = p["self_wqkv"].shape[1]
    Ckv = p["cross_wkv"].shape[1]
    F = p["ff_w1"].shape[1]
    scale = 1.0 / math.sqrt(dk)
    kernel = functools.partial(_decoder_layer_kernel, h=h, dk=dk, dv=dv,
                               scale=scale, eps=eps)
    row = lambda i: (i, 0, 0)
    const2 = lambda i: (0, 0)
    return pl.pallas_call(
        kernel,
        out_shape=jax.ShapeDtypeStruct((BT, S, D), jnp.float32),
        grid_spec=pltpu.PrefetchScalarGridSpec(
            num_scalar_prefetch=0,
            grid=(BT,),
            in_specs=[
                pl.BlockSpec((1, S, D), row),
                pl.BlockSpec((1, Sk, D), row),
                pl.BlockSpec((D, Cqkv), const2),
                pl.BlockSpec((1, Cqkv), const2),
                pl.BlockSpec((h * dv, D), const2),
                pl.BlockSpec((1, D), const2),
                pl.BlockSpec((1, D), const2),
                pl.BlockSpec((1, D), const2),
                pl.BlockSpec((D, h * dk), const2),
                pl.BlockSpec((1, h * dk), const2),
                pl.BlockSpec((D, Ckv), const2),
                pl.BlockSpec((1, Ckv), const2),
                pl.BlockSpec((h * dv, D), const2),
                pl.BlockSpec((1, D), const2),
                pl.BlockSpec((1, D), const2),
                pl.BlockSpec((1, D), const2),
                pl.BlockSpec((D, F), const2),
                pl.BlockSpec((1, F), const2),
                pl.BlockSpec((F, D), const2),
                pl.BlockSpec((1, D), const2),
                pl.BlockSpec((1, D), const2),
                pl.BlockSpec((1, D), const2),
            ],
            out_specs=pl.BlockSpec((1, S, D), row),
        ),
        compiler_params=_cparams(("parallel",)),
    )(x, memory,
      p["self_wqkv"], p["self_bqkv"].reshape(1, -1), p["self_wo"], p["self_bo"].reshape(1, -1),
      p["ln1_g"].reshape(1, -1), p["ln1_b"].reshape(1, -1),
      p["cross_wq"], p["cross_bq"].reshape(1, -1), p["cross_wkv"], p["cross_bkv"].reshape(1, -1),
      p["cross_wo"], p["cross_bo"].reshape(1, -1),
      p["ln2_g"].reshape(1, -1), p["ln2_b"].reshape(1, -1),
      p["ff_w1"], p["ff_b1"].reshape(1, -1), p["ff_w2"], p["ff_b2"].reshape(1, -1),
      p["ln3_g"].reshape(1, -1), p["ln3_b"].reshape(1, -1))


# ----------------------------------------------------------------------------
# Model forward (only reshapes in the wrapper; all math in Pallas kernels)
# ----------------------------------------------------------------------------
def temporal_transformer_forward(x, params, *, h, q_dim, v_dim):
    B, T, K, d_input = x.shape
    d_model = params["emb_w"].shape[1]
    d_output = params["lin_w"].shape[1]
    M = B * T * K
    BT = B * T

    enc = linear_pallas(x.reshape(M, d_input), params["emb_w"], params["emb_b"])
    enc = enc.reshape(BT, K, d_model)
    # pe is None -> no positional encoding added (matches default construction)

    x1 = encoder_layer_pallas(enc, params["encoder1"], h=h, dk=q_dim, dv=v_dim)
    x2 = encoder_layer_pallas(x1, params["encoder2"], h=h, dk=q_dim, dv=v_dim)
    x3 = encoder_layer_pallas(x2, params["encoder3"], h=h, dk=q_dim, dv=v_dim)
    decoding = x3

    x4 = decoder_layer_pallas(decoding, x3, params["decoder1"], h=h, dk=q_dim, dv=v_dim)
    x5 = decoder_layer_pallas(x4, x3, params["decoder2"], h=h, dk=q_dim, dv=v_dim)
    x6 = decoder_layer_pallas(x5, x3, params["decoder3"], h=h, dk=q_dim, dv=v_dim)

    # The two identical final `_linear` applications share one kernel / one
    # resident weight (no HBM concat copy).
    x6_out, output = dual_linear_pallas(x6.reshape(M, d_model),
                                        decoding.reshape(M, d_model),
                                        params["lin_w"], params["lin_b"])
    # TODO(synk): original code runs `output, h = self.decoder(output)` with the
    # undefined `decoder(1024)` module; treated as identity here.

    return (output.reshape(B, T, K, d_output),
            x1.reshape(B, T, K, d_model),
            x2.reshape(B, T, K, d_model),
            x6_out.reshape(B, T, K, d_output))


# ----------------------------------------------------------------------------
# Deterministic parameter initialization (shapes from the module __init__)
# Matmul weights stored in bf16; biases & LayerNorm params in fp32.
# ----------------------------------------------------------------------------
def _init_linear(key, din, dout):
    k1, k2 = jax.random.split(key)
    bound = 1.0 / math.sqrt(din)
    w = jax.random.uniform(k1, (din, dout), jnp.float32, -bound, bound)
    b = jax.random.uniform(k2, (dout,), jnp.float32, -bound, bound)
    return w.astype(jnp.bfloat16), b


def _init_mha(key, d_model, q_dim, v_dim, h):
    ks = jax.random.split(key, 4)
    wq, bq = _init_linear(ks[0], d_model, q_dim * h)
    wk, bk = _init_linear(ks[1], d_model, q_dim * h)
    wv, bv = _init_linear(ks[2], d_model, v_dim * h)
    wo, bo = _init_linear(ks[3], v_dim * h, d_model)
    return dict(
        wqkv=jnp.concatenate([wq, wk, wv], axis=1),
        bqkv=jnp.concatenate([bq, bk, bv], axis=0),
        wq=wq, bq=bq,
        wkv=jnp.concatenate([wk, wv], axis=1),
        bkv=jnp.concatenate([bk, bv], axis=0),
        wo=wo, bo=bo,
    )


def _init_encoder(key, d_model, q_dim, v_dim, h, d_ff):
    ks = jax.random.split(key, 3)
    mha = _init_mha(ks[0], d_model, q_dim, v_dim, h)
    w1, b1 = _init_linear(ks[1], d_model, d_ff)
    w2, b2 = _init_linear(ks[2], d_ff, d_model)
    return dict(
        wqkv=mha["wqkv"], bqkv=mha["bqkv"], wo=mha["wo"], bo=mha["bo"],
        ff_w1=w1, ff_b1=b1, ff_w2=w2, ff_b2=b2,
        ln1_g=jnp.ones((d_model,), jnp.float32), ln1_b=jnp.zeros((d_model,), jnp.float32),
        ln2_g=jnp.ones((d_model,), jnp.float32), ln2_b=jnp.zeros((d_model,), jnp.float32),
    )


def _init_decoder(key, d_model, q_dim, v_dim, h, d_ff):
    ks = jax.random.split(key, 4)
    s = _init_mha(ks[0], d_model, q_dim, v_dim, h)
    c = _init_mha(ks[1], d_model, q_dim, v_dim, h)
    w1, b1 = _init_linear(ks[2], d_model, d_ff)
    w2, b2 = _init_linear(ks[3], d_ff, d_model)
    return dict(
        self_wqkv=s["wqkv"], self_bqkv=s["bqkv"], self_wo=s["wo"], self_bo=s["bo"],
        cross_wq=c["wq"], cross_bq=c["bq"], cross_wkv=c["wkv"], cross_bkv=c["bkv"],
        cross_wo=c["wo"], cross_bo=c["bo"],
        ff_w1=w1, ff_b1=b1, ff_w2=w2, ff_b2=b2,
        ln1_g=jnp.ones((d_model,), jnp.float32), ln1_b=jnp.zeros((d_model,), jnp.float32),
        ln2_g=jnp.ones((d_model,), jnp.float32), ln2_b=jnp.zeros((d_model,), jnp.float32),
        ln3_g=jnp.ones((d_model,), jnp.float32), ln3_b=jnp.zeros((d_model,), jnp.float32),
    )


def init_params(key, d_input, d_model, d_output, q_dim, v_dim, h, d_ff):
    ks = jax.random.split(key, 8)
    emb_w, emb_b = _init_linear(ks[0], d_input, d_model)
    lin_w, lin_b = _init_linear(ks[1], d_model, d_output)
    return dict(
        emb_w=emb_w, emb_b=emb_b, lin_w=lin_w, lin_b=lin_b,
        encoder1=_init_encoder(ks[2], d_model, q_dim, v_dim, h, d_ff),
        encoder2=_init_encoder(ks[3], d_model, q_dim, v_dim, h, d_ff),
        encoder3=_init_encoder(ks[4], d_model, q_dim, v_dim, h, d_ff),
        decoder1=_init_decoder(ks[5], d_model, q_dim, v_dim, h, d_ff),
        decoder2=_init_decoder(ks[6], d_model, q_dim, v_dim, h, d_ff),
        decoder3=_init_decoder(ks[7], d_model, q_dim, v_dim, h, d_ff),
    )


# ----------------------------------------------------------------------------
# Main
# ----------------------------------------------------------------------------
if __name__ == "__main__":
    # Small shapes consistent with the module's [B, T, K, d_input] input.
    B, T, K = 1, 2, 16
    d_input, d_model, d_output = 64, 128, 32
    q_dim, v_dim, h, d_ff = 16, 16, 4, 256

    params = init_params(jax.random.PRNGKey(1), d_input, d_model, d_output,
                         q_dim, v_dim, h, d_ff)
    x = jax.random.normal(jax.random.PRNGKey(0), (B, T, K, d_input), jnp.float32)

    fwd = jax.jit(functools.partial(temporal_transformer_forward,
                                    h=h, q_dim=q_dim, v_dim=v_dim))
    output, x1, x2, x6 = fwd(x, params)
    jax.block_until_ready((output, x1, x2, x6))

    assert output.shape == (B, T, K, d_output)
    assert x1.shape == (B, T, K, d_model)
    assert x2.shape == (B, T, K, d_model)
    assert x6.shape == (B, T, K, d_output)
    assert all(bool(jnp.all(jnp.isfinite(a))) for a in (output, x1, x2, x6))
    print("KERNEL_OK")
</pallas_src>

<mosaic_0001>
module attributes {stable_mosaic.version = 11 : i64} {
  func.func @_encoder_layer_kernel(%arg0: i32, %arg1: memref<1x16x128xf32, #tpu.memory_space<vmem>>, %arg2: memref<128x192xbf16, #tpu.memory_space<vmem>>, %arg3: memref<1x192xf32, #tpu.memory_space<vmem>>, %arg4: memref<64x128xbf16, #tpu.memory_space<vmem>>, %arg5: memref<1x128xf32, #tpu.memory_space<vmem>>, %arg6: memref<1x128xf32, #tpu.memory_space<vmem>>, %arg7: memref<1x128xf32, #tpu.memory_space<vmem>>, %arg8: memref<128x256xbf16, #tpu.memory_space<vmem>>, %arg9: memref<1x256xf32, #tpu.memory_space<vmem>>, %arg10: memref<256x128xbf16, #tpu.memory_space<vmem>>, %arg11: memref<1x128xf32, #tpu.memory_space<vmem>>, %arg12: memref<1x128xf32, #tpu.memory_space<vmem>>, %arg13: memref<1x128xf32, #tpu.memory_space<vmem>>, %arg14: memref<1x16x128xf32, #tpu.memory_space<vmem>>) attributes {dimension_semantics = [#tpu.dimension_semantics<parallel>], iteration_bounds = array<i64: 2>, scalar_prefetch = 0 : i64, scratch_operands = 0 : i64, tpu.core_type = #tpu.core_type<tc>, window_params = [{transform_indices = @transform_0, window_bounds = array<i64: 1, 16, 128>}, {pipeline_mode = #tpu.pipeline_mode<synchronous>, transform_indices = @transform_1, window_bounds = array<i64: 128, 192>}, {pipeline_mode = #tpu.pipeline_mode<synchronous>, transform_indices = @transform_2, window_bounds = array<i64: 1, 192>}, {pipeline_mode = #tpu.pipeline_mode<synchronous>, transform_indices = @transform_3, window_bounds = array<i64: 64, 128>}, {pipeline_mode = #tpu.pipeline_mode<synchronous>, transform_indices = @transform_4, window_bounds = array<i64: 1, 128>}, {pipeline_mode = #tpu.pipeline_mode<synchronous>, transform_indices = @transform_5, window_bounds = array<i64: 1, 128>}, {pipeline_mode = #tpu.pipeline_mode<synchronous>, transform_indices = @transform_6, window_bounds = array<i64: 1, 128>}, {pipeline_mode = #tpu.pipeline_mode<synchronous>, transform_indices = @transform_7, window_bounds = array<i64: 128, 256>}, {pipeline_mode = #tpu.pipeline_mode<synchronous>, transform_indices = @transform_8, window_bounds = array<i64: 1, 256>}, {pipeline_mode = #tpu.pipeline_mode<synchronous>, transform_indices = @transform_9, window_bounds = array<i64: 256, 128>}, {pipeline_mode = #tpu.pipeline_mode<synchronous>, transform_indices = @transform_10, window_bounds = array<i64: 1, 128>}, {pipeline_mode = #tpu.pipeline_mode<synchronous>, transform_indices = @transform_11, window_bounds = array<i64: 1, 128>}, {pipeline_mode = #tpu.pipeline_mode<synchronous>, transform_indices = @transform_12, window_bounds = array<i64: 1, 128>}, {transform_indices = @transform_13, window_bounds = array<i64: 1, 16, 128>}]} {
    %c0 = arith.constant 0 : index
    %c0_0 = arith.constant 0 : index
    %c0_1 = arith.constant 0 : index
    %0 = vector.load %arg1[%c0, %c0_0, %c0_1] : memref<1x16x128xf32, #tpu.memory_space<vmem>>, vector<1x16x128xf32>
    %1 = vector.shape_cast %0 : vector<1x16x128xf32> to vector<16x128xf32>
    %2 = arith.truncf %1 : vector<16x128xf32> to vector<16x128xbf16>
    %c0_2 = arith.constant 0 : index
    %c0_3 = arith.constant 0 : index
    %3 = vector.load %arg2[%c0_2, %c0_3] : memref<128x192xbf16, #tpu.memory_space<vmem>>, vector<128x192xbf16>
    %cst = arith.constant dense<0.000000e+00> : vector<16x192xf32>
    %4 = tpu.matmul %2, %3, %cst {dimension_numbers = #tpu.dot_dimension_numbers<[1], [0], [0], [1], [0, 0, 1, 1], [], []>} : vector<16x128xbf16>, vector<128x192xbf16>, vector<16x192xf32> -> vector<16x192xf32>
    %c0_4 = arith.constant 0 : index
    %c0_5 = arith.constant 0 : index
    %5 = vector.load %arg3[%c0_4, %c0_5] : memref<1x192xf32, #tpu.memory_space<vmem>>, vector<1x192xf32>
    %6 = vector.broadcast %5 : vector<1x192xf32> to vector<16x192xf32>
    %7 = arith.addf %4, %6 : vector<16x192xf32>
    %8 = vector.extract_strided_slice %7 {offsets = [0, 0], sizes = [16, 64], strides = [1, 1]} : vector<16x192xf32> to vector<16x64xf32>
    %9 = vector.extract_strided_slice %7 {offsets = [0, 64], sizes = [16, 64], strides = [1, 1]} : vector<16x192xf32> to vector<16x64xf32>
    %10 = vector.extract_strided_slice %7 {offsets = [0, 128], sizes = [16, 64], strides = [1, 1]} : vector<16x192xf32> to vector<16x64xf32>
    %11 = vector.extract_strided_slice %8 {offsets = [0, 0], sizes = [16, 16], strides = [1, 1]} : vector<16x64xf32> to vector<16x16xf32>
    %cst_6 = arith.constant 2.500000e-01 : f32
    %12 = vector.broadcast %cst_6 : f32 to vector<16x16xf32>
    %13 = arith.mulf %11, %12 : vector<16x16xf32>
    %14 = arith.truncf %13 : vector<16x16xf32> to vector<16x16xbf16>
    %15 = vector.extract_strided_slice %9 {offsets = [0, 0], sizes = [16, 16], strides = [1, 1]} : vector<16x64xf32> to vector<16x16xf32>
    %16 = arith.truncf %15 : vector<16x16xf32> to vector<16x16xbf16>
    %17 = vector.extract_strided_slice %10 {offsets = [0, 0], sizes = [16, 16], strides = [1, 1]} : vector<16x64xf32> to vector<16x16xf32>
    %18 = arith.truncf %17 : vector<16x16xf32> to vector<16x16xbf16>
    %19 = tpu.transpose %16, [1, 0] : vector<16x16xbf16> -> vector<16x16xbf16>
    %cst_7 = arith.constant dense<0.000000e+00> : vector<16x16xf32>
    %20 = tpu.matmul %14, %19, %cst_7 {dimension_numbers = #tpu.dot_dimension_numbers<[1], [0], [0], [1], [0, 0, 1, 1], [], []>} : vector<16x16xbf16>, vector<16x16xbf16>, vector<16x16xf32> -> vector<16x16xf32>
    %cst_8 = arith.constant dense<0xFF800000> : vector<16xf32>
    %21 = vector.multi_reduction <maximumf>, %20, %cst_8 [1] : vector<16x16xf32> to vector<16xf32>
    %22 = vector.shape_cast %21 : vector<16xf32> to vector<16x1xf32>
    %23 = vector.broadcast %22 : vector<16x1xf32> to vector<16x16xf32>
    %24 = arith.subf %20, %23 : vector<16x16xf32>
    %25 = math.exp %24 : vector<16x16xf32>
    %cst_9 = arith.constant dense<0.000000e+00> : vector<16xf32>
    %26 = vector.multi_reduction <add>, %25, %cst_9 [1] : vector<16x16xf32> to vector<16xf32>
    %27 = vector.shape_cast %26 : vector<16xf32> to vector<16x1xf32>
    %28 = tpu.reciprocal %27 {approx = true} : vector<16x1xf32> -> vector<16x1xf32>
    %29 = vector.broadcast %28 : vector<16x1xf32> to vector<16x16xf32>
    %30 = arith.mulf %25, %29 : vector<16x16xf32>
    %31 = arith.truncf %30 : vector<16x16xf32> to vector<16x16xbf16>
    %cst_10 = arith.constant dense<0.000000e+00> : vector<16x16xf32>
    %32 = tpu.matmul %31, %18, %cst_10 {dimension_numbers = #tpu.dot_dimension_numbers<[1], [0], [0], [1], [0, 0, 1, 1], [], []>} : vector<16x16xbf16>, vector<16x16xbf16>, vector<16x16xf32> -> vector<16x16xf32>
    %33 = vector.extract_strided_slice %8 {offsets = [0, 16], sizes = [16, 16], strides = [1, 1]} : vector<16x64xf32> to vector<16x16xf32>
    %cst_11 = arith.constant 2.500000e-01 : f32
    %34 = vector.broadcast %cst_11 : f32 to vector<16x16xf32>
    %35 = arith.mulf %33, %34 : vector<16x16xf32>
    %36 = arith.truncf %35 : vector<16x16xf32> to vector<16x16xbf16>
    %37 = vector.extract_strided_slice %9 {offsets = [0, 16], sizes = [16, 16], strides = [1, 1]} : vector<16x64xf32> to vector<16x16xf32>
    %38 = arith.truncf %37 : vector<16x16xf32> to vector<16x16xbf16>
    %39 = vector.extract_strided_slice %10 {offsets = [0, 16], sizes = [16, 16], strides = [1, 1]} : vector<16x64xf32> to vector<16x16xf32>
    %40 = arith.truncf %39 : vector<16x16xf32> to vector<16x16xbf16>
    %41 = tpu.transpose %38, [1, 0] : vector<16x16xbf16> -> vector<16x16xbf16>
    %cst_12 = arith.constant dense<0.000000e+00> : vector<16x16xf32>
    %42 = tpu.matmul %36, %41, %cst_12 {dimension_numbers = #tpu.dot_dimension_numbers<[1], [0], [0], [1], [0, 0, 1, 1], [], []>} : vector<16x16xbf16>, vector<16x16xbf16>, vector<16x16xf32> -> vector<16x16xf32>
    %cst_13 = arith.constant dense<0xFF800000> : vector<16xf32>
    %43 = vector.multi_reduction <maximumf>, %42, %cst_13 [1] : vector<16x16xf32> to vector<16xf32>
    %44 = vector.shape_cast %43 : vector<16xf32> to vector<16x1xf32>
    %45 = vector.broadcast %44 : vector<16x1xf32> to vector<16x16xf32>
    %46 = arith.subf %42, %45 : vector<16x16xf32>
    %47 = math.exp %46 : vector<16x16xf32>
    %cst_14 = arith.constant dense<0.000000e+00> : vector<16xf32>
    %48 = vector.multi_reduction <add>, %47, %cst_14 [1] : vector<16x16xf32> to vector<16xf32>
    %49 = vector.shape_cast %48 : vector<16xf32> to vector<16x1xf32>
    %50 = tpu.reciprocal %49 {approx = true} : vector<16x1xf32> -> vector<16x1xf32>
    %51 = vector.broadcast %50 : vector<16x1xf32> to vector<16x16xf32>
    %52 = arith.mulf %47, %51 : vector<16x16xf32>
    %53 = arith.truncf %52 : vector<16x16xf32> to vector<16x16xbf16>
    %cst_15 = arith.constant dense<0.000000e+00> : vector<16x16xf32>
    %54 = tpu.matmul %53, %40, %cst_15 {dimension_numbers = #tpu.dot_dimension_numbers<[1], [0], [0], [1], [0, 0, 1, 1], [], []>} : vector<16x16xbf16>, vector<16x16xbf16>, vector<16x16xf32> -> vector<16x16xf32>
    %55 = vector.extract_strided_slice %8 {offsets = [0, 32], sizes = [16, 16], strides = [1, 1]} : vector<16x64xf32> to vector<16x16xf32>
    %cst_16 = arith.constant 2.500000e-01 : f32
    %56 = vector.broadcast %cst_16 : f32 to vector<16x16xf32>
    %57 = arith.mulf %55, %56 : vector<16x16xf32>
    %58 = arith.truncf %57 : vector<16x16xf32> to vector<16x16xbf16>
    %59 = vector.extract_strided_slice %9 {offsets = [0, 32], sizes = [16, 16], strides = [1, 1]} : vector<16x64xf32> to vector<16x16xf32>
    %60 = arith.truncf %59 : vector<16x16xf32> to vector<16x16xbf16>
    %61 = vector.extract_strided_slice %10 {offsets = [0, 32], sizes = [16, 16], strides = [1, 1]} : vector<16x64xf32> to vector<16x16xf32>
    %62 = arith.truncf %61 : vector<16x16xf32> to vector<16x16xbf16>
    %63 = tpu.transpose %60, [1, 0] : vector<16x16xbf16> -> vector<16x16xbf16>
    %cst_17 = arith.constant dense<0.000000e+00> : vector<16x16xf32>
    %64 = tpu.matmul %58, %63, %cst_17 {dimension_numbers = #tpu.dot_dimension_numbers<[1], [0], [0], [1], [0, 0, 1, 1], [], []>} : vector<16x16xbf16>, vector<16x16xbf16>, vector<16x16xf32> -> vector<16x16xf32>
    %cst_18 = arith.constant dense<0xFF800000> : vector<16xf32>
    %65 = vector.multi_reduction <maximumf>, %64, %cst_18 [1] : vector<16x16xf32> to vector<16xf32>
    %66 = vector.shape_cast %65 : vector<16xf32> to vector<16x1xf32>
    %67 = vector.broadcast %66 : vector<16x1xf32> to vector<16x16xf32>
    %68 = arith.subf %64, %67 : vector<16x16xf32>
    %69 = math.exp %68 : vector<16x16xf32>
    %cst_19 = arith.constant dense<0.000000e+00> : vector<16xf32>
    %70 = vector.multi_reduction <add>, %69, %cst_19 [1] : vector<16x16xf32> to vector<16xf32>
    %71 = vector.shape_cast %70 : vector<16xf32> to vector<16x1xf32>
    %72 = tpu.reciprocal %71 {approx = true} : vector<16x1xf32> -> vector<16x1xf32>
    %73 = vector.broadcast %72 : vector<16x1xf32> to vector<16x16xf32>
    %74 = arith.mulf %69, %73 : vector<16x16xf32>
    %75 = arith.truncf %74 : vector<16x16xf32> to vector<16x16xbf16>
    %cst_20 = arith.constant dense<0.000000e+00> : vector<16x16xf32>
    %76 = tpu.matmul %75, %62, %cst_20 {dimension_numbers = #tpu.dot_dimension_numbers<[1], [0], [0], [1], [0, 0, 1, 1], [], []>} : vector<16x16xbf16>, vector<16x16xbf16>, vector<16x16xf32> -> vector<16x16xf32>
    %77 = vector.extract_strided_slice %8 {offsets = [0, 48], sizes = [16, 16], strides = [1, 1]} : vector<16x64xf32> to vector<16x16xf32>
    %cst_21 = arith.constant 2.500000e-01 : f32
    %78 = vector.broadcast %cst_21 : f32 to vector<16x16xf32>
    %79 = arith.mulf %77, %78 : vector<16x16xf32>
    %80 = arith.truncf %79 : vector<16x16xf32> to vector<16x16xbf16>
    %81 = vector.extract_strided_slice %9 {offsets = [0, 48], sizes = [16, 16], strides = [1, 1]} : vector<16x64xf32> to vector<16x16xf32>
    %82 = arith.truncf %81 : vector<16x16xf32> to vector<16x16xbf16>
    %83 = vector.extract_strided_slice %10 {offsets = [0, 48], sizes = [16, 16], strides = [1, 1]} : vector<16x64xf32> to vector<16x16xf32>
    %84 = arith.truncf %83 : vector<16x16xf32> to vector<16x16xbf16>
    %85 = tpu.transpose %82, [1, 0] : vector<16x16xbf16> -> vector<16x16xbf16>
    %cst_22 = arith.constant dense<0.000000e+00> : vector<16x16xf32>
    %86 = tpu.matmul %80, %85, %cst_22 {dimension_numbers = #tpu.dot_dimension_numbers<[1], [0], [0], [1], [0, 0, 1, 1], [], []>} : vector<16x16xbf16>, vector<16x16xbf16>, vector<16x16xf32> -> vector<16x16xf32>
    %cst_23 = arith.constant dense<0xFF800000> : vector<16xf32>
    %87 = vector.multi_reduction <maximumf>, %86, %cst_23 [1] : vector<16x16xf32> to vector<16xf32>
    %88 = vector.shape_cast %87 : vector<16xf32> to vector<16x1xf32>
    %89 = vector.broadcast %88 : vector<16x1xf32> to vector<16x16xf32>
    %90 = arith.subf %86, %89 : vector<16x16xf32>
    %91 = math.exp %90 : vector<16x16xf32>
    %cst_24 = arith.constant dense<0.000000e+00> : vector<16xf32>
    %92 = vector.multi_reduction <add>, %91, %cst_24 [1] : vector<16x16xf32> to vector<16xf32>
    %93 = vector.shape_cast %92 : vector<16xf32> to vector<16x1xf32>
    %94 = tpu.reciprocal %93 {approx = true} : vector<16x1xf32> -> vector<16x1xf32>
    %95 = vector.broadcast %94 : vector<16x1xf32> to vector<16x16xf32>
    %96 = arith.mulf %91, %95 : vector<16x16xf32>
    %97 = arith.truncf %96 : vector<16x16xf32> to vector<16x16xbf16>
    %cst_25 = arith.constant dense<0.000000e+00> : vector<16x16xf32>
    %98 = tpu.matmul %97, %84, %cst_25 {dimension_numbers = #tpu.dot_dimension_numbers<[1], [0], [0], [1], [0, 0, 1, 1], [], []>} : vector<16x16xbf16>, vector<16x16xbf16>, vector<16x16xf32> -> vector<16x16xf32>
    %99 = tpu.concatenate %32, %54, %76, %98 in 1 : vector<16x16xf32>, vector<16x16xf32>, vector<16x16xf32>, vector<16x16xf32> -> vector<16x64xf32>
    %100 = arith.truncf %99 : vector<16x64xf32> to vector<16x64xbf16>
    %c0_26 = arith.constant 0 : index
    %c0_27 = arith.constant 0 : index
    %101 = vector.load %arg4[%c0_26, %c0_27] : memref<64x128xbf16, #tpu.memory_space<vmem>>, vector<64x128xbf16>
    %cst_28 = arith.constant dense<0.000000e+00> : vector<16x128xf32>
    %102 = tpu.matmul %100, %101, %cst_28 {dimension_numbers = #tpu.dot_dimension_numbers<[1], [0], [0], [1], [0, 0, 1, 1], [], []>} : vector<16x64xbf16>, vector<64x128xbf16>, vector<16x128xf32> -> vector<16x128xf32>
    %103 = arith.addf %1, %102 : vector<16x128xf32>
    %c0_29 = arith.constant 0 : index
    %c0_30 = arith.constant 0 : index
    %104 = vector.load %arg5[%c0_29, %c0_30] : memref<1x128xf32, #tpu.memory_space<vmem>>, vector<1x128xf32>
    %105 = vector.broadcast %104 : vector<1x128xf32> to vector<16x128xf32>
    %106 = arith.addf %103, %105 : vector<16x128xf32>
    %c0_31 = arith.constant 0 : index
    %c0_32 = arith.constant 0 : index
    %107 = vector.load %arg6[%c0_31, %c0_32] : memref<1x128xf32, #tpu.memory_space<vmem>>, vector<1x128xf32>
    %c0_33 = arith.constant 0 : index
    %c0_34 = arith.constant 0 : index
    %108 = vector.load %arg7[%c0_33, %c0_34] : memref<1x128xf32, #tpu.memory_space<vmem>>, vector<1x128xf32>
    %cst_35 = arith.constant dense<0.000000e+00> : vector<16xf32>
    %109 = vector.multi_reduction <add>, %106, %cst_35 [1] : vector<16x128xf32> to vector<16xf32>
    %110 = vector.shape_cast %109 : vector<16xf32> to vector<16x1xf32>
    %cst_36 = arith.constant 1.280000e+02 : f32
    %111 = vector.broadcast %cst_36 : f32 to vector<16x1xf32>
    %112 = arith.divf %110, %111 : vector<16x1xf32>
    %113 = vector.broadcast %112 : vector<16x1xf32> to vector<16x128xf32>
    %114 = arith.subf %106, %113 : vector<16x128xf32>
    %115 = arith.mulf %114, %114 : vector<16x128xf32>
    %cst_37 = arith.constant dense<0.000000e+00> : vector<16xf32>
    %116 = vector.multi_reduction <add>, %115, %cst_37 [1] : vector<16x128xf32> to vector<16xf32>
    %117 = vector.shape_cast %116 : vector<16xf32> to vector<16x1xf32>
    %cst_38 = arith.constant 1.280000e+02 : f32
    %118 = vector.broadcast %cst_38 : f32 to vector<16x1xf32>
    %119 = arith.divf %117, %118 : vector<16x1xf32>
    %120 = vector.broadcast %112 : vector<16x1xf32> to vector<16x128xf32>
    %121 = arith.subf %106, %120 : vector<16x128xf32>
    %cst_39 = arith.constant 9.99999974E-6 : f32
    %122 = vector.broadcast %cst_39 : f32 to vector<16x1xf32>
    %123 = arith.addf %119, %122 : vector<16x1xf32>
    %124 = math.rsqrt %123 : vector<16x1xf32>
    %125 = vector.broadcast %124 : vector<16x1xf32> to vector<16x128xf32>
    %126 = arith.mulf %121, %125 : vector<16x128xf32>
    %127 = vector.broadcast %107 : vector<1x128xf32> to vector<16x128xf32>
    %128 = arith.mulf %126, %127 : vector<16x128xf32>
    %129 = vector.broadcast %108 : vector<1x128xf32> to vector<16x128xf32>
    %130 = arith.addf %128, %129 : vector<16x128xf32>
    %131 = arith.truncf %130 : vector<16x128xf32> to vector<16x128xbf16>
    %c0_40 = arith.constant 0 : index
    %c0_41 = arith.constant 0 : index
    %132 = vector.load %arg8[%c0_40, %c0_41] : memref<128x256xbf16, #tpu.memory_space<vmem>>, vector<128x256xbf16>
    %cst_42 = arith.constant dense<0.000000e+00> : vector<16x256xf32>
    %133 = tpu.matmul %131, %132, %cst_42 {dimension_numbers = #tpu.dot_dimension_numbers<[1], [0], [0], [1], [0, 0, 1, 1], [], []>} : vector<16x128xbf16>, vector<128x256xbf16>, vector<16x256xf32> -> vector<16x256xf32>
    %c0_43 = arith.constant 0 : index
    %c0_44 = arith.constant 0 : index
    %134 = vector.load %arg9[%c0_43, %c0_44] : memref<1x256xf32, #tpu.memory_space<vmem>>, vector<1x256xf32>
    %135 = vector.broadcast %134 : vector<1x256xf32> to vector<16x256xf32>
    %136 = arith.addf %133, %135 : vector<16x256xf32>
    %cst_45 = arith.constant 0.000000e+00 : f32
    %137 = vector.broadcast %cst_45 : f32 to vector<16x256xf32>
    %138 = arith.maximumf %136, %137 : vector<16x256xf32>
    %139 = arith.truncf %138 : vector<16x256xf32> to vector<16x256xbf16>
    %c0_46 = arith.constant 0 : index
    %c0_47 = arith.constant 0 : index
    %140 = vector.load %arg10[%c0_46, %c0_47] : memref<256x128xbf16, #tpu.memory_space<vmem>>, vector<256x128xbf16>
    %cst_48 = arith.constant dense<0.000000e+00> : vector<16x128xf32>
    %141 = tpu.matmul %139, %140, %cst_48 {dimension_numbers = #tpu.dot_dimension_numbers<[1], [0], [0], [1], [0, 0, 1, 1], [], []>} : vector<16x256xbf16>, vector<256x128xbf16>, vector<16x128xf32> -> vector<16x128xf32>
    %c0_49 = arith.constant 0 : index
    %c0_50 = arith.constant 0 : index
    %142 = vector.load %arg11[%c0_49, %c0_50] : memref<1x128xf32, #tpu.memory_space<vmem>>, vector<1x128xf32>
    %143 = vector.broadcast %142 : vector<1x128xf32> to vector<16x128xf32>
    %144 = arith.addf %141, %143 : vector<16x128xf32>
    %145 = arith.addf %130, %144 : vector<16x128xf32>
    %c0_51 = arith.constant 0 : index
    %c0_52 = arith.constant 0 : index
    %146 = vector.load %arg12[%c0_51, %c0_52] : memref<1x128xf32, #tpu.memory_space<vmem>>, vector<1x128xf32>
    %c0_53 = arith.constant 0 : index
    %c0_54 = arith.constant 0 : index
    %147 = vector.load %arg13[%c0_53, %c0_54] : memref<1x128xf32, #tpu.memory_space<vmem>>, vector<1x128xf32>
    %cst_55 = arith.constant dense<0.000000e+00> : vector<16xf32>
    %148 = vector.multi_reduction <add>, %145, %cst_55 [1] : vector<16x128xf32> to vector<16xf32>
    %149 = vector.shape_cast %148 : vector<16xf32> to vector<16x1xf32>
    %cst_56 = arith.constant 1.280000e+02 : f32
    %150 = vector.broadcast %cst_56 : f32 to vector<16x1xf32>
    %151 = arith.divf %149, %150 : vector<16x1xf32>
    %152 = vector.broadcast %151 : vector<16x1xf32> to vector<16x128xf32>
    %153 = arith.subf %145, %152 : vector<16x128xf32>
    %154 = arith.mulf %153, %153 : vector<16x128xf32>
    %cst_57 = arith.constant dense<0.000000e+00> : vector<16xf32>
    %155 = vector.multi_reduction <add>, %154, %cst_57 [1] : vector<16x128xf32> to vector<16xf32>
    %156 = vector.shape_cast %155 : vector<16xf32> to vector<16x1xf32>
    %cst_58 = arith.constant 1.280000e+02 : f32
    %157 = vector.broadcast %cst_58 : f32 to vector<16x1xf32>
    %158 = arith.divf %156, %157 : vector<16x1xf32>
    %159 = vector.broadcast %151 : vector<16x1xf32> to vector<16x128xf32>
    %160 = arith.subf %145, %159 : vector<16x128xf32>
    %cst_59 = arith.constant 9.99999974E-6 : f32
    %161 = vector.broadcast %cst_59 : f32 to vector<16x1xf32>
    %162 = arith.addf %158, %161 : vector<16x1xf32>
    %163 = math.rsqrt %162 : vector<16x1xf32>
    %164 = vector.broadcast %163 : vector<16x1xf32> to vector<16x128xf32>
    %165 = arith.mulf %160, %164 : vector<16x128xf32>
    %166 = vector.broadcast %146 : vector<1x128xf32> to vector<16x128xf32>
    %167 = arith.mulf %165, %166 : vector<16x128xf32>
    %168 = vector.broadcast %147 : vector<1x128xf32> to vector<16x128xf32>
    %169 = arith.addf %167, %168 : vector<16x128xf32>
    %c0_60 = arith.constant 0 : index
    %c0_61 = arith.constant 0 : index
    %c0_62 = arith.constant 0 : index
    %170 = vector.load %arg14[%c0_60, %c0_61, %c0_62] : memref<1x16x128xf32, #tpu.memory_space<vmem>>, vector<1x16x128xf32>
    %171 = vector.shape_cast %170 : vector<1x16x128xf32> to vector<16x128xf32>
    %172 = vector.shape_cast %169 : vector<16x128xf32> to vector<1x16x128xf32>
    tpu.vector_store %arg14[%c0_60, %c0_61, %c0_62], %172 {strides = array<i32>} : memref<1x16x128xf32, #tpu.memory_space<vmem>>, vector<1x16x128xf32>,
    return
  }
  func.func @transform_0(%arg0: i32) -> (i32, i32, i32) {
    %c0_i32 = arith.constant 0 : i32
    %c0_i32_0 = arith.constant 0 : i32
    %c0_i32_1 = arith.constant 0 : i32
    return %arg0, %c0_i32, %c0_i32_0 : i32, i32, i32
  }
  func.func @transform_1(%arg0: i32) -> (i32, i32) {
    %c0_i32 = arith.constant 0 : i32
    %c0_i32_0 = arith.constant 0 : i32
    %c0_i32_1 = arith.constant 0 : i32
    return %c0_i32, %c0_i32_0 : i32, i32
  }
  func.func @transform_2(%arg0: i32) -> (i32, i32) {
    %c0_i32 = arith.constant 0 : i32
    %c0_i32_0 = arith.constant 0 : i32
    %c0_i32_1 = arith.constant 0 : i32
    return %c0_i32, %c0_i32_0 : i32, i32
  }
  func.func @transform_3(%arg0: i32) -> (i32, i32) {
    %c0_i32 = arith.constant 0 : i32
    %c0_i32_0 = arith.constant 0 : i32
    %c0_i32_1 = arith.constant 0 : i32
    return %c0_i32, %c0_i32_0 : i32, i32
  }
  func.func @transform_4(%arg0: i32) -> (i32, i32) {
    %c0_i32 = arith.constant 0 : i32
    %c0_i32_0 = arith.constant 0 : i32
    %c0_i32_1 = arith.constant 0 : i32
    return %c0_i32, %c0_i32_0 : i32, i32
  }
  func.func @transform_5(%arg0: i32) -> (i32, i32) {
    %c0_i32 = arith.constant 0 : i32
    %c0_i32_0 = arith.constant 0 : i32
    %c0_i32_1 = arith.constant 0 : i32
    return %c0_i32, %c0_i32_0 : i32, i32
  }
  func.func @transform_6(%arg0: i32) -> (i32, i32) {
    %c0_i32 = arith.constant 0 : i32
    %c0_i32_0 = arith.constant 0 : i32
    %c0_i32_1 = arith.constant 0 : i32
    return %c0_i32, %c0_i32_0 : i32, i32
  }
  func.func @transform_7(%arg0: i32) -> (i32, i32) {
    %c0_i32 = arith.constant 0 : i32
    %c0_i32_0 = arith.constant 0 : i32
    %c0_i32_1 = arith.constant 0 : i32
    return %c0_i32, %c0_i32_0 : i32, i32
  }
  func.func @transform_8(%arg0: i32) -> (i32, i32) {
    %c0_i32 = arith.constant 0 : i32
    %c0_i32_0 = arith.constant 0 : i32
    %c0_i32_1 = arith.constant 0 : i32
    return %c0_i32, %c0_i32_0 : i32, i32
  }
  func.func @transform_9(%arg0: i32) -> (i32, i32) {
    %c0_i32 = arith.constant 0 : i32
    %c0_i32_0 = arith.constant 0 : i32
    %c0_i32_1 = arith.constant 0 : i32
    return %c0_i32, %c0_i32_0 : i32, i32
  }
  func.func @transform_10(%arg0: i32) -> (i32, i32) {
    %c0_i32 = arith.constant 0 : i32
    %c0_i32_0 = arith.constant 0 : i32
    %c0_i32_1 = arith.constant 0 : i32
    return %c0_i32, %c0_i32_0 : i32, i32
  }
  func.func @transform_11(%arg0: i32) -> (i32, i32) {
    %c0_i32 = arith.constant 0 : i32
    %c0_i32_0 = arith.constant 0 : i32
    %c0_i32_1 = arith.constant 0 : i32
    return %c0_i32, %c0_i32_0 : i32, i32
  }
  func.func @transform_12(%arg0: i32) -> (i32, i32) {
    %c0_i32 = arith.constant 0 : i32
    %c0_i32_0 = arith.constant 0 : i32
    %c0_i32_1 = arith.constant 0 : i32
    return %c0_i32, %c0_i32_0 : i32, i32
  }
  func.func @transform_13(%arg0: i32) -> (i32, i32, i32) {
    %c0_i32 = arith.constant 0 : i32
    %c0_i32_0 = arith.constant 0 : i32
    %c0_i32_1 = arith.constant 0 : i32
    return %arg0, %c0_i32, %c0_i32_0 : i32, i32, i32
  }
}

module attributes {stable_mosaic.version = 11 : i64} {
  func.func @_linear_kernel(%arg0: i32, %arg1: memref<32x64xf32, #tpu.memory_space<vmem>>, %arg2: memref<64x128xbf16, #tpu.memory_space<vmem>>, %arg3: memref<1x128xf32, #tpu.memory_space<vmem>>, %arg4: memref<32x128xf32, #tpu.memory_space<vmem>>) attributes {dimension_semantics = [#tpu.dimension_semantics<parallel>], iteration_bounds = array<i64: 1>, scalar_prefetch = 0 : i64, scratch_operands = 0 : i64, tpu.core_type = #tpu.core_type<tc>, window_params = [{transform_indices = @transform_0, window_bounds = array<i64: 32, 64>}, {pipeline_mode = #tpu.pipeline_mode<synchronous>, transform_indices = @transform_1, window_bounds = array<i64: 64, 128>}, {pipeline_mode = #tpu.pipeline_mode<synchronous>, transform_indices = @transform_2, window_bounds = array<i64: 1, 128>}, {transform_indices = @transform_3, window_bounds = array<i64: 32, 128>}]} {
    %c0 = arith.constant 0 : index
    %c0_0 = arith.constant 0 : index
    %0 = vector.load %arg1[%c0, %c0_0] : memref<32x64xf32, #tpu.memory_space<vmem>>, vector<32x64xf32>
    %1 = arith.truncf %0 : vector<32x64xf32> to vector<32x64xbf16>
    %c0_1 = arith.constant 0 : index
    %c0_2 = arith.constant 0 : index
    %2 = vector.load %arg2[%c0_1, %c0_2] : memref<64x128xbf16, #tpu.memory_space<vmem>>, vector<64x128xbf16>
    %cst = arith.constant dense<0.000000e+00> : vector<32x128xf32>
    %3 = tpu.matmul %1, %2, %cst {dimension_numbers = #tpu.dot_dimension_numbers<[1], [0], [0], [1], [0, 0, 1, 1], [], []>} : vector<32x64xbf16>, vector<64x128xbf16>, vector<32x128xf32> -> vector<32x128xf32>
    %c0_3 = arith.constant 0 : index
    %c0_4 = arith.constant 0 : index
    %4 = vector.load %arg3[%c0_3, %c0_4] : memref<1x128xf32, #tpu.memory_space<vmem>>, vector<1x128xf32>
    %5 = vector.broadcast %4 : vector<1x128xf32> to vector<32x128xf32>
    %6 = arith.addf %3, %5 : vector<32x128xf32>
    %c0_5 = arith.constant 0 : index
    %c0_6 = arith.constant 0 : index
    %7 = vector.load %arg4[%c0_5, %c0_6] : memref<32x128xf32, #tpu.memory_space<vmem>>, vector<32x128xf32>
    tpu.vector_store %arg4[%c0_5, %c0_6], %6 {strides = array<i32>} : memref<32x128xf32, #tpu.memory_space<vmem>>, vector<32x128xf32>,
    return
  }
  func.func @transform_0(%arg0: i32) -> (i32, i32) {
    %c0_i32 = arith.constant 0 : i32
    %c0_i32_0 = arith.constant 0 : i32
    return %arg0, %c0_i32 : i32, i32
  }
  func.func @transform_1(%arg0: i32) -> (i32, i32) {
    %c0_i32 = arith.constant 0 : i32
    %c0_i32_0 = arith.constant 0 : i32
    %c0_i32_1 = arith.constant 0 : i32
    return %c0_i32, %c0_i32_0 : i32, i32
  }
  func.func @transform_2(%arg0: i32) -> (i32, i32) {
    %c0_i32 = arith.constant 0 : i32
    %c0_i32_0 = arith.constant 0 : i32
    %c0_i32_1 = arith.constant 0 : i32
    return %c0_i32, %c0_i32_0 : i32, i32
  }
  func.func @transform_3(%arg0: i32) -> (i32, i32) {
    %c0_i32 = arith.constant 0 : i32
    %c0_i32_0 = arith.constant 0 : i32
    return %arg0, %c0_i32 : i32, i32
  }
}

module attributes {stable_mosaic.version = 11 : i64} {
  func.func @_dual_linear_kernel(%arg0: i32, %arg1: memref<32x128xf32, #tpu.memory_space<vmem>>, %arg2: memref<32x128xf32, #tpu.memory_space<vmem>>, %arg3: memref<128x32xbf16, #tpu.memory_space<vmem>>, %arg4: memref<1x32xf32, #tpu.memory_space<vmem>>, %arg5: memref<32x32xf32, #tpu.memory_space<vmem>>, %arg6: memref<32x32xf32, #tpu.memory_space<vmem>>) attributes {dimension_semantics = [#tpu.dimension_semantics<parallel>], iteration_bounds = array<i64: 1>, scalar_prefetch = 0 : i64, scratch_operands = 0 : i64, tpu.core_type = #tpu.core_type<tc>, window_params = [{transform_indices = @transform_0, window_bounds = array<i64: 32, 128>}, {transform_indices = @transform_1, window_bounds = array<i64: 32, 128>}, {pipeline_mode = #tpu.pipeline_mode<synchronous>, transform_indices = @transform_2, window_bounds = array<i64: 128, 32>}, {pipeline_mode = #tpu.pipeline_mode<synchronous>, transform_indices = @transform_3, window_bounds = array<i64: 1, 32>}, {transform_indices = @transform_4, window_bounds = array<i64: 32, 32>}, {transform_indices = @transform_5, window_bounds = array<i64: 32, 32>}]} {
    %c0 = arith.constant 0 : index
    %c0_0 = arith.constant 0 : index
    %0 = vector.load %arg3[%c0, %c0_0] : memref<128x32xbf16, #tpu.memory_space<vmem>>, vector<128x32xbf16>
    %c0_1 = arith.constant 0 : index
    %c0_2 = arith.constant 0 : index
    %1 = vector.load %arg4[%c0_1, %c0_2] : memref<1x32xf32, #tpu.memory_space<vmem>>, vector<1x32xf32>
    %c0_3 = arith.constant 0 : index
    %c0_4 = arith.constant 0 : index
    %2 = vector.load %arg1[%c0_3, %c0_4] : memref<32x128xf32, #tpu.memory_space<vmem>>, vector<32x128xf32>
    %3 = arith.truncf %2 : vector<32x128xf32> to vector<32x128xbf16>
    %cst = arith.constant dense<0.000000e+00> : vector<32x32xf32>
    %4 = tpu.matmul %3, %0, %cst {dimension_numbers = #tpu.dot_dimension_numbers<[1], [0], [0], [1], [0, 0, 1, 1], [], []>} : vector<32x128xbf16>, vector<128x32xbf16>, vector<32x32xf32> -> vector<32x32xf32>
    %5 = vector.broadcast %1 : vector<1x32xf32> to vector<32x32xf32>
    %6 = arith.addf %4, %5 : vector<32x32xf32>
    %c0_5 = arith.constant 0 : index
    %c0_6 = arith.constant 0 : index
    %7 = vector.load %arg5[%c0_5, %c0_6] : memref<32x32xf32, #tpu.memory_space<vmem>>, vector<32x32xf32>
    tpu.vector_store %arg5[%c0_5, %c0_6], %6 {strides = array<i32>} : memref<32x32xf32, #tpu.memory_space<vmem>>, vector<32x32xf32>,
    %c0_7 = arith.constant 0 : index
    %c0_8 = arith.constant 0 : index
    %8 = vector.load %arg2[%c0_7, %c0_8] : memref<32x128xf32, #tpu.memory_space<vmem>>, vector<32x128xf32>
    %9 = arith.truncf %8 : vector<32x128xf32> to vector<32x128xbf16>
    %cst_9 = arith.constant dense<0.000000e+00> : vector<32x32xf32>
    %10 = tpu.matmul %9, %0, %cst_9 {dimension_numbers = #tpu.dot_dimension_numbers<[1], [0], [0], [1], [0, 0, 1, 1], [], []>} : vector<32x128xbf16>, vector<128x32xbf16>, vector<32x32xf32> -> vector<32x32xf32>
    %11 = vector.broadcast %1 : vector<1x32xf32> to vector<32x32xf32>
    %12 = arith.addf %10, %11 : vector<32x32xf32>
    %c0_10 = arith.constant 0 : index
    %c0_11 = arith.constant 0 : index
    %13 = vector.load %arg6[%c0_10, %c0_11] : memref<32x32xf32, #tpu.memory_space<vmem>>, vector<32x32xf32>
    tpu.vector_store %arg6[%c0_10, %c0_11], %12 {strides = array<i32>} : memref<32x32xf32, #tpu.memory_space<vmem>>, vector<32x32xf32>,
    return
  }
  func.func @transform_0(%arg0: i32) -> (i32, i32) {
    %c0_i32 = arith.constant 0 : i32
    %c0_i32_0 = arith.constant 0 : i32
    return %arg0, %c0_i32 : i32, i32
  }
  func.func @transform_1(%arg0: i32) -> (i32, i32) {
    %c0_i32 = arith.constant 0 : i32
    %c0_i32_0 = arith.constant 0 : i32
    return %arg0, %c0_i32 : i32, i32
  }
  func.func @transform_2(%arg0: i32) -> (i32, i32) {
    %c0_i32 = arith.constant 0 : i32
    %c0_i32_0 = arith.constant 0 : i32
    %c0_i32_1 = arith.constant 0 : i32
    return %c0_i32, %c0_i32_0 : i32, i32
  }
  func.func @transform_3(%arg0: i32) -> (i32, i32) {
    %c0_i32 = arith.constant 0 : i32
    %c0_i32_0 = arith.constant 0 : i32
    %c0_i32_1 = arith.constant 0 : i32
    return %c0_i32, %c0_i32_0 : i32, i32
  }
  func.func @transform_4(%arg0: i32) -> (i32, i32) {
    %c0_i32 = arith.constant 0 : i32
    %c0_i32_0 = arith.constant 0 : i32
    return %arg0, %c0_i32 : i32, i32
  }
  func.func @transform_5(%arg0: i32) -> (i32, i32) {
    %c0_i32 = arith.constant 0 : i32
    %c0_i32_0 = arith.constant 0 : i32
    return %arg0, %c0_i32 : i32, i32
  }
}

module attributes {stable_mosaic.version = 11 : i64} {
  func.func @_decoder_layer_kernel(%arg0: i32, %arg1: memref<1x16x128xf32, #tpu.memory_space<vmem>>, %arg2: memref<1x16x128xf32, #tpu.memory_space<vmem>>, %arg3: memref<128x192xbf16, #tpu.memory_space<vmem>>, %arg4: memref<1x192xf32, #tpu.memory_space<vmem>>, %arg5: memref<64x128xbf16, #tpu.memory_space<vmem>>, %arg6: memref<1x128xf32, #tpu.memory_space<vmem>>, %arg7: memref<1x128xf32, #tpu.memory_space<vmem>>, %arg8: memref<1x128xf32, #tpu.memory_space<vmem>>, %arg9: memref<128x64xbf16, #tpu.memory_space<vmem>>, %arg10: memref<1x64xf32, #tpu.memory_space<vmem>>, %arg11: memref<128x128xbf16, #tpu.memory_space<vmem>>, %arg12: memref<1x128xf32, #tpu.memory_space<vmem>>, %arg13: memref<64x128xbf16, #tpu.memory_space<vmem>>, %arg14: memref<1x128xf32, #tpu.memory_space<vmem>>, %arg15: memref<1x128xf32, #tpu.memory_space<vmem>>, %arg16: memref<1x128xf32, #tpu.memory_space<vmem>>, %arg17: memref<128x256xbf16, #tpu.memory_space<vmem>>, %arg18: memref<1x256xf32, #tpu.memory_space<vmem>>, %arg19: memref<256x128xbf16, #tpu.memory_space<vmem>>, %arg20: memref<1x128xf32, #tpu.memory_space<vmem>>, %arg21: memref<1x128xf32, #tpu.memory_space<vmem>>, %arg22: memref<1x128xf32, #tpu.memory_space<vmem>>, %arg23: memref<1x16x128xf32, #tpu.memory_space<vmem>>) attributes {dimension_semantics = [#tpu.dimension_semantics<parallel>], iteration_bounds = array<i64: 2>, scalar_prefetch = 0 : i64, scratch_operands = 0 : i64, tpu.core_type = #tpu.core_type<tc>, window_params = [{transform_indices = @transform_0, window_bounds = array<i64: 1, 16, 128>}, {transform_indices = @transform_1, window_bounds = array<i64: 1, 16, 128>}, {pipeline_mode = #tpu.pipeline_mode<synchronous>, transform_indices = @transform_2, window_bounds = array<i64: 128, 192>}, {pipeline_mode = #tpu.pipeline_mode<synchronous>, transform_indices = @transform_3, window_bounds = array<i64: 1, 192>}, {pipeline_mode = #tpu.pipeline_mode<synchronous>, transform_indices = @transform_4, window_bounds = array<i64: 64, 128>}, {pipeline_mode = #tpu.pipeline_mode<synchronous>, transform_indices = @transform_5, window_bounds = array<i64: 1, 128>}, {pipeline_mode = #tpu.pipeline_mode<synchronous>, transform_indices = @transform_6, window_bounds = array<i64: 1, 128>}, {pipeline_mode = #tpu.pipeline_mode<synchronous>, transform_indices = @transform_7, window_bounds = array<i64: 1, 128>}, {pipeline_mode = #tpu.pipeline_mode<synchronous>, transform_indices = @transform_8, window_bounds = array<i64: 128, 64>}, {pipeline_mode = #tpu.pipeline_mode<synchronous>, transform_indices = @transform_9, window_bounds = array<i64: 1, 64>}, {pipeline_mode = #tpu.pipeline_mode<synchronous>, transform_indices = @transform_10, window_bounds = array<i64: 128, 128>}, {pipeline_mode = #tpu.pipeline_mode<synchronous>, transform_indices = @transform_11, window_bounds = array<i64: 1, 128>}, {pipeline_mode = #tpu.pipeline_mode<synchronous>, transform_indices = @transform_12, window_bounds = array<i64: 64, 128>}, {pipeline_mode = #tpu.pipeline_mode<synchronous>, transform_indices = @transform_13, window_bounds = array<i64: 1, 128>}, {pipeline_mode = #tpu.pipeline_mode<synchronous>, transform_indices = @transform_14, window_bounds = array<i64: 1, 128>}, {pipeline_mode = #tpu.pipeline_mode<synchronous>, transform_indices = @transform_15, window_bounds = array<i64: 1, 128>}, {pipeline_mode = #tpu.pipeline_mode<synchronous>, transform_indices = @transform_16, window_bounds = array<i64: 128, 256>}, {pipeline_mode = #tpu.pipeline_mode<synchronous>, transform_indices = @transform_17, window_bounds = array<i64: 1, 256>}, {pipeline_mode = #tpu.pipeline_mode<synchronous>, transform_indices = @transform_18, window_bounds = array<i64: 256, 128>}, {pipeline_mode = #tpu.pipeline_mode<synchronous>, transform_indices = @transform_19, window_bounds = array<i64: 1, 128>}, {pipeline_mode = #tpu.pipeline_mode<synchronous>, transform_indices = @transform_20, window_bounds = array<i64: 1, 128>}, {pipeline_mode = #tpu.pipeline_mode<synchronous>, transform_indices = @transform_21, window_bounds = array<i64: 1, 128>}, {transform_indices = @transform_22, window_bounds = array<i64: 1, 16, 128>}]} {
    %c0 = arith.constant 0 : index
    %c0_0 = arith.constant 0 : index
    %c0_1 = arith.constant 0 : index
    %0 = vector.load %arg1[%c0, %c0_0, %c0_1] : memref<1x16x128xf32, #tpu.memory_space<vmem>>, vector<1x16x128xf32>
    %1 = vector.shape_cast %0 : vector<1x16x128xf32> to vector<16x128xf32>
    %c0_2 = arith.constant 0 : index
    %c0_3 = arith.constant 0 : index
    %c0_4 = arith.constant 0 : index
    %2 = vector.load %arg2[%c0_2, %c0_3, %c0_4] : memref<1x16x128xf32, #tpu.memory_space<vmem>>, vector<1x16x128xf32>
    %3 = vector.shape_cast %2 : vector<1x16x128xf32> to vector<16x128xf32>
    %4 = arith.truncf %1 : vector<16x128xf32> to vector<16x128xbf16>
    %c0_5 = arith.constant 0 : index
    %c0_6 = arith.constant 0 : index
    %5 = vector.load %arg3[%c0_5, %c0_6] : memref<128x192xbf16, #tpu.memory_space<vmem>>, vector<128x192xbf16>
    %cst = arith.constant dense<0.000000e+00> : vector<16x192xf32>
    %6 = tpu.matmul %4, %5, %cst {dimension_numbers = #tpu.dot_dimension_numbers<[1], [0], [0], [1], [0, 0, 1, 1], [], []>} : vector<16x128xbf16>, vector<128x192xbf16>, vector<16x192xf32> -> vector<16x192xf32>
    %c0_7 = arith.constant 0 : index
    %c0_8 = arith.constant 0 : index
    %7 = vector.load %arg4[%c0_7, %c0_8] : memref<1x192xf32, #tpu.memory_space<vmem>>, vector<1x192xf32>
    %8 = vector.broadcast %7 : vector<1x192xf32> to vector<16x192xf32>
    %9 = arith.addf %6, %8 : vector<16x192xf32>
    %10 = vector.extract_strided_slice %9 {offsets = [0, 0], sizes = [16, 64], strides = [1, 1]} : vector<16x192xf32> to vector<16x64xf32>
    %11 = vector.extract_strided_slice %9 {offsets = [0, 64], sizes = [16, 64], strides = [1, 1]} : vector<16x192xf32> to vector<16x64xf32>
    %12 = vector.extract_strided_slice %9 {offsets = [0, 128], sizes = [16, 64], strides = [1, 1]} : vector<16x192xf32> to vector<16x64xf32>
    %13 = vector.extract_strided_slice %10 {offsets = [0, 0], sizes = [16, 16], strides = [1, 1]} : vector<16x64xf32> to vector<16x16xf32>
    %cst_9 = arith.constant 2.500000e-01 : f32
    %14 = vector.broadcast %cst_9 : f32 to vector<16x16xf32>
    %15 = arith.mulf %13, %14 : vector<16x16xf32>
    %16 = arith.truncf %15 : vector<16x16xf32> to vector<16x16xbf16>
    %17 = vector.extract_strided_slice %11 {offsets = [0, 0], sizes = [16, 16], strides = [1, 1]} : vector<16x64xf32> to vector<16x16xf32>
    %18 = arith.truncf %17 : vector<16x16xf32> to vector<16x16xbf16>
    %19 = vector.extract_strided_slice %12 {offsets = [0, 0], sizes = [16, 16], strides = [1, 1]} : vector<16x64xf32> to vector<16x16xf32>
    %20 = arith.truncf %19 : vector<16x16xf32> to vector<16x16xbf16>
    %21 = tpu.transpose %18, [1, 0] : vector<16x16xbf16> -> vector<16x16xbf16>
    %cst_10 = arith.constant dense<0.000000e+00> : vector<16x16xf32>
    %22 = tpu.matmul %16, %21, %cst_10 {dimension_numbers = #tpu.dot_dimension_numbers<[1], [0], [0], [1], [0, 0, 1, 1], [], []>} : vector<16x16xbf16>, vector<16x16xbf16>, vector<16x16xf32> -> vector<16x16xf32>
    %cst_11 = arith.constant dense<0xFF800000> : vector<16xf32>
    %23 = vector.multi_reduction <maximumf>, %22, %cst_11 [1] : vector<16x16xf32> to vector<16xf32>
    %24 = vector.shape_cast %23 : vector<16xf32> to vector<16x1xf32>
    %25 = vector.broadcast %24 : vector<16x1xf32> to vector<16x16xf32>
    %26 = arith.subf %22, %25 : vector<16x16xf32>
    %27 = math.exp %26 : vector<16x16xf32>
    %cst_12 = arith.constant dense<0.000000e+00> : vector<16xf32>
    %28 = vector.multi_reduction <add>, %27, %cst_12 [1] : vector<16x16xf32> to vector<16xf32>
    %29 = vector.shape_cast %28 : vector<16xf32> to vector<16x1xf32>
    %30 = tpu.reciprocal %29 {approx = true} : vector<16x1xf32> -> vector<16x1xf32>
    %31 = vector.broadcast %30 : vector<16x1xf32> to vector<16x16xf32>
    %32 = arith.mulf %27, %31 : vector<16x16xf32>
    %33 = arith.truncf %32 : vector<16x16xf32> to vector<16x16xbf16>
    %cst_13 = arith.constant dense<0.000000e+00> : vector<16x16xf32>
    %34 = tpu.matmul %33, %20, %cst_13 {dimension_numbers = #tpu.dot_dimension_numbers<[1], [0], [0], [1], [0, 0, 1, 1], [], []>} : vector<16x16xbf16>, vector<16x16xbf16>, vector<16x16xf32> -> vector<16x16xf32>
    %35 = vector.extract_strided_slice %10 {offsets = [0, 16], sizes = [16, 16], strides = [1, 1]} : vector<16x64xf32> to vector<16x16xf32>
    %cst_14 = arith.constant 2.500000e-01 : f32
    %36 = vector.broadcast %cst_14 : f32 to vector<16x16xf32>
    %37 = arith.mulf %35, %36 : vector<16x16xf32>
    %38 = arith.truncf %37 : vector<16x16xf32> to vector<16x16xbf16>
    %39 = vector.extract_strided_slice %11 {offsets = [0, 16], sizes = [16, 16], strides = [1, 1]} : vector<16x64xf32> to vector<16x16xf32>
    %40 = arith.truncf %39 : vector<16x16xf32> to vector<16x16xbf16>
    %41 = vector.extract_strided_slice %12 {offsets = [0, 16], sizes = [16, 16], strides = [1, 1]} : vector<16x64xf32> to vector<16x16xf32>
    %42 = arith.truncf %41 : vector<16x16xf32> to vector<16x16xbf16>
    %43 = tpu.transpose %40, [1, 0] : vector<16x16xbf16> -> vector<16x16xbf16>
    %cst_15 = arith.constant dense<0.000000e+00> : vector<16x16xf32>
    %44 = tpu.matmul %38, %43, %cst_15 {dimension_numbers = #tpu.dot_dimension_numbers<[1], [0], [0], [1], [0, 0, 1, 1], [], []>} : vector<16x16xbf16>, vector<16x16xbf16>, vector<16x16xf32> -> vector<16x16xf32>
    %cst_16 = arith.constant dense<0xFF800000> : vector<16xf32>
    %45 = vector.multi_reduction <maximumf>, %44, %cst_16 [1] : vector<16x16xf32> to vector<16xf32>
    %46 = vector.shape_cast %45 : vector<16xf32> to vector<16x1xf32>
    %47 = vector.broadcast %46 : vector<16x1xf32> to vector<16x16xf32>
    %48 = arith.subf %44, %47 : vector<16x16xf32>
    %49 = math.exp %48 : vector<16x16xf32>
    %cst_17 = arith.constant dense<0.000000e+00> : vector<16xf32>
    %50 = vector.multi_reduction <add>, %49, %cst_17 [1] : vector<16x16xf32> to vector<16xf32>
    %51 = vector.shape_cast %50 : vector<16xf32> to vector<16x1xf32>
    %52 = tpu.reciprocal %51 {approx = true} : vector<16x1xf32> -> vector<16x1xf32>
    %53 = vector.broadcast %52 : vector<16x1xf32> to vector<16x16xf32>
    %54 = arith.mulf %49, %53 : vector<16x16xf32>
    %55 = arith.truncf %54 : vector<16x16xf32> to vector<16x16xbf16>
    %cst_18 = arith.constant dense<0.000000e+00> : vector<16x16xf32>
    %56 = tpu.matmul %55, %42, %cst_18 {dimension_numbers = #tpu.dot_dimension_numbers<[1], [0], [0], [1], [0, 0, 1, 1], [], []>} : vector<16x16xbf16>, vector<16x16xbf16>, vector<16x16xf32> -> vector<16x16xf32>
    %57 = vector.extract_strided_slice %10 {offsets = [0, 32], sizes = [16, 16], strides = [1, 1]} : vector<16x64xf32> to vector<16x16xf32>
    %cst_19 = arith.constant 2.500000e-01 : f32
    %58 = vector.broadcast %cst_19 : f32 to vector<16x16xf32>
    %59 = arith.mulf %57, %58 : vector<16x16xf32>
    %60 = arith.truncf %59 : vector<16x16xf32> to vector<16x16xbf16>
    %61 = vector.extract_strided_slice %11 {offsets = [0, 32], sizes = [16, 16], strides = [1, 1]} : vector<16x64xf32> to vector<16x16xf32>
    %62 = arith.truncf %61 : vector<16x16xf32> to vector<16x16xbf16>
    %63 = vector.extract_strided_slice %12 {offsets = [0, 32], sizes = [16, 16], strides = [1, 1]} : vector<16x64xf32> to vector<16x16xf32>
    %64 = arith.truncf %63 : vector<16x16xf32> to vector<16x16xbf16>
    %65 = tpu.transpose %62, [1, 0] : vector<16x16xbf16> -> vector<16x16xbf16>
    %cst_20 = arith.constant dense<0.000000e+00> : vector<16x16xf32>
    %66 = tpu.matmul %60, %65, %cst_20 {dimension_numbers = #tpu.dot_dimension_numbers<[1], [0], [0], [1], [0, 0, 1, 1], [], []>} : vector<16x16xbf16>, vector<16x16xbf16>, vector<16x16xf32> -> vector<16x16xf32>
    %cst_21 = arith.constant dense<0xFF800000> : vector<16xf32>
    %67 = vector.multi_reduction <maximumf>, %66, %cst_21 [1] : vector<16x16xf32> to vector<16xf32>
    %68 = vector.shape_cast %67 : vector<16xf32> to vector<16x1xf32>
    %69 = vector.broadcast %68 : vector<16x1xf32> to vector<16x16xf32>
    %70 = arith.subf %66, %69 : vector<16x16xf32>
    %71 = math.exp %70 : vector<16x16xf32>
    %cst_22 = arith.constant dense<0.000000e+00> : vector<16xf32>
    %72 = vector.multi_reduction <add>, %71, %cst_22 [1] : vector<16x16xf32> to vector<16xf32>
    %73 = vector.shape_cast %72 : vector<16xf32> to vector<16x1xf32>
    %74 = tpu.reciprocal %73 {approx = true} : vector<16x1xf32> -> vector<16x1xf32>
    %75 = vector.broadcast %74 : vector<16x1xf32> to vector<16x16xf32>
    %76 = arith.mulf %71, %75 : vector<16x16xf32>
    %77 = arith.truncf %76 : vector<16x16xf32> to vector<16x16xbf16>
    %cst_23 = arith.constant dense<0.000000e+00> : vector<16x16xf32>
    %78 = tpu.matmul %77, %64, %cst_23 {dimension_numbers = #tpu.dot_dimension_numbers<[1], [0], [0], [1], [0, 0, 1, 1], [], []>} : vector<16x16xbf16>, vector<16x16xbf16>, vector<16x16xf32> -> vector<16x16xf32>
    %79 = vector.extract_strided_slice %10 {offsets = [0, 48], sizes = [16, 16], strides = [1, 1]} : vector<16x64xf32> to vector<16x16xf32>
    %cst_24 = arith.constant 2.500000e-01 : f32
    %80 = vector.broadcast %cst_24 : f32 to vector<16x16xf32>
    %81 = arith.mulf %79, %80 : vector<16x16xf32>
    %82 = arith.truncf %81 : vector<16x16xf32> to vector<16x16xbf16>
    %83 = vector.extract_strided_slice %11 {offsets = [0, 48], sizes = [16, 16], strides = [1, 1]} : vector<16x64xf32> to vector<16x16xf32>
    %84 = arith.truncf %83 : vector<16x16xf32> to vector<16x16xbf16>
    %85 = vector.extract_strided_slice %12 {offsets = [0, 48], sizes = [16, 16], strides = [1, 1]} : vector<16x64xf32> to vector<16x16xf32>
    %86 = arith.truncf %85 : vector<16x16xf32> to vector<16x16xbf16>
    %87 = tpu.transpose %84, [1, 0] : vector<16x16xbf16> -> vector<16x16xbf16>
    %cst_25 = arith.constant dense<0.000000e+00> : vector<16x16xf32>
    %88 = tpu.matmul %82, %87, %cst_25 {dimension_numbers = #tpu.dot_dimension_numbers<[1], [0], [0], [1], [0, 0, 1, 1], [], []>} : vector<16x16xbf16>, vector<16x16xbf16>, vector<16x16xf32> -> vector<16x16xf32>
    %cst_26 = arith.constant dense<0xFF800000> : vector<16xf32>
    %89 = vector.multi_reduction <maximumf>, %88, %cst_26 [1] : vector<16x16xf32> to vector<16xf32>
    %90 = vector.shape_cast %89 : vector<16xf32> to vector<16x1xf32>
    %91 = vector.broadcast %90 : vector<16x1xf32> to vector<16x16xf32>
    %92 = arith.subf %88, %91 : vector<16x16xf32>
    %93 = math.exp %92 : vector<16x16xf32>
    %cst_27 = arith.constant dense<0.000000e+00> : vector<16xf32>
    %94 = vector.multi_reduction <add>, %93, %cst_27 [1] : vector<16x16xf32> to vector<16xf32>
    %95 = vector.shape_cast %94 : vector<16xf32> to vector<16x1xf32>
    %96 = tpu.reciprocal %95 {approx = true} : vector<16x1xf32> -> vector<16x1xf32>
    %97 = vector.broadcast %96 : vector<16x1xf32> to vector<16x16xf32>
    %98 = arith.mulf %93, %97 : vector<16x16xf32>
    %99 = arith.truncf %98 : vector<16x16xf32> to vector<16x16xbf16>
    %cst_28 = arith.constant dense<0.000000e+00> : vector<16x16xf32>
    %100 = tpu.matmul %99, %86, %cst_28 {dimension_numbers = #tpu.dot_dimension_numbers<[1], [0], [0], [1], [0, 0, 1, 1], [], []>} : vector<16x16xbf16>, vector<16x16xbf16>, vector<16x16xf32> -> vector<16x16xf32>
    %101 = tpu.concatenate %34, %56, %78, %100 in 1 : vector<16x16xf32>, vector<16x16xf32>, vector<16x16xf32>, vector<16x16xf32> -> vector<16x64xf32>
    %102 = arith.truncf %101 : vector<16x64xf32> to vector<16x64xbf16>
    %c0_29 = arith.constant 0 : index
    %c0_30 = arith.constant 0 : index
    %103 = vector.load %arg5[%c0_29, %c0_30] : memref<64x128xbf16, #tpu.memory_space<vmem>>, vector<64x128xbf16>
    %cst_31 = arith.constant dense<0.000000e+00> : vector<16x128xf32>
    %104 = tpu.matmul %102, %103, %cst_31 {dimension_numbers = #tpu.dot_dimension_numbers<[1], [0], [0], [1], [0, 0, 1, 1], [], []>} : vector<16x64xbf16>, vector<64x128xbf16>, vector<16x128xf32> -> vector<16x128xf32>
    %105 = arith.addf %1, %104 : vector<16x128xf32>
    %c0_32 = arith.constant 0 : index
    %c0_33 = arith.constant 0 : index
    %106 = vector.load %arg6[%c0_32, %c0_33] : memref<1x128xf32, #tpu.memory_space<vmem>>, vector<1x128xf32>
    %107 = vector.broadcast %106 : vector<1x128xf32> to vector<16x128xf32>
    %108 = arith.addf %105, %107 : vector<16x128xf32>
    %c0_34 = arith.constant 0 : index
    %c0_35 = arith.constant 0 : index
    %109 = vector.load %arg7[%c0_34, %c0_35] : memref<1x128xf32, #tpu.memory_space<vmem>>, vector<1x128xf32>
    %c0_36 = arith.constant 0 : index
    %c0_37 = arith.constant 0 : index
    %110 = vector.load %arg8[%c0_36, %c0_37] : memref<1x128xf32, #tpu.memory_space<vmem>>, vector<1x128xf32>
    %cst_38 = arith.constant dense<0.000000e+00> : vector<16xf32>
    %111 = vector.multi_reduction <add>, %108, %cst_38 [1] : vector<16x128xf32> to vector<16xf32>
    %112 = vector.shape_cast %111 : vector<16xf32> to vector<16x1xf32>
    %cst_39 = arith.constant 1.280000e+02 : f32
    %113 = vector.broadcast %cst_39 : f32 to vector<16x1xf32>
    %114 = arith.divf %112, %113 : vector<16x1xf32>
    %115 = vector.broadcast %114 : vector<16x1xf32> to vector<16x128xf32>
    %116 = arith.subf %108, %115 : vector<16x128xf32>
    %117 = arith.mulf %116, %116 : vector<16x128xf32>
    %cst_40 = arith.constant dense<0.000000e+00> : vector<16xf32>
    %118 = vector.multi_reduction <add>, %117, %cst_40 [1] : vector<16x128xf32> to vector<16xf32>
    %119 = vector.shape_cast %118 : vector<16xf32> to vector<16x1xf32>
    %cst_41 = arith.constant 1.280000e+02 : f32
    %120 = vector.broadcast %cst_41 : f32 to vector<16x1xf32>
    %121 = arith.divf %119, %120 : vector<16x1xf32>
    %122 = vector.broadcast %114 : vector<16x1xf32> to vector<16x128xf32>
    %123 = arith.subf %108, %122 : vector<16x128xf32>
    %cst_42 = arith.constant 9.99999974E-6 : f32
    %124 = vector.broadcast %cst_42 : f32 to vector<16x1xf32>
    %125 = arith.addf %121, %124 : vector<16x1xf32>
    %126 = math.rsqrt %125 : vector<16x1xf32>
    %127 = vector.broadcast %126 : vector<16x1xf32> to vector<16x128xf32>
    %128 = arith.mulf %123, %127 : vector<16x128xf32>
    %129 = vector.broadcast %109 : vector<1x128xf32> to vector<16x128xf32>
    %130 = arith.mulf %128, %129 : vector<16x128xf32>
    %131 = vector.broadcast %110 : vector<1x128xf32> to vector<16x128xf32>
    %132 = arith.addf %130, %131 : vector<16x128xf32>
    %133 = arith.truncf %132 : vector<16x128xf32> to vector<16x128xbf16>
    %c0_43 = arith.constant 0 : index
    %c0_44 = arith.constant 0 : index
    %134 = vector.load %arg9[%c0_43, %c0_44] : memref<128x64xbf16, #tpu.memory_space<vmem>>, vector<128x64xbf16>
    %cst_45 = arith.constant dense<0.000000e+00> : vector<16x64xf32>
    %135 = tpu.matmul %133, %134, %cst_45 {dimension_numbers = #tpu.dot_dimension_numbers<[1], [0], [0], [1], [0, 0, 1, 1], [], []>} : vector<16x128xbf16>, vector<128x64xbf16>, vector<16x64xf32> -> vector<16x64xf32>
    %c0_46 = arith.constant 0 : index
    %c0_47 = arith.constant 0 : index
    %136 = vector.load %arg10[%c0_46, %c0_47] : memref<1x64xf32, #tpu.memory_space<vmem>>, vector<1x64xf32>
    %137 = vector.broadcast %136 : vector<1x64xf32> to vector<16x64xf32>
    %138 = arith.addf %135, %137 : vector<16x64xf32>
    %139 = arith.truncf %3 : vector<16x128xf32> to vector<16x128xbf16>
    %c0_48 = arith.constant 0 : index
    %c0_49 = arith.constant 0 : index
    %140 = vector.load %arg11[%c0_48, %c0_49] : memref<128x128xbf16, #tpu.memory_space<vmem>>, vector<128x128xbf16>
    %cst_50 = arith.constant dense<0.000000e+00> : vector<16x128xf32>
    %141 = tpu.matmul %139, %140, %cst_50 {dimension_numbers = #tpu.dot_dimension_numbers<[1], [0], [0], [1], [0, 0, 1, 1], [], []>} : vector<16x128xbf16>, vector<128x128xbf16>, vector<16x128xf32> -> vector<16x128xf32>
    %c0_51 = arith.constant 0 : index
    %c0_52 = arith.constant 0 : index
    %142 = vector.load %arg12[%c0_51, %c0_52] : memref<1x128xf32, #tpu.memory_space<vmem>>, vector<1x128xf32>
    %143 = vector.broadcast %142 : vector<1x128xf32> to vector<16x128xf32>
    %144 = arith.addf %141, %143 : vector<16x128xf32>
    %145 = vector.extract_strided_slice %144 {offsets = [0, 0], sizes = [16, 64], strides = [1, 1]} : vector<16x128xf32> to vector<16x64xf32>
    %146 = vector.extract_strided_slice %144 {offsets = [0, 64], sizes = [16, 64], strides = [1, 1]} : vector<16x128xf32> to vector<16x64xf32>
    %147 = vector.extract_strided_slice %138 {offsets = [0, 0], sizes = [16, 16], strides = [1, 1]} : vector<16x64xf32> to vector<16x16xf32>
    %cst_53 = arith.constant 2.500000e-01 : f32
    %148 = vector.broadcast %cst_53 : f32 to vector<16x16xf32>
    %149 = arith.mulf %147, %148 : vector<16x16xf32>
    %150 = arith.truncf %149 : vector<16x16xf32> to vector<16x16xbf16>
    %151 = vector.extract_strided_slice %145 {offsets = [0, 0], sizes = [16, 16], strides = [1, 1]} : vector<16x64xf32> to vector<16x16xf32>
    %152 = arith.truncf %151 : vector<16x16xf32> to vector<16x16xbf16>
    %153 = vector.extract_strided_slice %146 {offsets = [0, 0], sizes = [16, 16], strides = [1, 1]} : vector<16x64xf32> to vector<16x16xf32>
    %154 = arith.truncf %153 : vector<16x16xf32> to vector<16x16xbf16>
    %155 = tpu.transpose %152, [1, 0] : vector<16x16xbf16> -> vector<16x16xbf16>
    %cst_54 = arith.constant dense<0.000000e+00> : vector<16x16xf32>
    %156 = tpu.matmul %150, %155, %cst_54 {dimension_numbers = #tpu.dot_dimension_numbers<[1], [0], [0], [1], [0, 0, 1, 1], [], []>} : vector<16x16xbf16>, vector<16x16xbf16>, vector<16x16xf32> -> vector<16x16xf32>
    %cst_55 = arith.constant dense<0xFF800000> : vector<16xf32>
    %157 = vector.multi_reduction <maximumf>, %156, %cst_55 [1] : vector<16x16xf32> to vector<16xf32>
    %158 = vector.shape_cast %157 : vector<16xf32> to vector<16x1xf32>
    %159 = vector.broadcast %158 : vector<16x1xf32> to vector<16x16xf32>
    %160 = arith.subf %156, %159 : vector<16x16xf32>
    %161 = math.exp %160 : vector<16x16xf32>
    %cst_56 = arith.constant dense<0.000000e+00> : vector<16xf32>
    %162 = vector.multi_reduction <add>, %161, %cst_56 [1] : vector<16x16xf32> to vector<16xf32>
    %163 = vector.shape_cast %162 : vector<16xf32> to vector<16x1xf32>
    %164 = tpu.reciprocal %163 {approx = true} : vector<16x1xf32> -> vector<16x1xf32>
    %165 = vector.broadcast %164 : vector<16x1xf32> to vector<16x16xf32>
    %166 = arith.mulf %161, %165 : vector<16x16xf32>
    %167 = arith.truncf %166 : vector<16x16xf32> to vector<16x16xbf16>
    %cst_57 = arith.constant dense<0.000000e+00> : vector<16x16xf32>
    %168 = tpu.matmul %167, %154, %cst_57 {dimension_numbers = #tpu.dot_dimension_numbers<[1], [0], [0], [1], [0, 0, 1, 1], [], []>} : vector<16x16xbf16>, vector<16x16xbf16>, vector<16x16xf32> -> vector<16x16xf32>
    %169 = vector.extract_strided_slice %138 {offsets = [0, 16], sizes = [16, 16], strides = [1, 1]} : vector<16x64xf32> to vector<16x16xf32>
    %cst_58 = arith.constant 2.500000e-01 : f32
    %170 = vector.broadcast %cst_58 : f32 to vector<16x16xf32>
    %171 = arith.mulf %169, %170 : vector<16x16xf32>
    %172 = arith.truncf %171 : vector<16x16xf32> to vector<16x16xbf16>
    %173 = vector.extract_strided_slice %145 {offsets = [0, 16], sizes = [16, 16], strides = [1, 1]} : vector<16x64xf32> to vector<16x16xf32>
    %174 = arith.truncf %173 : vector<16x16xf32> to vector<16x16xbf16>
    %175 = vector.extract_strided_slice %146 {offsets = [0, 16], sizes = [16, 16], strides = [1, 1]} : vector<16x64xf32> to vector<16x16xf32>
    %176 = arith.truncf %175 : vector<16x16xf32> to vector<16x16xbf16>
    %177 = tpu.transpose %174, [1, 0] : vector<16x16xbf16> -> vector<16x16xbf16>
    %cst_59 = arith.constant dense<0.000000e+00> : vector<16x16xf32>
    %178 = tpu.matmul %172, %177, %cst_59 {dimension_numbers = #tpu.dot_dimension_numbers<[1], [0], [0], [1], [0, 0, 1, 1], [], []>} : vector<16x16xbf16>, vector<16x16xbf16>, vector<16x16xf32> -> vector<16x16xf32>
    %cst_60 = arith.constant dense<0xFF800000> : vector<16xf32>
    %179 = vector.multi_reduction <maximumf>, %178, %cst_60 [1] : vector<16x16xf32> to vector<16xf32>
    %180 = vector.shape_cast %179 : vector<16xf32> to vector<16x1xf32>
    %181 = vector.broadcast %180 : vector<16x1xf32> to vector<16x16xf32>
    %182 = arith.subf %178, %181 : vector<16x16xf32>
    %183 = math.exp %182 : vector<16x16xf32>
    %cst_61 = arith.constant dense<0.000000e+00> : vector<16xf32>
    %184 = vector.multi_reduction <add>, %183, %cst_61 [1] : vector<16x16xf32> to vector<16xf32>
    %185 = vector.shape_cast %184 : vector<16xf32> to vector<16x1xf32>
    %186 = tpu.reciprocal %185 {approx = true} : vector<16x1xf32> -> vector<16x1xf32>
    %187 = vector.broadcast %186 : vector<16x1xf32> to vector<16x16xf32>
    %188 = arith.mulf %183, %187 : vector<16x16xf32>
    %189 = arith.truncf %188 : vector<16x16xf32> to vector<16x16xbf16>
    %cst_62 = arith.constant dense<0.000000e+00> : vector<16x16xf32>
    %190 = tpu.matmul %189, %176, %cst_62 {dimension_numbers = #tpu.dot_dimension_numbers<[1], [0], [0], [1], [0, 0, 1, 1], [], []>} : vector<16x16xbf16>, vector<16x16xbf16>, vector<16x16xf32> -> vector<16x16xf32>
    %191 = vector.extract_strided_slice %138 {offsets = [0, 32], sizes = [16, 16], strides = [1, 1]} : vector<16x64xf32> to vector<16x16xf32>
    %cst_63 = arith.constant 2.500000e-01 : f32
    %192 = vector.broadcast %cst_63 : f32 to vector<16x16xf32>
    %193 = arith.mulf %191, %192 : vector<16x16xf32>
    %194 = arith.truncf %193 : vector<16x16xf32> to vector<16x16xbf16>
    %195 = vector.extract_strided_slice %145 {offsets = [0, 32], sizes = [16, 16], strides = [1, 1]} : vector<16x64xf32> to vector<16x16xf32>
    %196 = arith.truncf %195 : vector<16x16xf32> to vector<16x16xbf16>
    %197 = vector.extract_strided_slice %146 {offsets = [0, 32], sizes = [16, 16], strides = [1, 1]} : vector<16x64xf32> to vector<16x16xf32>
    %198 = arith.truncf %197 : vector<16x16xf32> to vector<16x16xbf16>
    %199 = tpu.transpose %196, [1, 0] : vector<16x16xbf16> -> vector<16x16xbf16>
    %cst_64 = arith.constant dense<0.000000e+00> : vector<16x16xf32>
    %200 = tpu.matmul %194, %199, %cst_64 {dimension_numbers = #tpu.dot_dimension_numbers<[1], [0], [0], [1], [0, 0, 1, 1], [], []>} : vector<16x16xbf16>, vector<16x16xbf16>, vector<16x16xf32> -> vector<16x16xf32>
    %cst_65 = arith.constant dense<0xFF800000> : vector<16xf32>
    %201 = vector.multi_reduction <maximumf>, %200, %cst_65 [1] : vector<16x16xf32> to vector<16xf32>
    %202 = vector.shape_cast %201 : vector<16xf32> to vector<16x1xf32>
    %203 = vector.broadcast %202 : vector<16x1xf32> to vector<16x16xf32>
    %204 = arith.subf %200, %203 : vector<16x16xf32>
    %205 = math.exp %204 : vector<16x16xf32>
    %cst_66 = arith.constant dense<0.000000e+00> : vector<16xf32>
    %206 = vector.multi_reduction <add>, %205, %cst_66 [1] : vector<16x16xf32> to vector<16xf32>
    %207 = vector.shape_cast %206 : vector<16xf32> to vector<16x1xf32>
    %208 = tpu.reciprocal %207 {approx = true} : vector<16x1xf32> -> vector<16x1xf32>
    %209 = vector.broadcast %208 : vector<16x1xf32> to vector<16x16xf32>
    %210 = arith.mulf %205, %209 : vector<16x16xf32>
    %211 = arith.truncf %210 : vector<16x16xf32> to vector<16x16xbf16>
    %cst_67 = arith.constant dense<0.000000e+00> : vector<16x16xf32>
    %212 = tpu.matmul %211, %198, %cst_67 {dimension_numbers = #tpu.dot_dimension_numbers<[1], [0], [0], [1], [0, 0, 1, 1], [], []>} : vector<16x16xbf16>, vector<16x16xbf16>, vector<16x16xf32> -> vector<16x16xf32>
    %213 = vector.extract_strided_slice %138 {offsets = [0, 48], sizes = [16, 16], strides = [1, 1]} : vector<16x64xf32> to vector<16x16xf32>
    %cst_68 = arith.constant 2.500000e-01 : f32
    %214 = vector.broadcast %cst_68 : f32 to vector<16x16xf32>
    %215 = arith.mulf %213, %214 : vector<16x16xf32>
    %216 = arith.truncf %215 : vector<16x16xf32> to vector<16x16xbf16>
    %217 = vector.extract_strided_slice %145 {offsets = [0, 48], sizes = [16, 16], strides = [1, 1]} : vector<16x64xf32> to vector<16x16xf32>
    %218 = arith.truncf %217 : vector<16x16xf32> to vector<16x16xbf16>
    %219 = vector.extract_strided_slice %146 {offsets = [0, 48], sizes = [16, 16], strides = [1, 1]} : vector<16x64xf32> to vector<16x16xf32>
    %220 = arith.truncf %219 : vector<16x16xf32> to vector<16x16xbf16>
    %221 = tpu.transpose %218, [1, 0] : vector<16x16xbf16> -> vector<16x16xbf16>
    %cst_69 = arith.constant dense<0.000000e+00> : vector<16x16xf32>
    %222 = tpu.matmul %216, %221, %cst_69 {dimension_numbers = #tpu.dot_dimension_numbers<[1], [0], [0], [1], [0, 0, 1, 1], [], []>} : vector<16x16xbf16>, vector<16x16xbf16>, vector<16x16xf32> -> vector<16x16xf32>
    %cst_70 = arith.constant dense<0xFF800000> : vector<16xf32>
    %223 = vector.multi_reduction <maximumf>, %222, %cst_70 [1] : vector<16x16xf32> to vector<16xf32>
    %224 = vector.shape_cast %223 : vector<16xf32> to vector<16x1xf32>
    %225 = vector.broadcast %224 : vector<16x1xf32> to vector<16x16xf32>
    %226 = arith.subf %222, %225 : vector<16x16xf32>
    %227 = math.exp %226 : vector<16x16xf32>
    %cst_71 = arith.constant dense<0.000000e+00> : vector<16xf32>
    %228 = vector.multi_reduction <add>, %227, %cst_71 [1] : vector<16x16xf32> to vector<16xf32>
    %229 = vector.shape_cast %228 : vector<16xf32> to vector<16x1xf32>
    %230 = tpu.reciprocal %229 {approx = true} : vector<16x1xf32> -> vector<16x1xf32>
    %231 = vector.broadcast %230 : vector<16x1xf32> to vector<16x16xf32>
    %232 = arith.mulf %227, %231 : vector<16x16xf32>
    %233 = arith.truncf %232 : vector<16x16xf32> to vector<16x16xbf16>
    %cst_72 = arith.constant dense<0.000000e+00> : vector<16x16xf32>
    %234 = tpu.matmul %233, %220, %cst_72 {dimension_numbers = #tpu.dot_dimension_numbers<[1], [0], [0], [1], [0, 0, 1, 1], [], []>} : vector<16x16xbf16>, vector<16x16xbf16>, vector<16x16xf32> -> vector<16x16xf32>
    %235 = tpu.concatenate %168, %190, %212, %234 in 1 : vector<16x16xf32>, vector<16x16xf32>, vector<16x16xf32>, vector<16x16xf32> -> vector<16x64xf32>
    %236 = arith.truncf %235 : vector<16x64xf32> to vector<16x64xbf16>
    %c0_73 = arith.constant 0 : index
    %c0_74 = arith.constant 0 : index
    %237 = vector.load %arg13[%c0_73, %c0_74] : memref<64x128xbf16, #tpu.memory_space<vmem>>, vector<64x128xbf16>
    %cst_75 = arith.constant dense<0.000000e+00> : vector<16x128xf32>
    %238 = tpu.matmul %236, %237, %cst_75 {dimension_numbers = #tpu.dot_dimension_numbers<[1], [0], [0], [1], [0, 0, 1, 1], [], []>} : vector<16x64xbf16>, vector<64x128xbf16>, vector<16x128xf32> -> vector<16x128xf32>
    %239 = arith.addf %132, %238 : vector<16x128xf32>
    %c0_76 = arith.constant 0 : index
    %c0_77 = arith.constant 0 : index
    %240 = vector.load %arg14[%c0_76, %c0_77] : memref<1x128xf32, #tpu.memory_space<vmem>>, vector<1x128xf32>
    %241 = vector.broadcast %240 : vector<1x128xf32> to vector<16x128xf32>
    %242 = arith.addf %239, %241 : vector<16x128xf32>
    %c0_78 = arith.constant 0 : index
    %c0_79 = arith.constant 0 : index
    %243 = vector.load %arg15[%c0_78, %c0_79] : memref<1x128xf32, #tpu.memory_space<vmem>>, vector<1x128xf32>
    %c0_80 = arith.constant 0 : index
    %c0_81 = arith.constant 0 : index
    %244 = vector.load %arg16[%c0_80, %c0_81] : memref<1x128xf32, #tpu.memory_space<vmem>>, vector<1x128xf32>
    %cst_82 = arith.constant dense<0.000000e+00> : vector<16xf32>
    %245 = vector.multi_reduction <add>, %242, %cst_82 [1] : vector<16x128xf32> to vector<16xf32>
    %246 = vector.shape_cast %245 : vector<16xf32> to vector<16x1xf32>
    %cst_83 = arith.constant 1.280000e+02 : f32
    %247 = vector.broadcast %cst_83 : f32 to vector<16x1xf32>
    %248 = arith.divf %246, %247 : vector<16x1xf32>
    %249 = vector.broadcast %248 : vector<16x1xf32> to vector<16x128xf32>
    %250 = arith.subf %242, %249 : vector<16x128xf32>
    %251 = arith.mulf %250, %250 : vector<16x128xf32>
    %cst_84 = arith.constant dense<0.000000e+00> : vector<16xf32>
    %252 = vector.multi_reduction <add>, %251, %cst_84 [1] : vector<16x128xf32> to vector<16xf32>
    %253 = vector.shape_cast %252 : vector<16xf32> to vector<16x1xf32>
    %cst_85 = arith.constant 1.280000e+02 : f32
    %254 = vector.broadcast %cst_85 : f32 to vector<16x1xf32>
    %255 = arith.divf %253, %254 : vector<16x1xf32>
    %256 = vector.broadcast %248 : vector<16x1xf32> to vector<16x128xf32>
    %257 = arith.subf %242, %256 : vector<16x128xf32>
    %cst_86 = arith.constant 9.99999974E-6 : f32
    %258 = vector.broadcast %cst_86 : f32 to vector<16x1xf32>
    %259 = arith.addf %255, %258 : vector<16x1xf32>
    %260 = math.rsqrt %259 : vector<16x1xf32>
    %261 = vector.broadcast %260 : vector<16x1xf32> to vector<16x128xf32>
    %262 = arith.mulf %257, %261 : vector<16x128xf32>
    %263 = vector.broadcast %243 : vector<1x128xf32> to vector<16x128xf32>
    %264 = arith.mulf %262, %263 : vector<16x128xf32>
    %265 = vector.broadcast %244 : vector<1x128xf32> to vector<16x128xf32>
    %266 = arith.addf %264, %265 : vector<16x128xf32>
    %267 = arith.truncf %266 : vector<16x128xf32> to vector<16x128xbf16>
    %c0_87 = arith.constant 0 : index
    %c0_88 = arith.constant 0 : index
    %268 = vector.load %arg17[%c0_87, %c0_88] : memref<128x256xbf16, #tpu.memory_space<vmem>>, vector<128x256xbf16>
    %cst_89 = arith.constant dense<0.000000e+00> : vector<16x256xf32>
    %269 = tpu.matmul %267, %268, %cst_89 {dimension_numbers = #tpu.dot_dimension_numbers<[1], [0], [0], [1], [0, 0, 1, 1], [], []>} : vector<16x128xbf16>, vector<128x256xbf16>, vector<16x256xf32> -> vector<16x256xf32>
    %c0_90 = arith.constant 0 : index
    %c0_91 = arith.constant 0 : index
    %270 = vector.load %arg18[%c0_90, %c0_91] : memref<1x256xf32, #tpu.memory_space<vmem>>, vector<1x256xf32>
    %271 = vector.broadcast %270 : vector<1x256xf32> to vector<16x256xf32>
    %272 = arith.addf %269, %271 : vector<16x256xf32>
    %cst_92 = arith.constant 0.000000e+00 : f32
    %273 = vector.broadcast %cst_92 : f32 to vector<16x256xf32>
    %274 = arith.maximumf %272, %273 : vector<16x256xf32>
    %275 = arith.truncf %274 : vector<16x256xf32> to vector<16x256xbf16>
    %c0_93 = arith.constant 0 : index
    %c0_94 = arith.constant 0 : index
    %276 = vector.load %arg19[%c0_93, %c0_94] : memref<256x128xbf16, #tpu.memory_space<vmem>>, vector<256x128xbf16>
    %cst_95 = arith.constant dense<0.000000e+00> : vector<16x128xf32>
    %277 = tpu.matmul %275, %276, %cst_95 {dimension_numbers = #tpu.dot_dimension_numbers<[1], [0], [0], [1], [0, 0, 1, 1], [], []>} : vector<16x256xbf16>, vector<256x128xbf16>, vector<16x128xf32> -> vector<16x128xf32>
    %c0_96 = arith.constant 0 : index
    %c0_97 = arith.constant 0 : index
    %278 = vector.load %arg20[%c0_96, %c0_97] : memref<1x128xf32, #tpu.memory_space<vmem>>, vector<1x128xf32>
    %279 = vector.broadcast %278 : vector<1x128xf32> to vector<16x128xf32>
    %280 = arith.addf %277, %279 : vector<16x128xf32>
    %281 = arith.addf %266, %280 : vector<16x128xf32>
    %c0_98 = arith.constant 0 : index
    %c0_99 = arith.constant 0 : index
    %282 = vector.load %arg21[%c0_98, %c0_99] : memref<1x128xf32, #tpu.memory_space<vmem>>, vector<1x128xf32>
    %c0_100 = arith.constant 0 : index
    %c0_101 = arith.constant 0 : index
    %283 = vector.load %arg22[%c0_100, %c0_101] : memref<1x128xf32, #tpu.memory_space<vmem>>, vector<1x128xf32>
    %cst_102 = arith.constant dense<0.000000e+00> : vector<16xf32>
    %284 = vector.multi_reduction <add>, %281, %cst_102 [1] : vector<16x128xf32> to vector<16xf32>
    %285 = vector.shape_cast %284 : vector<16xf32> to vector<16x1xf32>
    %cst_103 = arith.constant 1.280000e+02 : f32
    %286 = vector.broadcast %cst_103 : f32 to vector<16x1xf32>
    %287 = arith.divf %285, %286 : vector<16x1xf32>
    %288 = vector.broadcast %287 : vector<16x1xf32> to vector<16x128xf32>
    %289 = arith.subf %281, %288 : vector<16x128xf32>
    %290 = arith.mulf %289, %289 : vector<16x128xf32>
    %cst_104 = arith.constant dense<0.000000e+00> : vector<16xf32>
    %291 = vector.multi_reduction <add>, %290, %cst_104 [1] : vector<16x128xf32> to vector<16xf32>
    %292 = vector.shape_cast %291 : vector<16xf32> to vector<16x1xf32>
    %cst_105 = arith.constant 1.280000e+02 : f32
    %293 = vector.broadcast %cst_105 : f32 to vector<16x1xf32>
    %294 = arith.divf %292, %293 : vector<16x1xf32>
    %295 = vector.broadcast %287 : vector<16x1xf32> to vector<16x128xf32>
    %296 = arith.subf %281, %295 : vector<16x128xf32>
    %cst_106 = arith.constant 9.99999974E-6 : f32
    %297 = vector.broadcast %cst_106 : f32 to vector<16x1xf32>
    %298 = arith.addf %294, %297 : vector<16x1xf32>
    %299 = math.rsqrt %298 : vector<16x1xf32>
    %300 = vector.broadcast %299 : vector<16x1xf32> to vector<16x128xf32>
    %301 = arith.mulf %296, %300 : vector<16x128xf32>
    %302 = vector.broadcast %282 : vector<1x128xf32> to vector<16x128xf32>
    %303 = arith.mulf %301, %302 : vector<16x128xf32>
    %304 = vector.broadcast %283 : vector<1x128xf32> to vector<16x128xf32>
    %305 = arith.addf %303, %304 : vector<16x128xf32>
    %c0_107 = arith.constant 0 : index
    %c0_108 = arith.constant 0 : index
    %c0_109 = arith.constant 0 : index
    %306 = vector.load %arg23[%c0_107, %c0_108, %c0_109] : memref<1x16x128xf32, #tpu.memory_space<vmem>>, vector<1x16x128xf32>
    %307 = vector.shape_cast %306 : vector<1x16x128xf32> to vector<16x128xf32>
    %308 = vector.shape_cast %305 : vector<16x128xf32> to vector<1x16x128xf32>
    tpu.vector_store %arg23[%c0_107, %c0_108, %c0_109], %308 {strides = array<i32>} : memref<1x16x128xf32, #tpu.memory_space<vmem>>, vector<1x16x128xf32>,
    return
  }
  func.func @transform_0(%arg0: i32) -> (i32, i32, i32) {
    %c0_i32 = arith.constant 0 : i32
    %c0_i32_0 = arith.constant 0 : i32
    %c0_i32_1 = arith.constant 0 : i32
    return %arg0, %c0_i32, %c0_i32_0 : i32, i32, i32
  }
  func.func @transform_1(%arg0: i32) -> (i32, i32, i32) {
    %c0_i32 = arith.constant 0 : i32
    %c0_i32_0 = arith.constant 0 : i32
    %c0_i32_1 = arith.constant 0 : i32
    return %arg0, %c0_i32, %c0_i32_0 : i32, i32, i32
  }
  func.func @transform_2(%arg0: i32) -> (i32, i32) {
    %c0_i32 = arith.constant 0 : i32
    %c0_i32_0 = arith.constant 0 : i32
    %c0_i32_1 = arith.constant 0 : i32
    return %c0_i32, %c0_i32_0 : i32, i32
  }
  func.func @transform_3(%arg0: i32) -> (i32, i32) {
    %c0_i32 = arith.constant 0 : i32
    %c0_i32_0 = arith.constant 0 : i32
    %c0_i32_1 = arith.constant 0 : i32
    return %c0_i32, %c0_i32_0 : i32, i32
  }
  func.func @transform_4(%arg0: i32) -> (i32, i32) {
    %c0_i32 = arith.constant 0 : i32
    %c0_i32_0 = arith.constant 0 : i32
    %c0_i32_1 = arith.constant 0 : i32
    return %c0_i32, %c0_i32_0 : i32, i32
  }
  func.func @transform_5(%arg0: i32) -> (i32, i32) {
    %c0_i32 = arith.constant 0 : i32
    %c0_i32_0 = arith.constant 0 : i32
    %c0_i32_1 = arith.constant 0 : i32
    return %c0_i32, %c0_i32_0 : i32, i32
  }
  func.func @transform_6(%arg0: i32) -> (i32, i32) {
    %c0_i32 = arith.constant 0 : i32
    %c0_i32_0 = arith.constant 0 : i32
    %c0_i32_1 = arith.constant 0 : i32
    return %c0_i32, %c0_i32_0 : i32, i32
  }
  func.func @transform_7(%arg0: i32) -> (i32, i32) {
    %c0_i32 = arith.constant 0 : i32
    %c0_i32_0 = arith.constant 0 : i32
    %c0_i32_1 = arith.constant 0 : i32
    return %c0_i32, %c0_i32_0 : i32, i32
  }
  func.func @transform_8(%arg0: i32) -> (i32, i32) {
    %c0_i32 = arith.constant 0 : i32
    %c0_i32_0 = arith.constant 0 : i32
    %c0_i32_1 = arith.constant 0 : i32
    return %c0_i32, %c0_i32_0 : i32, i32
  }
  func.func @transform_9(%arg0: i32) -> (i32, i32) {
    %c0_i32 = arith.constant 0 : i32
    %c0_i32_0 = arith.constant 0 : i32
    %c0_i32_1 = arith.constant 0 : i32
    return %c0_i32, %c0_i32_0 : i32, i32
  }
  func.func @transform_10(%arg0: i32) -> (i32, i32) {
    %c0_i32 = arith.constant 0 : i32
    %c0_i32_0 = arith.constant 0 : i32
    %c0_i32_1 = arith.constant 0 : i32
    return %c0_i32, %c0_i32_0 : i32, i32
  }
  func.func @transform_11(%arg0: i32) -> (i32, i32) {
    %c0_i32 = arith.constant 0 : i32
    %c0_i32_0 = arith.constant 0 : i32
    %c0_i32_1 = arith.constant 0 : i32
    return %c0_i32, %c0_i32_0 : i32, i32
  }
  func.func @transform_12(%arg0: i32) -> (i32, i32) {
    %c0_i32 = arith.constant 0 : i32
    %c0_i32_0 = arith.constant 0 : i32
    %c0_i32_1 = arith.constant 0 : i32
    return %c0_i32, %c0_i32_0 : i32, i32
  }
  func.func @transform_13(%arg0: i32) -> (i32, i32) {
    %c0_i32 = arith.constant 0 : i32
    %c0_i32_0 = arith.constant 0 : i32
    %c0_i32_1 = arith.constant 0 : i32
    return %c0_i32, %c0_i32_0 : i32, i32
  }
  func.func @transform_14(%arg0: i32) -> (i32, i32) {
    %c0_i32 = arith.constant 0 : i32
    %c0_i32_0 = arith.constant 0 : i32
    %c0_i32_1 = arith.constant 0 : i32
    return %c0_i32, %c0_i32_0 : i32, i32
  }
  func.func @transform_15(%arg0: i32) -> (i32, i32) {
    %c0_i32 = arith.constant 0 : i32
    %c0_i32_0 = arith.constant 0 : i32
    %c0_i32_1 = arith.constant 0 : i32
    return %c0_i32, %c0_i32_0 : i32, i32
  }
  func.func @transform_16(%arg0: i32) -> (i32, i32) {
    %c0_i32 = arith.constant 0 : i32
    %c0_i32_0 = arith.constant 0 : i32
    %c0_i32_1 = arith.constant 0 : i32
    return %c0_i32, %c0_i32_0 : i32, i32
  }
  func.func @transform_17(%arg0: i32) -> (i32, i32) {
    %c0_i32 = arith.constant 0 : i32
    %c0_i32_0 = arith.constant 0 : i32
    %c0_i32_1 = arith.constant 0 : i32
    return %c0_i32, %c0_i32_0 : i32, i32
  }
  func.func @transform_18(%arg0: i32) -> (i32, i32) {
    %c0_i32 = arith.constant 0 : i32
    %c0_i32_0 = arith.constant 0 : i32
    %c0_i32_1 = arith.constant 0 : i32
    return %c0_i32, %c0_i32_0 : i32, i32
  }
  func.func @transform_19(%arg0: i32) -> (i32, i32) {
    %c0_i32 = arith.constant 0 : i32
    %c0_i32_0 = arith.constant 0 : i32
    %c0_i32_1 = arith.constant 0 : i32
    return %c0_i32, %c0_i32_0 : i32, i32
  }
  func.func @transform_20(%arg0: i32) -> (i32, i32) {
    %c0_i32 = arith.constant 0 : i32
    %c0_i32_0 = arith.constant 0 : i32
    %c0_i32_1 = arith.constant 0 : i32
    return %c0_i32, %c0_i32_0 : i32, i32
  }
  func.func @transform_21(%arg0: i32) -> (i32, i32) {
    %c0_i32 = arith.constant 0 : i32
    %c0_i32_0 = arith.constant 0 : i32
    %c0_i32_1 = arith.constant 0 : i32
    return %c0_i32, %c0_i32_0 : i32, i32
  }
  func.func @transform_22(%arg0: i32) -> (i32, i32, i32) {
    %c0_i32 = arith.constant 0 : i32
    %c0_i32_0 = arith.constant 0 : i32
    %c0_i32_1 = arith.constant 0 : i32
    return %arg0, %c0_i32, %c0_i32_0 : i32, i32, i32
  }
}

</mosaic_0001>

<bundles_post_ra>
// kernel: temporal_transformer_forward.8
= control target key start
LH: loop header
LB: loop body
LE: loop exit
PB: predicated region body
PF: predicated region fallthrough
CT: control target
= control target key end

     0   :  { %vm60_vm0 = vcmask 523264   ;;  %s212_s1 = inlined_call_operand.vmem [shape: bf16[64,128], index: 1, kind: input, shape index: {}]   ;;  %s213_s0 = inlined_call_operand.vmem [shape: f32[32,64], index: 0, kind: input, shape index: {}]   ;;  %s214_s2 = inlined_call_operand.vmem [shape: f32[1,128], index: 2, kind: input, shape index: {}]   ;;  %s215_s3 = inlined_call_operand.vmem [shape: f32[32,128], index: 3, kind: output, shape index: {}]  }
   0x1   :  { %v149_v0 = vld [vmem:[%s212_s1] sm:$0xff]   ;;  %v150_v1 = vld [vmem:[%s212_s1 + $0x8] sm:$0xff]   ;;  %v151_v2 = vld [vmem:[%s212_s1 + $0x10] sm:$0xff]  }
   0x2   :  { %137 = vmatprep.subr.bf16.mxu0 %v149_v0  ;;  %v15_v3 = vld [vmem:[%s213_s0] sm:$0xff]  ;;  %v16_v4 = vld [vmem:[%s213_s0 + $0x8] sm:$0xff]  ;;  %v152_v6 = vld [vmem:[%s212_s1 + $0x18] sm:$0xff]  }
   0x3   :  { %138 = vmatpush3.bf16.msra.mxu0 %v149_v0  ;;  %v19_v5 = vpack.c.bf16 %v16_v4, %v15_v3  ;;  %v17_v7 = vld [vmem:[%s213_s0 + $0x10] sm:$0xff]  ;;  %v18_v8 = vld [vmem:[%s213_s0 + $0x18] sm:$0xff]  ;;  %v124_v10 = vld [vmem:[%s214_s2] ss:$0 sm:$0xff] }
   0x4   :  { %139 = vmatprep.subr.bf16.mxu0 %v150_v1  ;;  %v20_v9 = vpack.c.bf16 %v18_v8, %v17_v7 }
   0x5   :  { %145 = vmatprep.mubr.msk.bf16.mxu0 %vm60_vm0, %v19_v5 }
   0x7   :  { %140 = vmatpush3.bf16.msra.mxu0 %v150_v1 }
   0x8   :  { %141 = vmatprep.subr.bf16.mxu0 %v151_v2 }
   0xb   :  { %142 = vmatpush3.bf16.msra.mxu0 %v151_v2 }
   0xc   :  { %143 = vmatprep.subr.bf16.mxu0 %v152_v6 }
   0xf   :  { %144 = vmatpush3.bf16.msra.mxu0 %v152_v6 }
  0x12   :  { %146 = vmatmul.mubr.msk.bf16.vlgmr.msra.gmra.mrb[0].mxu0 %vm60_vm0, %v20_v9 }
  0xe5   :  { %v147_v11 = vpop.f32.mrb[0].mxu0 }
  0xe6   :  { %v110_v12 = vadd.f32 %v147_v11, %v124_v10  ;;  %v101_v13 = vpop.f32.mrb[1].mxu0 }
  0xe7   :  { %v102_v14 = vadd.f32 %v124_v10, %v101_v13  ;;  %v148_v15 = vpop.f32.mrb[2].mxu0 }
  0xe8   :  { %118 = vst [vmem:[%s215_s3 + $0x10] sm:$0xff] %v110_v12  ;;  %v113_v16 = vadd.f32 %v148_v15, %v124_v10  ;;  %v104_v17 = vpop.f32.mrb[3].mxu0 }
  0xe9   :  { %116 = vst [vmem:[%s215_s3] sm:$0xff] %v102_v14  ;;  %v105_v18 = vadd.f32 %v124_v10, %v104_v17 }
  0xea   :  { %119 = vst [vmem:[%s215_s3 + $0x18] sm:$0xff] %v113_v16 }
  0xeb   :  { %117 = vst [vmem:[%s215_s3 + $0x8] sm:$0xff] %v105_v18 }

// kernel: temporal_transformer_forward.15
= control target key start
LH: loop header
LB: loop body
LE: loop exit
PB: predicated region body
PF: predicated region fallthrough
CT: control target
= control target key end

     0   :  { %11 = vsyncpa [#allocation3], 0  ;;  %s497_s0 = inlined_call_operand.vmem [shape: f32[32,128], index: 0, kind: input, shape index: {}]   ;;  %s498_s1 = inlined_call_operand.vmem [shape: f32[32,128], index: 1, kind: input, shape index: {}]   ;;  %s499_s2 = inlined_call_operand.vmem [shape: bf16[128,32], index: 2, kind: input, shape index: {}]   ;;  %s500_s3 = inlined_call_operand.vmem [shape: f32[1,32], index: 3, kind: input, shape index: {}]   ;;  %s501_s4 = inlined_call_operand.hbm [shape: f32[32,32], index: 4, kind: output, shape index: {0}]   ;;  %s502_s5 = inlined_call_operand.hbm [shape: f32[32,32], index: 5, kind: output, shape index: {1}]  }
   0x1   :  { %v317_v0 = vld [vmem:[%s499_s2] sm:$0xff]   ;;  %v318_v1 = vld [vmem:[%s499_s2 + $0x8] sm:$0xff]   ;;  %v319_v2 = vld [vmem:[%s499_s2 + $0x10] sm:$0xff]  }
   0x2   :  { %273 = vmatprep.subr.bf16.mxu0 %v317_v0  ;;  %293 = vmatprep.subr.bf16.mxu1 %v317_v0  ;;  %v320_v3 = vld [vmem:[%s499_s2 + $0x18] sm:$0xff]   ;;  %v39_v4 = vld [vmem:[%s497_s0] sm:$0xff]  ;;  %v40_v5 = vld [vmem:[%s497_s0 + $0x8] sm:$0xff] }
   0x3   :  { %274 = vmatpush3.bf16.msra.mxu0 %v317_v0  ;;  %294 = vmatpush3.bf16.msra.mxu1 %v317_v0  ;;  %v153_v6 = vld [vmem:[%s498_s1] sm:$0xff]  ;;  %v43_v7 = vpack.c.bf16 %v40_v5, %v39_v4  ;;  %v154_v8 = vld [vmem:[%s498_s1 + $0x8] sm:$0xff] }
   0x4   :  { %275 = vmatprep.subr.bf16.mxu0 %v318_v1  ;;  %295 = vmatprep.subr.bf16.mxu1 %v318_v1  ;;  %v157_v9 = vpack.c.bf16 %v154_v8, %v153_v6 }
   0x7   :  { %276 = vmatpush3.bf16.msra.mxu0 %v318_v1  ;;  %296 = vmatpush3.bf16.msra.mxu1 %v318_v1 }
   0x8   :  { %277 = vmatprep.subr.bf16.mxu0 %v319_v2  ;;  %297 = vmatprep.subr.bf16.mxu1 %v319_v2 }
   0x9   :  { %12 = vsyncpa [#allocation5], 0  ;;  %v321_v10 = vld [vmem:[%s499_s2 + $0x20] sm:$0xff]   ;;  %289 = vmatprep.mubr.bf16.mxu0 %v43_v7  ;;  %309 = vmatprep.mubr.bf16.mxu1 %v157_v9  ;;  %v322_v11 = vld [vmem:[%s499_s2 + $0x28] sm:$0xff]   ;;  %vm148_vm0 = vcmask 261120  }
   0xa   :  { %v323_v12 = vld [vmem:[%s499_s2 + $0x30] sm:$0xff]   ;;  %v324_v13 = vld [vmem:[%s499_s2 + $0x38] sm:$0xff]   ;;  %v244_v20 = vld [vmem:[%s500_s3] ss:$0 sm:$0xff] }
   0xb   :  { %278 = vmatpush3.bf16.msra.mxu0 %v319_v2  ;;  %298 = vmatpush3.bf16.msra.mxu1 %v319_v2  ;;  %v41_v14 = vld [vmem:[%s497_s0 + $0x10] sm:$0xff]  ;;  %v42_v15 = vld [vmem:[%s497_s0 + $0x18] sm:$0xff]  ;;  %s373_s0 = smov [#allocation2]  }
   0xc   :  { %279 = vmatprep.subr.bf16.mxu0 %v320_v3  ;;  %299 = vmatprep.subr.bf16.mxu1 %v320_v3  ;;  %v155_v16 = vld [vmem:[%s498_s1 + $0x10] sm:$0xff]  ;;  %v156_v17 = vld [vmem:[%s498_s1 + $0x18] sm:$0xff]  ;;  %v44_v18 = vpack.c.bf16 %v42_v15, %v41_v14  ;;  %s217_s26 = sshll.u32 %s373_s0, 4  ;;  %s374_s1 = smov [#allocation4]   ;;  %s218_s26 = int_to_ptr.vmem [resolvable:$true] %s217_s26 }
   0xd   :  { %v158_v19 = vpack.c.bf16 %v156_v17, %v155_v16  ;;  %s229_s27 = sshll.u32 %s374_s1, 4  ;;  %s325_s3 = scalar_lea.vmem %s218_s26, 512  ;;  %s464_s27 = int_to_ptr.vmem [resolvable:$true] %s229_s27 }
   0xe   :  { %p326_p0 = scmp.ne.s32.totalorder %s218_s26, %s325_s3  ;;  %p330_p1 = scmp.lt.s32.totalorder %s218_s26, %s218_s26 }
   0xf   :  { %280 = vmatpush3.bf16.msra.mxu0 %v320_v3  ;;  %300 = vmatpush3.bf16.msra.mxu1 %v320_v3  ;;  %p331_p2 = scmp.lt.s32.totalorder %s325_s3, %s325_s3 }
  0x10   :  { %281 = vmatprep.subr.bf16.mxu0 %v321_v10  ;;  %301 = vmatprep.subr.bf16.mxu1 %v321_v10 }
  0x11   :  { %p332_p3 = por %p331_p2, %p330_p1 }
  0x13   :  { %282 = vmatpush3.bf16.msra.mxu0 %v321_v10  ;;  %302 = vmatpush3.bf16.msra.mxu1 %v321_v10  ;;  %p333_p4 = pnand %p332_p3, %p326_p0 }
  0x14   :  { %283 = vmatprep.subr.bf16.mxu0 %v322_v11  ;;  %303 = vmatprep.subr.bf16.mxu1 %v322_v11 }
  0x17   :  { %284 = vmatpush3.bf16.msra.mxu0 %v322_v11  ;;  %304 = vmatpush3.bf16.msra.mxu1 %v322_v11 }
  0x18   :  { %285 = vmatprep.subr.bf16.mxu0 %v323_v12  ;;  %305 = vmatprep.subr.bf16.mxu1 %v323_v12 }
  0x1b   :  { %286 = vmatpush3.bf16.msra.mxu0 %v323_v12  ;;  %306 = vmatpush3.bf16.msra.mxu1 %v323_v12 }
  0x1c   :  { %287 = vmatprep.subr.bf16.mxu0 %v324_v13  ;;  %307 = vmatprep.subr.bf16.mxu1 %v324_v13 }
  0x1f   :  { %288 = vmatpush3.bf16.msra.mxu0 %v324_v13  ;;  %308 = vmatpush3.bf16.msra.mxu1 %v324_v13 }
  0x22   :  { %290 = vmatmul.mubr.bf16.vlgmr.msra.gmra.mrb[0].mxu0 %v44_v18  ;;  %310 = vmatmul.mubr.bf16.vlgmr.msra.gmra.mrb[0].mxu1 %v158_v19 }
  0xf5   :  { %v291_v21 = vpop.f32.mrb[0].mxu0  ;;  %v311_v22 = vpop.f32.mrb[0].mxu1 }
  0xf6   :  { %v142_v23 = vadd.f32 %v291_v21, %v244_v20  ;;  %v202_v24 = vadd.f32 %v311_v22, %v244_v20  ;;  %v133_v25 = vpop.f32.mrb[1].mxu0  ;;  %v193_v26 = vpop.f32.mrb[1].mxu1 }
  0xf7   :  { %v134_v27 = vadd.f32 %v244_v20, %v133_v25  ;;  %v194_v28 = vadd.f32 %v244_v20, %v193_v26  ;;  %v292_v29 = vpop.f32.mrb[2].mxu0  ;;  %v312_v30 = vpop.f32.mrb[2].mxu1 }
  0xf8   :  { %151 = vst.msk [vmem:[#allocation2 + $0x10] sm:$0xff] %vm148_vm0, %v142_v23  ;;  %210 = vst.msk [vmem:[#allocation4 + $0x10] sm:$0xff] %vm148_vm0, %v202_v24  ;;  %v145_v31 = vadd.f32 %v292_v29, %v244_v20  ;;  %v205_v32 = vadd.f32 %v312_v30, %v244_v20  ;;  %v136_v33 = vpop.f32.mrb[3].mxu0  ;;  %v196_v34 = vpop.f32.mrb[3].mxu1 }
  0xf9   :  { %149 = vst.msk [vmem:[#allocation2] sm:$0xff] %vm148_vm0, %v134_v27  ;;  %208 = vst.msk [vmem:[#allocation4] sm:$0xff] %vm148_vm0, %v194_v28  ;;  %v137_v35 = vadd.f32 %v244_v20, %v136_v33  ;;  %v197_v36 = vadd.f32 %v244_v20, %v196_v34 }
  0xfa   :  { %152 = vst.msk [vmem:[#allocation2 + $0x18] sm:$0xff] %vm148_vm0, %v145_v31  ;;  %211 = vst.msk [vmem:[#allocation4 + $0x18] sm:$0xff] %vm148_vm0, %v205_v32 }
  0xfb   :  { %150 = vst.msk [vmem:[#allocation2 + $0x8] sm:$0xff] %vm148_vm0, %v137_v35  ;;  %209 = vst.msk [vmem:[#allocation4 + $0x8] sm:$0xff] %vm148_vm0, %v197_v36 }
  0xfc   :  { %336 = shalt.err (!%p333_p4)
}
  0xfd   :  { %s337_s30 = scalar_lea.hbm %s501_s4, 512 }
  0xfe   :  { %p338_p5 = scmp.ne.s32.totalorder %s501_s4, %s337_s30  ;;  %p341_p6 = scmp.lt.u32.totalorder %s337_s30, %s501_s4 }
 0x100   :  { %p343_p7 = pnand %p341_p6, %p338_p5 }
 0x102   :  { %346 = shalt.err (!%p343_p7)
}
 0x103   :  { %s375_s10 = smov 128   ;;  %s376_s11 = smov 8  }
 0x104   :  { %223 = dma.vmem_to_hbm [thread:$0]  %s218_s26, 512, %s501_s4, [#allocation3], %s375_s10, %s375_s10, %s376_s11  }
 0x105   :  { %s347_s14 = scalar_lea.vmem %s464_s27, 512  ;;  %p352_p9 = scmp.lt.s32.totalorder %s464_s27, %s464_s27 }
 0x106   :  { %p348_p8 = scmp.ne.s32.totalorder %s464_s27, %s347_s14  ;;  %p353_p10 = scmp.lt.s32.totalorder %s347_s14, %s347_s14 }
 0x108   :  { %p354_p11 = por %p353_p10, %p352_p9 }
 0x10a   :  { %p355_p12 = pnand %p354_p11, %p348_p8 }
 0x10c   :  { %358 = shalt.err (!%p355_p12)
}
 0x10d   :  { %s359_s17 = scalar_lea.hbm %s502_s5, 512 }
 0x10e   :  { %p360_p13 = scmp.ne.s32.totalorder %s502_s5, %s359_s17  ;;  %p363_p0 = scmp.lt.u32.totalorder %s359_s17, %s502_s5 }
 0x110   :  { %p365_p1 = pnand %p363_p0, %p360_p13 }
 0x112   :  { %368 = shalt.err (!%p365_p1)
}
 0x113   :  { %235 = dma.vmem_to_hbm [thread:$0]  %s464_s27, 512, %s502_s5, [#allocation5], %s375_s10, %s375_s10, %s376_s11  }
 0x114   :  { %369 = dma.done.wait [#allocation3], 512  }
 0x115   :  { %370 = vsyncadd [#allocation3], 4294966784 }
 0x116   :  { %371 = dma.done.wait [#allocation5], 512  }
 0x117   :  { %372 = vsyncadd [#allocation5], 4294966784 }
 0x118   :  { %242 = vsyncpa [#allocation3], 1 }
 0x119   :  { %243 = vsyncpa [#allocation5], 1 }

// kernel: temporal_transformer_forward.9
= control target key start
LH: loop header
LB: loop body
LE: loop exit
PB: predicated region body
PF: predicated region fallthrough
CT: control target
= control target key end

     0   :  { %s2091_s25 = smov 0   ;;  %s2418_s0 = inlined_call_operand.vmem [shape: f32[2,16,128], index: 0, kind: input, shape index: {}]   ;;  %s2419_s1 = inlined_call_operand.vmem [shape: bf16[128,192], index: 1, kind: input, shape index: {}]   ;;  %s2420_s2 = inlined_call_operand.vmem [shape: f32[1,192], index: 2, kind: input, shape index: {}]   ;;  %s2421_s3 = inlined_call_operand.vmem [shape: bf16[64,128], index: 3, kind: input, shape index: {}]   ;;  %s2422_s4 = inlined_call_operand.vmem [shape: f32[1,128], index: 4, kind: input, shape index: {}]   ;;  %s2423_s5 = inlined_call_operand.vmem [shape: f32[1,128], index: 5, kind: input, shape index: {}]   ;;  %s2424_s6 = inlined_call_operand.vmem [shape: f32[1,128], index: 6, kind: input, shape index: {}]   ;;  %s2425_s7 = inlined_call_operand.vmem [shape: bf16[128,256], index: 7, kind: input, shape index: {}]   ;;  %s2426_s8 = inlined_call_operand.vmem [shape: f32[1,256], index: 8, kind: input, shape index: {}]   ;;  %s2427_s9 = inlined_call_operand.vmem [shape: bf16[256,128], index: 9, kind: input, shape index: {}]   ;;  %s2428_s10 = inlined_call_operand.vmem [shape: f32[1,128], index: 10, kind: input, shape index: {}]   ;;  %s2429_s11 = inlined_call_operand.vmem [shape: f32[1,128], index: 11, kind: input, shape index: {}]   ;;  %s2430_s12 = inlined_call_operand.vmem [shape: f32[1,128], index: 12, kind: input, shape index: {}]   ;;  %s2431_s13 = inlined_call_operand.vmem [shape: f32[2,16,128], index: 13, kind: output, shape index: {}]  }
   0x1 LB: > { %s1679_s26 = sadd.s32 4294967295, %s2009_s25   ;;  %p1683_p0 = scmp.ge.s32.totalorder %s2009_s25, 1  ;;  %s2009_s25 = sphi %s2091_s25, %s23_s25  }
   0x2   : > { %p387_p1 = scmp.lt.s32.totalorder %s2009_s25, 3 }
   0x4   : > { %p388_p2 = pnand %p1683_p0, %p387_p1 }
   0x5   : > { %v1895_v0 = vld [vmem:[%s2419_s1 + $0x4] ss:$8 sps:$4 sm:$0xff] (!%p388_p2)   ;;  %v1897_v1 = vld [vmem:[%s2419_s1] ss:$8 sps:$4 sm:$0xff] (!%p388_p2)   ;;  %v2011_v2 = vmov (!%p388_p2), 0   ;;  %p431_p3 = scmp.lt.s32.totalorder (!%p388_p2), %s1679_s26, 1  ;;  %v463_v20 = vlaneseq (!%p388_p2) }
   0x6   : > { %391 = sbr.rel (%p388_p2) target bundleno = 3631 (0xe2f), region = 72  ;;  %585 = vmatprep.mubr.bf16.mxu0 (!%p388_p2), %v2011_v2  ;;  %553 = vmatprep.subr.bf16.mxu0 (!%p388_p2), %v1895_v0  ;;  %v1898_v3 = vld [vmem:[%s2419_s1 + $0x14] ss:$8 sps:$4 sm:$0xff] (!%p388_p2)   ;;  %v1900_v4 = vld [vmem:[%s2419_s1 + $0x10] ss:$8 sps:$4 sm:$0xff] (!%p388_p2)   ;;  %v2012_v24 = vmov (!%p388_p2), 0.0  }
   0x7   : > { %554 = vmatpush1.bf16.msra.mxu0 (!%p388_p2), %v1897_v1  ;;  %v1901_v5 = vld [vmem:[%s2419_s1 + $0x24] ss:$8 sps:$4 sm:$0xff] (!%p388_p2)   ;;  %v1903_v6 = vld [vmem:[%s2419_s1 + $0x20] ss:$8 sps:$4 sm:$0xff] (!%p388_p2)   ;;  %v1904_v7 = vld [vmem:[%s2419_s1 + $0x34] ss:$8 sps:$4 sm:$0xff] (!%p388_p2)   ;;  %1802 = vmatprep.subr.bf16.mxu1 (!%p388_p2), %v2012_v24 }
   0x8   : > { %555 = vmatprep.subr.bf16.mxu0 (!%p388_p2), %v1898_v3  ;;  %v1906_v8 = vld [vmem:[%s2419_s1 + $0x30] ss:$8 sps:$4 sm:$0xff] (!%p388_p2)   ;;  %v1907_v9 = vld [vmem:[%s2419_s1 + $0x44] ss:$8 sps:$4 sm:$0xff] (!%p388_p2)   ;;  %v1909_v10 = vld [vmem:[%s2419_s1 + $0x40] ss:$8 sps:$4 sm:$0xff] (!%p388_p2)  }
   0x9   : > { %v1910_v11 = vld [vmem:[%s2419_s1 + $0x54] ss:$8 sps:$4 sm:$0xff] (!%p388_p2)   ;;  %v1912_v12 = vld [vmem:[%s2419_s1 + $0x50] ss:$8 sps:$4 sm:$0xff] (!%p388_p2)   ;;  %v1913_v13 = vld [vmem:[%s2419_s1 + $0x64] ss:$8 sps:$4 sm:$0xff] (!%p388_p2)  }
   0xa   : > { %v1915_v14 = vld [vmem:[%s2419_s1 + $0x60] ss:$8 sps:$4 sm:$0xff] (!%p388_p2)   ;;  %v1916_v15 = vld [vmem:[%s2419_s1 + $0x74] ss:$8 sps:$4 sm:$0xff] (!%p388_p2)   ;;  %v1918_v16 = vld [vmem:[%s2419_s1 + $0x70] ss:$8 sps:$4 sm:$0xff] (!%p388_p2)  }
   0xb   : > { %556 = vmatpush1.bf16.msra.mxu0 (!%p388_p2), %v1900_v4  ;;  %v2162_v21 = vshrl.u32 (!%p388_p2), %v463_v20, 7  ;;  %v461_v23 = vld [vmem:[%s2420_s2] sm:$0x3] (!%p388_p2)  ;;  %vm2013_vm0 = vmmov (!%p388_p2), 0   ;;  %s2014_s18 = smov (!%p388_p2), 64   ;;  %vm604_vm1 = vcmask (!%p388_p2), 130048  }
   0xc   : > { %557 = vmatprep.subr.bf16.mxu0 (!%p388_p2), %v1901_v5  ;;  %1804 = vmatprep.mubr.msk.bf16.mxu1 (!%p388_p2), %vm2013_vm0, %v2012_v24  ;;  %s2015_s19 = smov (!%p388_p2), 48   ;;  %s2016_s20 = smov (!%p388_p2), 112   ;;  %vm1110_vm2 = vcmask (!%p388_p2), 261120   ;;  %vm1113_vm3 = vcmask (!%p388_p2), 392192   ;;  %vm1149_vm4 = vcmask (!%p388_p2), 523264  }
   0xd   : > { %s2433_s26 = smov (!%p431_p3, %s1679_s26), 1  ;;  %v465_v22 = vsub.s32 0, %v2162_v21  ;;  %v469_v25 = vsub.s32 1, %v2162_v21  ;;  %s2017_s22 = smov 96   ;;  %v1736_v21 = vld [vmem:[%s2428_s10] ss:$0 sm:$0xff] }
   0xe   : > { %s1757_s21 = sshll.u32 %s2433_s26, 4  ;;  %s2018_s23 = smov 32  }
   0xf   : > { %558 = vmatpush1.bf16.msra.mxu0 %v1903_v6  ;;  %s435_s30 = scalar_lea.vmem %s2418_s0, %s1757_s21  ;;  %v466_v26 = vrot.slane %v461_v23, %v465_v22  ;;  %v470_v28 = vrot.slane %v461_v23, %v469_v25  ;;  %s2019_s24 = smov 16  }
  0x10   : > { %559 = vmatprep.subr.bf16.mxu0 %v1904_v7  ;;  %v2156_v17 = vld [vmem:[%s435_s30] sm:$0xff]  ;;  %v2158_v18 = vld [vmem:[%s435_s30 + $0x8] sm:$0xff]  ;;  %s2020_s27 = smov 80   ;;  %s440_s15 = scalar_lea.vmem %s2431_s13, %s1757_s21 }
  0x11   : > { %v444_v19 = vpack.c.bf16 %v2158_v18, %v2156_v17 }
  0x13   : > { %560 = vmatpush1.bf16.msra.mxu0 %v1906_v8 }
  0x14   : > { %561 = vmatprep.subr.bf16.mxu0 %v1907_v9 }
  0x17   : > { %562 = vmatpush1.bf16.msra.mxu0 %v1909_v10 }
  0x18   : > { %563 = vmatprep.subr.bf16.mxu0 %v1910_v11 }
  0x1b   : > { %564 = vmatpush1.bf16.msra.mxu0 %v1912_v12 }
  0x1c   : > { %565 = vmatprep.subr.bf16.mxu0 %v1913_v13 }
  0x1f   : > { %566 = vmatpush1.bf16.msra.mxu0 %v1915_v14 }
  0x20   : > { %567 = vmatprep.subr.bf16.mxu0 %v1916_v15 }
  0x23   : > { %568 = vmatpush1.bf16.msra.mxu0 %v1918_v16 }
  0x24   : > { %1838 = vmatprep.subr.bf16.mxu0 %v2012_v24 }
  0x26   : > { %586 = vmatmul.mubr.bf16.vlgmr.msra.gmra.mrb[0].mxu0 %v444_v19 }
  0x27   : > { %1840 = vmatprep.mubr.msk.bf16.mxu0 %vm2013_vm0, %v2012_v24 }
  0xf9   : > { %v587_v27 = vpop.f32.mrb[0].mxu0 }
  0xfa   : > { %v588_v29 = vadd.f32 %v587_v27, %v466_v26  ;;  %v589_v30 = vpop.f32.mrb[1].mxu0 }
  0xfb   : > { %v591_v31 = vpop.f32.mrb[2].mxu0  ;;  %v590_v34 = vadd.f32 %v589_v30, %v470_v28 }
  0xfc   : > { %v592_v32 = vadd.f32 %v591_v31, %v466_v26  ;;  %v593_v33 = vpop.f32.mrb[3].mxu0  ;;  %v596_v36 = vmul.f32 0.25, %v588_v29 }
  0xfd   : > { %v594_v35 = vadd.f32 %v593_v33, %v470_v28 }
  0xfe   : > { %v597_v37 = vmul.f32 0.25, %v592_v32  ;;  %v2179_v38 = vpack.c.bf16 %v592_v32, %v588_v29 }
  0xff   : > { %v2181_v39 = vpack.c.bf16 %v594_v35, %v590_v34 }
 0x100   : > { %v2183_v40 = vpack.c.bf16 %v597_v37, %v596_v36  ;;  %602 = vrot.lane.b32.xlu0 %v2179_v38, %s2014_s18 }
 0x172   : > { %v603_v41 = vpop.permute.xlu0 %602 }
 0x173   : > { %v609_v42 = vsel %vm604_vm1, %v603_v41, 0 }
 0x174   : > { %1803 = vmatpush3.bf16.xpose.msra.mxu1 %v609_v42 }
 0x175   : > { %1808 = vmatprep.subr.bf16.mxu1 %v2012_v24 }
 0x17b   : > { %1805 = vmatmul.mubr.msk.bf16.vlgmr.msra.gmra.mrb[0].mxu1 %vm604_vm1, %v2183_v40 }
 0x17c   : > { %1809 = vmatpush3.bf16.msra.mxu1 %v2181_v39  ;;  %1810 = vmatprep.mubr.msk.bf16.mxu1 %vm2013_vm0, %v2012_v24 }
 0x17d   : > { %1814 = vmatprep.subr.bf16.mxu1 %v2012_v24 }
 0x24e   : > { %v645_v43 = vpop.f32.mrb[0].mxu1 }
 0x24f   : > { %v1806_v44 = vpop.f32.mrb[1].mxu1  ;;  %v652_v45 = vsel %vm604_vm1, %v645_v43, -inf }
 0x250   : > { %653 = vmax.xlane.f32.xlu0 %v652_v45  ;;  %v648_v46 = vpop.f32.mrb[2].mxu1 }
 0x251   : > { %v1807_v47 = vpop.f32.mrb[3].mxu1  ;;  %v655_v48 = vsel %vm604_vm1, %v648_v46, -inf }
 0x252   : > { %656 = vmax.xlane.f32.xlu1 %v655_v48 }
 0x2dd   : > { %v654_v49 = vpop.xlane.xlu0 %653 }
 0x2de   : > { %v658_v50 = vsub.f32 %v645_v43, %v654_v49 }
 0x2df   : > { %v657_v51 = vpop.xlane.xlu1 %656 }
 0x2e0   : > { %v660_v52 = vmul.f32 1.442695, %v658_v50  ;;  %v659_v53 = vsub.f32 %v648_v46, %v657_v51 }
 0x2e2   : > { %1963 = vpow2.f32 %v660_v52  ;;  %v662_v54 = vmul.f32 1.442695, %v659_v53 }
 0x2e4   : > { %1965 = vpow2.f32 %v662_v54 }
 0x2ec   : > { %v1964_v55 = vpop.eup %1963 }
 0x2ed   : > { %v664_v56 = vsel %vm604_vm1, %v1964_v55, 0.0 }
 0x2ee   : > { %v1966_v57 = vpop.eup %1965  ;;  %665 = vadd.xlane.f32.xlu1 %v664_v56 }
 0x2ef   : > { %v667_v58 = vsel %vm604_vm1, %v1966_v57, 0.0 }
 0x2f2   : > { %668 = vadd.xlane.f32.xlu1 %v667_v58 }
 0x303   : > { %722 = vrot.lane.b32.xlu1 %v2179_v38, %s2015_s19 }
 0x307   : > { %720 = vrot.lane.b32.xlu1 %v2183_v40, %s2016_s20 }
 0x37b   : > { %v666_v59 = vpop.xlane.xlu1 %665 }
 0x37c   : > { %1967 = vrcp.f32 %v666_v59 }
 0x37f   : > { %v669_v60 = vpop.xlane.xlu1 %668 }
 0x380   : > { %1969 = vrcp.f32 %v669_v60 }
 0x383   : > { %v723_v1 = vpop.permute.xlu1 %722 }
 0x384   : > { %v728_v4 = vsel %vm604_vm1, %v723_v1, 0 }
 0x386   : > { %v1968_v61 = vpop.eup %1967 }
 0x387   : > { %v672_v63 = vmul.f32 %v1968_v61, %v1964_v55  ;;  %v721_v5 = vpop.permute.xlu1 %720 }
 0x38a   : > { %v1970_v62 = vpop.eup %1969 }
 0x38b   : > { %v673_v0 = vmul.f32 %v1970_v62, %v1966_v57 }
 0x38d   : > { %v674_v3 = vpack.c.bf16 %v673_v0, %v672_v63 }
 0x38f   : > { %1811 = vmatmul.mubr.msk.bf16.vlgmr.msra.gmra.mrb[4].mxu1 %vm604_vm1, %v674_v3 }
 0x390   : > { %1815 = vmatpush3.bf16.xpose.msra.mxu1 %v728_v4  ;;  %1816 = vmatprep.mubr.msk.bf16.mxu1 %vm2013_vm0, %v2012_v24 }
 0x391   : > { %1820 = vmatprep.subr.bf16.mxu1 %v2012_v24 }
 0x397   : > { %1817 = vmatmul.mubr.msk.bf16.vlgmr.msra.gmra.mrb[8].mxu1 %vm604_vm1, %v721_v5 }
 0x398   : > { %1822 = vmatprep.mubr.msk.bf16.mxu1 %vm2013_vm0, %v2012_v24 }
 0x462   : > { %v2210_v6 = vpop.f32.mrb[4].mxu1 }
 0x463   : > { %v1812_v7 = vpop.f32.mrb[5].mxu1 }
 0x464   : > { %v2212_v8 = vpop.f32.mrb[6].mxu1 }
 0x465   : > { %v1813_v9 = vpop.f32.mrb[7].mxu1 }
 0x46a   : > { %v764_v10 = vpop.f32.mrb[8].mxu1 }
 0x46b   : > { %v1818_v11 = vpop.f32.mrb[9].mxu1  ;;  %v771_v12 = vsel %vm604_vm1, %v764_v10, -inf }
 0x46c   : > { %772 = vmax.xlane.f32.xlu1 %v771_v12  ;;  %v767_v13 = vpop.f32.mrb[10].mxu1 }
 0x46d   : > { %v1819_v14 = vpop.f32.mrb[11].mxu1  ;;  %v774_v15 = vsel %vm604_vm1, %v767_v13, -inf }
 0x46e   : > { %775 = vmax.xlane.f32.xlu0 %v774_v15 }
 0x47d   : > { %842 = vrot.lane.b32.xlu1 %v2183_v40, %s2017_s22 }
 0x484   : > { %795 = vrot.lane.b32.xlu0 %v2181_v39, %s2016_s20 }
 0x4f9   : > { %v773_v16 = vpop.xlane.xlu1 %772 }
 0x4fa   : > { %v777_v19 = vsub.f32 %v764_v10, %v773_v16 }
 0x4fb   : > { %v776_v20 = vpop.xlane.xlu0 %775 }
 0x4fc   : > { %v779_v23 = vmul.f32 1.442695, %v777_v19  ;;  %v778_v26 = vsub.f32 %v767_v13, %v776_v20 }
 0x4fe   : > { %1971 = vpow2.f32 %v779_v23  ;;  %v781_v27 = vmul.f32 1.442695, %v778_v26 }
 0x4ff   : > { %v796_v28 = vpop.permute.xlu0 %795 }
 0x500   : > { %1973 = vpow2.f32 %v781_v27  ;;  %1821 = vmatpush3.bf16.msra.mxu1 %v796_v28 }
 0x501   : > { %1826 = vmatprep.subr.bf16.mxu1 %v2012_v24 }
 0x508   : > { %v1972_v29 = vpop.eup %1971 }
 0x509   : > { %v783_v30 = vsel %vm604_vm1, %v1972_v29, 0.0 }
 0x50a   : > { %v1974_v31 = vpop.eup %1973  ;;  %784 = vadd.xlane.f32.xlu0 %v783_v30 }
 0x50b   : > { %v786_v32 = vsel %vm604_vm1, %v1974_v31, 0.0 }
 0x50e   : > { %787 = vadd.xlane.f32.xlu0 %v786_v32 }
 0x524   : > { %844 = vrot.lane.b32.xlu0 %v2179_v38, %s2018_s23 }
 0x528   : > { %965 = vrot.lane.b32.xlu0 %v2179_v38, %s2019_s24 }
 0x52c   : > { %963 = vrot.lane.b32.xlu0 %v2183_v40, %s2020_s27  ;;  %v843_v40 = vpop.permute.xlu1 %842 }
 0x597   : > { %v785_v33 = vpop.xlane.xlu0 %784 }
 0x598   : > { %1975 = vrcp.f32 %v785_v33 }
 0x59b   : > { %v788_v34 = vpop.xlane.xlu0 %787 }
 0x59c   : > { %1977 = vrcp.f32 %v788_v34 }
 0x59f   : > { %v845_v35 = vpop.permute.xlu0 %844 }
 0x5a0   : > { %v850_v45 = vsel %vm604_vm1, %v845_v35, 0 }
 0x5a2   : > { %v1976_v37 = vpop.eup %1975 }
 0x5a3   : > { %v966_v36 = vpop.permute.xlu0 %965  ;;  %v791_v43 = vmul.f32 %v1976_v37, %v1972_v29 }
 0x5a4   : > { %v971_v41 = vsel %vm604_vm1, %v966_v36, 0 }
 0x5a5   : > { %1839 = vmatpush3.bf16.xpose.msra.mxu0 %v971_v41 }
 0x5a6   : > { %v1978_v42 = vpop.eup %1977  ;;  %1850 = vmatprep.subr.bf16.mxu0 %v2012_v24 }
 0x5a7   : > { %v792_v44 = vmul.f32 %v1978_v42, %v1974_v31  ;;  %v964_v46 = vpop.permute.xlu0 %963 }
 0x5a9   : > { %v793_v38 = vpack.c.bf16 %v792_v44, %v791_v43 }
 0x5ab   : > { %1823 = vmatmul.mubr.msk.bf16.vlgmr.msra.gmra.mrb[12].mxu1 %vm604_vm1, %v793_v38 }
 0x5ac   : > { %1827 = vmatpush3.bf16.xpose.msra.mxu1 %v850_v45  ;;  %1841 = vmatmul.mubr.msk.bf16.vlgmr.msra.gmra.mrb[4].mxu0 %vm604_vm1, %v964_v46  ;;  %v1919_v46 = vld [vmem:[%s2421_s3] sm:$0xff]  }
 0x5ad   : > { %1828 = vmatprep.mubr.msk.bf16.mxu1 %vm2013_vm0, %v2012_v24  ;;  %1832 = vmatprep.subr.bf16.mxu1 %v2012_v24 }
 0x5ae   : > { %1858 = vmatprep.mubr.msk.bf16.mxu0 %vm2013_vm0, %v2012_v24  ;;  %1851 = vmatpush3.bf16.msra.mxu0 %v1919_v46  ;;  %v1946_v46 = vld [vmem:[%s2425_s7 + $0x74] ss:$8 sps:$4 sm:$0xff]  }
 0x5af   : > { %1852 = vmatprep.subr.bf16.mxu0 %v2012_v24 }
 0x5b3   : > { %1829 = vmatmul.mubr.msk.bf16.vlgmr.msra.gmra.mrb[16].mxu1 %vm604_vm1, %v843_v40  ;;  %v1920_v40 = vld [vmem:[%s2421_s3 + $0x8] sm:$0xff]  }
 0x5b4   : > { %1834 = vmatprep.mubr.msk.bf16.mxu1 %vm2013_vm0, %v2012_v24  ;;  %1853 = vmatpush3.bf16.msra.mxu0 %v1920_v40  ;;  %v1944_v40 = vld [vmem:[%s2425_s7 + $0x70] ss:$8 sps:$4 sm:$0xff]  }
 0x5b5   : > { %1854 = vmatprep.subr.bf16.mxu0 %v2012_v24 }
 0x67e   : > { %v835_v47 = vpop.f32.mrb[12].mxu1 }
 0x67f   : > { %v1824_v48 = vpop.f32.mrb[13].mxu1  ;;  %v1007_v49 = vpop.f32.mrb[4].mxu0 }
 0x680   : > { %v838_v50 = vpop.f32.mrb[14].mxu1  ;;  %v1842_v51 = vpop.f32.mrb[5].mxu0  ;;  %v1014_v62 = vsel %vm604_vm1, %v1007_v49, -inf }
 0x681   : > { %v1880_v52 = vpack.i.bf16 %v838_v50, %v835_v47  ;;  %v1825_v53 = vpop.f32.mrb[15].mxu1  ;;  %v1010_v54 = vpop.f32.mrb[6].mxu0  ;;  %v1921_v47 = vld [vmem:[%s2421_s3 + $0x10] sm:$0xff]  }
 0x682   : > { %v1843_v55 = vpop.f32.mrb[7].mxu0  ;;  %v1017_v63 = vsel %vm604_vm1, %v1010_v54, -inf  ;;  %1855 = vmatpush3.bf16.msra.mxu0 %v1921_v47  ;;  %v1947_v47 = vld [vmem:[%s2427_s9 + $0x40] sm:$0xff]  }
 0x683   : > { %1856 = vmatprep.subr.bf16.mxu0 %v2012_v24 }
 0x686   : > { %v886_v56 = vpop.f32.mrb[16].mxu1 }
 0x687   : > { %v1830_v57 = vpop.f32.mrb[17].mxu1  ;;  %v893_v58 = vsel %vm604_vm1, %v886_v56, -inf }
 0x688   : > { %894 = vmax.xlane.f32.xlu0 %v893_v58  ;;  %v889_v59 = vpop.f32.mrb[18].mxu1 }
 0x689   : > { %v1831_v60 = vpop.f32.mrb[19].mxu1  ;;  %v896_v61 = vsel %vm604_vm1, %v889_v59, -inf }
 0x68a   : > { %897 = vmax.xlane.f32.xlu1 %v896_v61 }
 0x68c   : > { %1015 = vmax.xlane.f32.xlu0 %v1014_v62 }
 0x690   : > { %1018 = vmax.xlane.f32.xlu0 %v1017_v63 }
 0x715   : > { %v895_v0 = vpop.xlane.xlu0 %894 }
 0x716   : > { %v899_v1 = vsub.f32 %v886_v56, %v895_v0 }
 0x717   : > { %v898_v3 = vpop.xlane.xlu1 %897 }
 0x718   : > { %v901_v7 = vmul.f32 1.442695, %v899_v1  ;;  %v900_v9 = vsub.f32 %v889_v59, %v898_v3 }
 0x719   : > { %v1016_v4 = vpop.xlane.xlu0 %1015 }
 0x71a   : > { %v1020_v5 = vsub.f32 %v1007_v49, %v1016_v4  ;;  %v903_v13 = vmul.f32 1.442695, %v900_v9  ;;  %v1922_v49 = vld [vmem:[%s2421_s3 + $0x18] sm:$0xff]  }
 0x71b   : > { %1857 = vmatpush3.bf16.msra.mxu0 %v1922_v49  ;;  %v1950_v49 = vld [vmem:[%s2427_s9 + $0x8] sm:$0xff]  }
 0x71c   : > { %v1022_v10 = vmul.f32 1.442695, %v1020_v5  ;;  %1780 = vmatprep.subr.bf16.mxu0 %v1947_v47 }
 0x71d   : > { %v1019_v11 = vpop.xlane.xlu0 %1018 }
 0x71e   : > { %1979 = vpow2.f32 %v1022_v10  ;;  %v1021_v12 = vsub.f32 %v1010_v54, %v1019_v11 }
 0x71f   : > { %1981 = vpow2.f32 %v901_v7 }
 0x720   : > { %v1024_v14 = vmul.f32 1.442695, %v1021_v12 }
 0x722   : > { %1983 = vpow2.f32 %v1024_v14 }
 0x723   : > { %1985 = vpow2.f32 %v903_v13  ;;  %v1717_v13 = vld [vmem:[%s2422_s4] ss:$0 sm:$0xff] }
 0x728   : > { %v1980_v15 = vpop.eup %1979 }
 0x729   : > { %v1026_v16 = vsel %vm604_vm1, %v1980_v15, 0.0  ;;  %v1982_v19 = vpop.eup %1981 }
 0x72a   : > { %1027 = vadd.xlane.f32.xlu0 %v1026_v16  ;;  %v905_v23 = vsel %vm604_vm1, %v1982_v19, 0.0 }
 0x72c   : > { %v1984_v20 = vpop.eup %1983 }
 0x72d   : > { %v1029_v26 = vsel %vm604_vm1, %v1984_v20, 0.0  ;;  %v1986_v27 = vpop.eup %1985 }
 0x72e   : > { %906 = vadd.xlane.f32.xlu0 %v905_v23  ;;  %1030 = vadd.xlane.f32.xlu1 %v1029_v26  ;;  %v908_v28 = vsel %vm604_vm1, %v1986_v27, 0.0  ;;  %v1923_v23 = vld [vmem:[%s2425_s7] ss:$8 sps:$4 sm:$0xff]   ;;  %v1925_v26 = vld [vmem:[%s2425_s7 + $0x4] ss:$8 sps:$4 sm:$0xff]  }
 0x732   : > { %909 = vadd.xlane.f32.xlu1 %v908_v28 }
 0x743   : > { %1037 = vrot.lane.b32.xlu1 %v2181_v39, %s2020_s27 }
 0x744   : > { %916 = vrot.lane.b32.xlu0 %v2181_v39, %s2017_s22 }
 0x747   : > { %1881 = vrot.lane.b32.xlu1 %v1880_v52, %s2019_s24 }
 0x7b7   : > { %v1028_v29 = vpop.xlane.xlu0 %1027 }
 0x7bb   : > { %v907_v30 = vpop.xlane.xlu0 %906  ;;  %v1031_v31 = vpop.xlane.xlu1 %1030 }
 0x7bc   : > { %1987 = vrcp.f32 %v907_v30 }
 0x7bf   : > { %v917_v32 = vpop.permute.xlu0 %916  ;;  %v910_v33 = vpop.xlane.xlu1 %909 }
 0x7c0   : > { %1989 = vrcp.f32 %v910_v33  ;;  %1833 = vmatpush3.bf16.msra.mxu1 %v917_v32 }
 0x7c1   : > { %1844 = vmatprep.subr.bf16.mxu1 %v2012_v24  ;;  %1991 = vrcp.f32 %v1031_v31 }
 0x7c2   : > { %1993 = vrcp.f32 %v1028_v29 }
 0x7c3   : > { %v1038_v42 = vpop.permute.xlu1 %1037 }
 0x7c6   : > { %v1988_v34 = vpop.eup %1987 }
 0x7c7   : > { %v913_v36 = vmul.f32 %v1988_v34, %v1982_v19  ;;  %v1882_v58 = vpop.permute.xlu1 %1881 }
 0x7c8   : > { %v1884_v59 = vunpack.i.h.bf16 %v1882_v58  ;;  %v1883_v60 = vunpack.i.l.bf16 %v1882_v58 }
 0x7ca   : > { %v1990_v35 = vpop.eup %1989  ;;  %v1109_v0 = vsel %vm604_vm1, %v2212_v8, %v1884_v59  ;;  %v1108_v1 = vsel %vm604_vm1, %v2210_v6, %v1883_v60 }
 0x7cb   : > { %v914_v37 = vmul.f32 %v1990_v35, %v1986_v27  ;;  %v1992_v39 = vpop.eup %1991  ;;  %v1931_v35 = vld [vmem:[%s2425_s7 + $0x24] ss:$8 sps:$4 sm:$0xff]  }
 0x7cc   : > { %v1994_v43 = vpop.eup %1993  ;;  %v1035_v44 = vmul.f32 %v1992_v39, %v1984_v20  ;;  %v1937_v39 = vld [vmem:[%s2425_s7 + $0x44] ss:$8 sps:$4 sm:$0xff]  }
 0x7cd   : > { %v915_v41 = vpack.c.bf16 %v914_v37, %v913_v36  ;;  %v1034_v38 = vmul.f32 %v1994_v43, %v1980_v15  ;;  %v1929_v36 = vld [vmem:[%s2425_s7 + $0x20] ss:$8 sps:$4 sm:$0xff]   ;;  %v1934_v37 = vld [vmem:[%s2425_s7 + $0x34] ss:$8 sps:$4 sm:$0xff]  }
 0x7ce   : > { %v1940_v43 = vld [vmem:[%s2425_s7 + $0x54] ss:$8 sps:$4 sm:$0xff]  }
 0x7cf   : > { %1835 = vmatmul.mubr.msk.bf16.vlgmr.msra.gmra.mrb[20].mxu1 %vm604_vm1, %v915_v41  ;;  %v1036_v45 = vpack.c.bf16 %v1035_v44, %v1034_v38  ;;  %v1932_v41 = vld [vmem:[%s2425_s7 + $0x30] ss:$8 sps:$4 sm:$0xff]   ;;  %v1943_v38 = vld [vmem:[%s2425_s7 + $0x64] ss:$8 sps:$4 sm:$0xff]  }
 0x7d0   : > { %1845 = vmatpush3.bf16.msra.mxu1 %v1038_v42  ;;  %1846 = vmatprep.mubr.msk.bf16.mxu1 %vm2013_vm0, %v2012_v24  ;;  %v1935_v42 = vld [vmem:[%s2425_s7 + $0x40] ss:$8 sps:$4 sm:$0xff]   ;;  %v1938_v44 = vld [vmem:[%s2425_s7 + $0x50] ss:$8 sps:$4 sm:$0xff]  }
 0x7d1   : > { %1355 = vmatprep.subr.bf16.mxu1 %v1925_v26 }
 0x7d7   : > { %1847 = vmatmul.mubr.msk.bf16.vlgmr.msra.gmra.mrb[24].mxu1 %vm604_vm1, %v1036_v45  ;;  %v1941_v45 = vld [vmem:[%s2425_s7 + $0x60] ss:$8 sps:$4 sm:$0xff]  }
 0x7d8   : > { %1387 = vmatprep.mubr.bf16.mxu1 %v2011_v2  ;;  %1356 = vmatpush1.bf16.msra.mxu1 %v1923_v23 }
 0x8a2   : > { %v956_v2 = vpop.f32.mrb[20].mxu1 }
 0x8a3   : > { %v1836_v48 = vpop.f32.mrb[21].mxu1 }
 0x8a4   : > { %v959_v50 = vpop.f32.mrb[22].mxu1  ;;  %v1949_v48 = vld [vmem:[%s2427_s9 + $0x48] sm:$0xff]  }
 0x8a5   : > { %v1885_v51 = vpack.i.bf16 %v959_v50, %v956_v2  ;;  %v1837_v52 = vpop.f32.mrb[23].mxu1  ;;  %v1948_v2 = vld [vmem:[%s2427_s9] sm:$0xff]   ;;  %v1951_v50 = vld [vmem:[%s2427_s9 + $0x50] sm:$0xff]  }
 0x8a6   : > { %v1953_v52 = vld [vmem:[%s2427_s9 + $0x58] sm:$0xff]  }
 0x8a7   : > { %1886 = vrot.lane.b32.xlu0 %v1885_v51, %s2018_s23  ;;  %v1952_v51 = vld [vmem:[%s2427_s9 + $0x10] sm:$0xff]  }
 0x8aa   : > { %v1077_v53 = vpop.f32.mrb[24].mxu1 }
 0x8ab   : > { %v1848_v54 = vpop.f32.mrb[25].mxu1 }
 0x8ac   : > { %v1080_v55 = vpop.f32.mrb[26].mxu1  ;;  %v1955_v54 = vld [vmem:[%s2427_s9 + $0x60] sm:$0xff]  }
 0x8ad   : > { %v1890_v56 = vpack.i.bf16 %v1080_v55, %v1077_v53  ;;  %v1849_v57 = vpop.f32.mrb[27].mxu1  ;;  %v1954_v53 = vld [vmem:[%s2427_s9 + $0x18] sm:$0xff]   ;;  %v1956_v55 = vld [vmem:[%s2427_s9 + $0x20] sm:$0xff]  }
 0x8af   : > { %1891 = vrot.lane.b32.xlu1 %v1890_v56, %s2015_s19  ;;  %v1957_v56 = vld [vmem:[%s2427_s9 + $0x68] sm:$0xff]  }
 0x919   : > { %v1887_v24 = vpop.permute.xlu0 %1886 }
 0x91a   : > { %v1889_v61 = vunpack.i.h.bf16 %v1887_v24  ;;  %v1888_v62 = vunpack.i.l.bf16 %v1887_v24 }
 0x91c   : > { %v1112_v5 = vsel %vm1110_vm2, %v1109_v0, %v1889_v61  ;;  %v1111_v7 = vsel %vm1110_vm2, %v1108_v1, %v1888_v62  ;;  %v1718_v0 = vld [vmem:[%s2423_s5] ss:$0 sm:$0xff] }
 0x921   : > { %v1892_v63 = vpop.permute.xlu1 %1891 }
 0x922   : > { %v1894_v3 = vunpack.i.h.bf16 %v1892_v63  ;;  %v1893_v4 = vunpack.i.l.bf16 %v1892_v63 }
 0x924   : > { %v1115_v9 = vsel %vm1113_vm3, %v1112_v5, %v1894_v3  ;;  %v1114_v10 = vsel %vm1113_vm3, %v1111_v7, %v1893_v4  ;;  %v1719_v5 = vld [vmem:[%s2424_s6] ss:$0 sm:$0xff] }
 0x925   : > { %v1116_v11 = vpack.c.bf16 %v1115_v9, %v1114_v10 }
 0x927   : > { %1859 = vmatmul.mubr.msk.bf16.vlgmr.msra.gmra.mrb[8].mxu0 %vm1149_vm4, %v1116_v11 }
 0x928   : > { %1781 = vmatpush3.bf16.msra.mxu0 %v1948_v2 }
 0x929   : > { %1782 = vmatprep.subr.bf16.mxu0 %v1949_v48 }
 0x92c   : > { %1783 = vmatpush3.bf16.msra.mxu0 %v1950_v49 }
 0x92d   : > { %1784 = vmatprep.subr.bf16.mxu0 %v1951_v50 }
 0x930   : > { %1785 = vmatpush3.bf16.msra.mxu0 %v1952_v51 }
 0x931   : > { %1786 = vmatprep.subr.bf16.mxu0 %v1953_v52 }
 0x934   : > { %1787 = vmatpush3.bf16.msra.mxu0 %v1954_v53 }
 0x935   : > { %1788 = vmatprep.subr.bf16.mxu0 %v1955_v54 }
 0x938   : > { %1789 = vmatpush3.bf16.msra.mxu0 %v1956_v55 }
 0x939   : > { %1790 = vmatprep.subr.bf16.mxu0 %v1957_v56 }
 0x9fa   : > { %v1187_v12 = vpop.f32.mrb[8].mxu0 }
 0x9fb   : > { %v1194_v14 = vadd.f32 %v1187_v12, %v2156_v17  ;;  %v1860_v8 = vpop.f32.mrb[9].mxu0  ;;  %v1928_v17 = vld [vmem:[%s2425_s7 + $0x14] ss:$8 sps:$4 sm:$0xff]   ;;  %v1958_v12 = vld [vmem:[%s2427_s9 + $0x28] sm:$0xff]  }
 0x9fc   : > { %v1190_v15 = vpop.f32.mrb[10].mxu0  ;;  %1357 = vmatprep.subr.bf16.mxu1 %v1928_v17  ;;  %1791 = vmatpush3.bf16.msra.mxu0 %v1958_v12  ;;  %v1961_v8 = vld [vmem:[%s2427_s9 + $0x78] sm:$0xff]  }
 0x9fd   : > { %v1195_v6 = vadd.f32 %v1190_v15, %v2158_v18  ;;  %v1861_v16 = vpop.f32.mrb[11].mxu0  ;;  %v1203_v19 = vadd.f32 %v1717_v13, %v1194_v14  ;;  %v1926_v18 = vld [vmem:[%s2425_s7 + $0x10] ss:$8 sps:$4 sm:$0xff]  }
 0x9fe   : > { %1358 = vmatpush1.bf16.msra.mxu1 %v1926_v18  ;;  %v1960_v14 = vld [vmem:[%s2427_s9 + $0x30] sm:$0xff]   ;;  %v1962_v15 = vld [vmem:[%s2427_s9 + $0x38] sm:$0xff]  }
 0x9ff   : > { %1207 = vadd.xlane.f32.xlu0 %v1203_v19  ;;  %v1204_v20 = vadd.f32 %v1717_v13, %v1195_v6  ;;  %1359 = vmatprep.subr.bf16.mxu1 %v1931_v35  ;;  %v1959_v13 = vld [vmem:[%s2427_s9 + $0x70] sm:$0xff]   ;;  %v1263_v6 = vld [vmem:[%s2426_s8] sm:$0x3] }
 0xa00   : > { %1792 = vmatprep.subr.bf16.mxu0 %v1959_v13  ;;  %v1268_v16 = vrot.slane %v1263_v6, %v465_v22 }
 0xa01   : > { %1209 = vadd.xlane.f32.xlu1 %v1204_v20  ;;  %1793 = vmatpush3.bf16.msra.mxu0 %v1960_v14 }
 0xa02   : > { %1360 = vmatpush1.bf16.msra.mxu1 %v1929_v36  ;;  %1794 = vmatprep.subr.bf16.mxu0 %v1961_v8 }
 0xa03   : > { %1361 = vmatprep.subr.bf16.mxu1 %v1934_v37 }
 0xa05   : > { %1795 = vmatpush3.bf16.msra.mxu0 %v1962_v15 }
 0xa06   : > { %1362 = vmatpush1.bf16.msra.mxu1 %v1932_v41 }
 0xa07   : > { %1363 = vmatprep.subr.bf16.mxu1 %v1937_v39 }
 0xa0a   : > { %1364 = vmatpush1.bf16.msra.mxu1 %v1935_v42 }
 0xa0b   : > { %1365 = vmatprep.subr.bf16.mxu1 %v1940_v43 }
 0xa0e   : > { %1366 = vmatpush1.bf16.msra.mxu1 %v1938_v44 }
 0xa0f   : > { %1367 = vmatprep.subr.bf16.mxu1 %v1943_v38 }
 0xa12   : > { %1368 = vmatpush1.bf16.msra.mxu1 %v1941_v45 }
 0xa13   : > { %1369 = vmatprep.subr.bf16.mxu1 %v1946_v46 }
 0xa16   : > { %1370 = vmatpush1.bf16.msra.mxu1 %v1944_v40 }
 0xa8c   : > { %v1208_v27 = vpop.xlane.xlu0 %1207 }
 0xa8d   : > { %v1212_v28 = vmul.f32 0.0078125, %v1208_v27 }
 0xa8e   : > { %v1210_v29 = vpop.xlane.xlu1 %1209 }
 0xa8f   : > { %v1214_v30 = vsub.f32 %v1203_v19, %v1212_v28  ;;  %v1213_v31 = vmul.f32 0.0078125, %v1210_v29  ;;  %v1272_v19 = vrot.slane %v1263_v6, %v469_v25 }
 0xa91   : > { %v2299_v32 = vsub.f32 %v1204_v20, %v1213_v31  ;;  %v1216_v33 = vmul.f32 %v1214_v30, %v1214_v30 }
 0xa93   : > { %1218 = vadd.xlane.f32.xlu0 %v1216_v33  ;;  %v1217_v34 = vmul.f32 %v2299_v32, %v2299_v32 }
 0xa97   : > { %1220 = vadd.xlane.f32.xlu0 %v1217_v34 }
 0xb20   : > { %v1219_v57 = vpop.xlane.xlu0 %1218 }
 0xb21   : > { %v1222_v58 = vmul.f32 0.0078125, %v1219_v57 }
 0xb23   : > { %v1224_v24 = vadd.f32 1e-05, %v1222_v58  ;;  %v1753_v58 = vld [vmem:[%s2429_s11] ss:$0 sm:$0xff] }
 0xb24   : > { %v1221_v59 = vpop.xlane.xlu0 %1220 }
 0xb25   : > { %1995 = vrsqrt.f32 %v1224_v24  ;;  %v1223_v60 = vmul.f32 0.0078125, %v1221_v59 }
 0xb27   : > { %v1225_v61 = vadd.f32 1e-05, %v1223_v60  ;;  %v1754_v60 = vld [vmem:[%s2430_s12] ss:$0 sm:$0xff] }
 0xb29   : > { %1997 = vrsqrt.f32 %v1225_v61 }
 0xb2f   : > { %v1996_v62 = vpop.eup %1995 }
 0xb30   : > { %v1228_v63 = vmul.f32 %v1996_v62, %v1214_v30 }
 0xb32   : > { %v1236_v4 = vmul.f32 %v1718_v0, %v1228_v63 }
 0xb33   : > { %v1998_v1 = vpop.eup %1997 }
 0xb34   : > { %v1229_v3 = vmul.f32 %v1998_v1, %v2299_v32  ;;  %v1244_v9 = vadd.f32 %v1719_v5, %v1236_v4 }
 0xb36   : > { %v1237_v7 = vmul.f32 %v1718_v0, %v1229_v3 }
 0xb38   : > { %v1245_v10 = vadd.f32 %v1719_v5, %v1237_v7 }
 0xb3a   : > { %v1246_v11 = vpack.c.bf16 %v1245_v10, %v1244_v9 }
 0xb3c   : > { %1388 = vmatmul.mubr.bf16.vlgmr.msra.gmra.mrb[28].mxu1 %v1246_v11 }
 0xc0f   : > { %v1389_v20 = vpop.f32.mrb[28].mxu1 }
 0xc10   : > { %v1390_v23 = vadd.f32 %v1389_v20, %v1268_v16  ;;  %v1391_v26 = vpop.f32.mrb[29].mxu1 }
 0xc11   : > { %v1392_v17 = vadd.f32 %v1391_v26, %v1272_v19  ;;  %v1393_v18 = vpop.f32.mrb[30].mxu1 }
 0xc12   : > { %v1394_v27 = vadd.f32 %v1393_v18, %v1268_v16  ;;  %v1395_v28 = vpop.f32.mrb[31].mxu1  ;;  %v1398_v30 = vmax.f32 %v1390_v23, 0.0 }
 0xc13   : > { %v1396_v29 = vadd.f32 %v1395_v28, %v1272_v19  ;;  %v1399_v32 = vmax.f32 %v1392_v17, 0.0 }
 0xc14   : > { %v1400_v31 = vmax.f32 %v1394_v27, 0.0 }
 0xc15   : > { %v1401_v33 = vmax.f32 %v1396_v29, 0.0 }
 0xc16   : > { %v1402_v34 = vpack.c.bf16 %v1400_v31, %v1398_v30 }
 0xc17   : > { %v1403_v35 = vpack.c.bf16 %v1401_v33, %v1399_v32 }
 0xc19   : > { %1571 = vmatprep.mubr.bf16.mxu0 %v1403_v35 }
 0xc1a   : > { %1572 = vmatmul.mubr.bf16.vlgmr.msra.gmra.mrb[12].mxu0 %v1402_v34 }
 0xced   : > { %v1796_v22 = vpop.f32.mrb[12].mxu0 }
 0xcee   : > { %v1797_v25 = vpop.f32.mrb[13].mxu0 }
 0xcef   : > { %v1798_v36 = vadd.f32 %v1797_v25, %v1796_v22  ;;  %v1799_v37 = vpop.f32.mrb[14].mxu0 }
 0xcf0   : > { %v1800_v41 = vpop.f32.mrb[15].mxu0 }
 0xcf1   : > { %v1574_v39 = vadd.f32 %v1798_v36, %v1736_v21  ;;  %v1801_v42 = vadd.f32 %v1800_v41, %v1799_v37 }
 0xcf3   : > { %v1577_v43 = vadd.f32 %v1801_v42, %v1736_v21  ;;  %v1580_v44 = vadd.f32 %v1574_v39, %v1244_v9 }
 0xcf5   : > { %1584 = vadd.xlane.f32.xlu1 %v1580_v44  ;;  %v1581_v38 = vadd.f32 %v1577_v43, %v1245_v10 }
 0xcf7   : > { %1586 = vadd.xlane.f32.xlu0 %v1581_v38 }
 0xd82   : > { %v1585_v45 = vpop.xlane.xlu1 %1584 }
 0xd83   : > { %v1588_v46 = vmul.f32 0.0078125, %v1585_v45 }
 0xd84   : > { %v1587_v40 = vpop.xlane.xlu0 %1586 }
 0xd85   : > { %v1590_v47 = vsub.f32 %v1580_v44, %v1588_v46  ;;  %v1589_v2 = vmul.f32 0.0078125, %v1587_v40 }
 0xd87   : > { %v1591_v48 = vsub.f32 %v1581_v38, %v1589_v2  ;;  %v1592_v49 = vmul.f32 %v1590_v47, %v1590_v47 }
 0xd89   : > { %1594 = vadd.xlane.f32.xlu1 %v1592_v49  ;;  %v1593_v50 = vmul.f32 %v1591_v48, %v1591_v48 }
 0xd8b   : > { %1596 = vadd.xlane.f32.xlu0 %v1593_v50 }
 0xe16   : > { %v1595_v51 = vpop.xlane.xlu1 %1594 }
 0xe17   : > { %v1598_v52 = vmul.f32 0.0078125, %v1595_v51 }
 0xe18   : > { %v1597_v53 = vpop.xlane.xlu0 %1596 }
 0xe19   : > { %v1600_v54 = vadd.f32 1e-05, %v1598_v52  ;;  %v1599_v55 = vmul.f32 0.0078125, %v1597_v53 }
 0xe1b   : > { %1999 = vrsqrt.f32 %v1600_v54  ;;  %v1601_v56 = vadd.f32 1e-05, %v1599_v55 }
 0xe1d   : > { %2001 = vrsqrt.f32 %v1601_v56 }
 0xe25   : > { %v2000_v57 = vpop.eup %1999 }
 0xe26   : > { %v1604_v24 = vmul.f32 %v2000_v57, %v1590_v47 }
 0xe27   : > { %v2002_v59 = vpop.eup %2001 }
 0xe28   : > { %v1612_v61 = vmul.f32 %v1753_v58, %v1604_v24  ;;  %v1605_v62 = vmul.f32 %v2002_v59, %v1591_v48 }
 0xe2a   : > { %v1620_v63 = vadd.f32 %v1754_v60, %v1612_v61  ;;  %v1613_v0 = vmul.f32 %v1753_v58, %v1605_v62 }
 0xe2c   : > { %1622 = vst [vmem:[%s440_s15] sm:$0xff] %v1620_v63  ;;  %v1621_v1 = vadd.f32 %v1754_v60, %v1613_v0 }
 0xe2e   : > { %1623 = vst [vmem:[%s440_s15 + $0x8] sm:$0xff] %v1621_v1 }
 0xe2f PF: > { %s23_s25 = sadd.s32 1, %s2009_s25  }
 0xe30   : > { %p20_p4 = scmp.ge.s32.totalorder %s23_s25, 4  }
 0xe32   :  { %22 = sbr.rel (!%p20_p4) target bundleno = 1 (0x1), region = 102 }

// kernel: temporal_transformer_forward.12
= control target key start
LH: loop header
LB: loop body
LE: loop exit
PB: predicated region body
PF: predicated region fallthrough
CT: control target
= control target key end

     0   :  { %s4064_s0 = inlined_call_operand.vmem [shape: f32[2,16,128], index: 0, kind: input, shape index: {}, may-alias: {0,1}]   ;;  %s4065_s1 = inlined_call_operand.vmem [shape: f32[2,16,128], index: 1, kind: input, shape index: {}, may-alias: {0,1}]   ;;  %s4066_s2 = inlined_call_operand.vmem [shape: bf16[128,192], index: 2, kind: input, shape index: {}]   ;;  %s4067_s3 = inlined_call_operand.vmem [shape: f32[1,192], index: 3, kind: input, shape index: {}]   ;;  %s4068_s4 = inlined_call_operand.vmem [shape: bf16[64,128], index: 4, kind: input, shape index: {}]   ;;  %s4069_s5 = inlined_call_operand.vmem [shape: f32[1,128], index: 5, kind: input, shape index: {}]   ;;  %s4070_s6 = inlined_call_operand.vmem [shape: f32[1,128], index: 6, kind: input, shape index: {}]   ;;  %s4071_s7 = inlined_call_operand.vmem [shape: f32[1,128], index: 7, kind: input, shape index: {}]   ;;  %s4072_s8 = inlined_call_operand.vmem [shape: bf16[128,64], index: 8, kind: input, shape index: {}]   ;;  %s4073_s9 = inlined_call_operand.vmem [shape: f32[1,64], index: 9, kind: input, shape index: {}]   ;;  %s4074_s10 = inlined_call_operand.vmem [shape: bf16[128,128], index: 10, kind: input, shape index: {}]   ;;  %s4075_s11 = inlined_call_operand.vmem [shape: f32[1,128], index: 11, kind: input, shape index: {}]   ;;  %s4076_s12 = inlined_call_operand.vmem [shape: bf16[64,128], index: 12, kind: input, shape index: {}]   ;;  %s4077_s13 = inlined_call_operand.vmem [shape: f32[1,128], index: 13, kind: input, shape index: {}]   ;;  %s4078_s14 = inlined_call_operand.vmem [shape: f32[1,128], index: 14, kind: input, shape index: {}]   ;;  %s4079_s15 = inlined_call_operand.vmem [shape: f32[1,128], index: 15, kind: input, shape index: {}]   ;;  %s4080_s16 = inlined_call_operand.vmem [shape: bf16[128,256], index: 16, kind: input, shape index: {}]   ;;  %s4081_s17 = inlined_call_operand.vmem [shape: f32[1,256], index: 17, kind: input, shape index: {}]   ;;  %s4082_s18 = inlined_call_operand.vmem [shape: bf16[256,128], index: 18, kind: input, shape index: {}]   ;;  %s4083_s19 = inlined_call_operand.vmem [shape: f32[1,128], index: 19, kind: input, shape index: {}]   ;;  %s4084_s20 = inlined_call_operand.vmem [shape: f32[1,128], index: 20, kind: input, shape index: {}]   ;;  %s4085_s21 = inlined_call_operand.vmem [shape: f32[1,128], index: 21, kind: input, shape index: {}]   ;;  %s4086_s22 = inlined_call_operand.vmem [shape: f32[2,16,128], index: 22, kind: output, shape index: {}]  }
   0x1   :  { %4100 = sst [smem:[#allocation2_spill]] %s4064_s0 }
   0x2   :  { %4101 = sst [smem:[#allocation3_spill]] %s4065_s1 }
   0x3   :  { %4102 = sst [smem:[#allocation4_spill]] %s4066_s2 }
   0x4   :  { %4103 = sst [smem:[#allocation5_spill]] %s4067_s3  ;;  %s3530_s3 = smov 0  }
   0x5   :  { %4104 = sst [smem:[#allocation6_spill]] %s4068_s4 }
   0x6   :  { %4105 = sst [smem:[#allocation7_spill]] %s4069_s5 }
   0x7   :  { %4106 = sst [smem:[#allocation8_spill]] %s4070_s6 }
   0x8 LB: > { %s2826_s28 = sadd.s32 4294967295, %s3403_s3   ;;  %p2830_p0 = scmp.ge.s32.totalorder %s3403_s3, 1  ;;  %s3403_s3 = sphi %s3530_s3, %s32_s3  }
   0x9   : > { %p622_p1 = scmp.lt.s32.totalorder %s3403_s3, 3 }
   0xb   : > { %p623_p2 = pnand %p2830_p0, %p622_p1 }
   0xc   : > { %s4107_s4 = sld [smem:[#allocation4_spill]] (!%p623_p2)  ;;  %v3405_v2 = vmov (!%p623_p2), 0   ;;  %p689_p3 = scmp.lt.s32.totalorder (!%p623_p2), %s2826_s28, 1  ;;  %v728_v20 = vlaneseq (!%p623_p2)  ;;  %v3406_v24 = vmov (!%p623_p2), 0.0   ;;  %vm3407_vm0 = vmmov (!%p623_p2), 0  }
   0xd   : > { %626 = sbr.rel (%p623_p2) target bundleno = 5400 (0x1518), region = 108  ;;  %850 = vmatprep.mubr.bf16.mxu0 (!%p623_p2), %v3405_v2  ;;  %s4108_s26 = sld [smem:[#allocation2_spill]] (!%p623_p2)  ;;  %3025 = vmatprep.subr.bf16.mxu1 (!%p623_p2), %v3406_v24  ;;  %vm869_vm1 = vcmask (!%p623_p2), 130048   ;;  %vm1375_vm2 = vcmask (!%p623_p2), 261120   ;;  %vm1378_vm3 = vcmask (!%p623_p2), 392192   ;;  %vm1414_vm4 = vcmask (!%p623_p2), 523264  }
   0xe   : > { %v3599_v21 = vshrl.u32 (!%p623_p2), %v728_v20, 7  ;;  %s4109_s23 = sld [smem:[#allocation5_spill]] (!%p623_p2)  ;;  %3027 = vmatprep.mubr.msk.bf16.mxu1 (!%p623_p2), %vm3407_vm0, %v3406_v24  ;;  %s4091_s1 = smov (!%p623_p2), 64  }
   0xf   : > { %s4092_s5 = smov (!%p623_p2), 48   ;;  %s3410_s24 = smov (!%p623_p2), 112  }
  0x10   : > { %v730_v22 = vsub.s32 (!%p623_p2), 0, %v3599_v21  ;;  %v734_v25 = vsub.s32 (!%p623_p2), 1, %v3599_v21  ;;  %s4098_s6 = smov (!%p623_p2), 96   ;;  %s4094_s25 = smov (!%p623_p2), 32   ;;  %v2919_v21 = vld [vmem:[%s4083_s19] ss:$0 sm:$0xff] (!%p623_p2) }
  0x11   : > { %s4110_s29 = sld [smem:[#allocation6_spill]] (!%p623_p2)  ;;  %s4111_s30 = sld [smem:[#allocation7_spill]] (!%p623_p2) }
  0x12   : > { %v3233_v0 = vld [vmem:[%s4107_s4 + $0x4] ss:$8 sps:$4 sm:$0xff] (!%p623_p2)   ;;  %v3235_v1 = vld [vmem:[%s4107_s4] ss:$8 sps:$4 sm:$0xff] (!%p623_p2)   ;;  %v3236_v3 = vld [vmem:[%s4107_s4 + $0x14] ss:$8 sps:$4 sm:$0xff] (!%p623_p2)  }
  0x13   : > { %818 = vmatprep.subr.bf16.mxu0 (!%p623_p2), %v3233_v0  ;;  %v3238_v4 = vld [vmem:[%s4107_s4 + $0x10] ss:$8 sps:$4 sm:$0xff] (!%p623_p2)   ;;  %v3239_v5 = vld [vmem:[%s4107_s4 + $0x24] ss:$8 sps:$4 sm:$0xff] (!%p623_p2)   ;;  %v3241_v6 = vld [vmem:[%s4107_s4 + $0x20] ss:$8 sps:$4 sm:$0xff] (!%p623_p2)  }
  0x14   : > { %819 = vmatpush1.bf16.msra.mxu0 %v3235_v1  ;;  %s4121_s28 = smov (!%p689_p3, %s2826_s28), 1  ;;  %v3242_v7 = vld [vmem:[%s4107_s4 + $0x34] ss:$8 sps:$4 sm:$0xff]   ;;  %v3244_v8 = vld [vmem:[%s4107_s4 + $0x30] ss:$8 sps:$4 sm:$0xff]  }
  0x15   : > { %820 = vmatprep.subr.bf16.mxu0 %v3236_v3  ;;  %s3560_s0 = sshll.u32 %s4121_s28, 4  ;;  %v3245_v9 = vld [vmem:[%s4107_s4 + $0x44] ss:$8 sps:$4 sm:$0xff]   ;;  %v3247_v10 = vld [vmem:[%s4107_s4 + $0x40] ss:$8 sps:$4 sm:$0xff]   ;;  %s4119_s28 = smov 48  }
  0x16   : > { %v3248_v11 = vld [vmem:[%s4107_s4 + $0x54] ss:$8 sps:$4 sm:$0xff]   ;;  %v3250_v12 = vld [vmem:[%s4107_s4 + $0x50] ss:$8 sps:$4 sm:$0xff]   ;;  %v3251_v13 = vld [vmem:[%s4107_s4 + $0x64] ss:$8 sps:$4 sm:$0xff]   ;;  %s693_s2 = scalar_lea.vmem %s4108_s26, %s3560_s0  ;;  %s703_s27 = scalar_lea.vmem %s4086_s22, %s3560_s0 }
  0x17   : > { %v3253_v14 = vld [vmem:[%s4107_s4 + $0x60] ss:$8 sps:$4 sm:$0xff]   ;;  %v3254_v15 = vld [vmem:[%s4107_s4 + $0x74] ss:$8 sps:$4 sm:$0xff]   ;;  %v3256_v16 = vld [vmem:[%s4107_s4 + $0x70] ss:$8 sps:$4 sm:$0xff]  }
  0x18   : > { %821 = vmatpush1.bf16.msra.mxu0 %v3238_v4  ;;  %v3593_v17 = vld [vmem:[%s693_s2] sm:$0xff]  ;;  %v3595_v18 = vld [vmem:[%s693_s2 + $0x8] sm:$0xff]  ;;  %s4089_s26 = smov 16   ;;  %s4096_s2 = smov 80  }
  0x19   : > { %822 = vmatprep.subr.bf16.mxu0 %v3239_v5  ;;  %v709_v19 = vpack.c.bf16 %v3595_v18, %v3593_v17  ;;  %v726_v23 = vld [vmem:[%s4109_s23] sm:$0x3]  ;;  %s4117_s23 = smov 32  }
  0x1a   : > { %v731_v26 = vrot.slane %v726_v23, %v730_v22  ;;  %v735_v28 = vrot.slane %v726_v23, %v734_v25 }
  0x1c   : > { %823 = vmatpush1.bf16.msra.mxu0 %v3241_v6 }
  0x1d   : > { %824 = vmatprep.subr.bf16.mxu0 %v3242_v7 }
  0x20   : > { %825 = vmatpush1.bf16.msra.mxu0 %v3244_v8 }
  0x21   : > { %826 = vmatprep.subr.bf16.mxu0 %v3245_v9 }
  0x24   : > { %827 = vmatpush1.bf16.msra.mxu0 %v3247_v10 }
  0x25   : > { %828 = vmatprep.subr.bf16.mxu0 %v3248_v11 }
  0x28   : > { %829 = vmatpush1.bf16.msra.mxu0 %v3250_v12 }
  0x29   : > { %830 = vmatprep.subr.bf16.mxu0 %v3251_v13 }
  0x2c   : > { %831 = vmatpush1.bf16.msra.mxu0 %v3253_v14 }
  0x2d   : > { %832 = vmatprep.subr.bf16.mxu0 %v3254_v15 }
  0x30   : > { %833 = vmatpush1.bf16.msra.mxu0 %v3256_v16 }
  0x31   : > { %3061 = vmatprep.subr.bf16.mxu0 %v3406_v24 }
  0x33   : > { %851 = vmatmul.mubr.bf16.vlgmr.msra.gmra.mrb[0].mxu0 %v709_v19 }
  0x34   : > { %3063 = vmatprep.mubr.msk.bf16.mxu0 %vm3407_vm0, %v3406_v24 }
 0x106   : > { %v852_v27 = vpop.f32.mrb[0].mxu0 }
 0x107   : > { %v853_v29 = vadd.f32 %v852_v27, %v731_v26  ;;  %v854_v30 = vpop.f32.mrb[1].mxu0 }
 0x108   : > { %v856_v31 = vpop.f32.mrb[2].mxu0  ;;  %v855_v34 = vadd.f32 %v854_v30, %v735_v28 }
 0x109   : > { %v857_v32 = vadd.f32 %v856_v31, %v731_v26  ;;  %v858_v33 = vpop.f32.mrb[3].mxu0  ;;  %v861_v36 = vmul.f32 0.25, %v853_v29 }
 0x10a   : > { %v859_v35 = vadd.f32 %v858_v33, %v735_v28 }
 0x10b   : > { %v862_v37 = vmul.f32 0.25, %v857_v32  ;;  %v3616_v38 = vpack.c.bf16 %v857_v32, %v853_v29 }
 0x10c   : > { %v3618_v39 = vpack.c.bf16 %v859_v35, %v855_v34 }
 0x10d   : > { %v3620_v40 = vpack.c.bf16 %v862_v37, %v861_v36  ;;  %867 = vrot.lane.b32.xlu0 %v3616_v38, %s4091_s1 }
 0x17f   : > { %v868_v41 = vpop.permute.xlu0 %867 }
 0x180   : > { %v874_v42 = vsel %vm869_vm1, %v868_v41, 0 }
 0x181   : > { %3026 = vmatpush3.bf16.xpose.msra.mxu1 %v874_v42 }
 0x182   : > { %3031 = vmatprep.subr.bf16.mxu1 %v3406_v24 }
 0x188   : > { %3028 = vmatmul.mubr.msk.bf16.vlgmr.msra.gmra.mrb[0].mxu1 %vm869_vm1, %v3620_v40 }
 0x189   : > { %3032 = vmatpush3.bf16.msra.mxu1 %v3618_v39  ;;  %3033 = vmatprep.mubr.msk.bf16.mxu1 %vm3407_vm0, %v3406_v24 }
 0x18a   : > { %3037 = vmatprep.subr.bf16.mxu1 %v3406_v24 }
 0x25b   : > { %v910_v43 = vpop.f32.mrb[0].mxu1 }
 0x25c   : > { %v3029_v44 = vpop.f32.mrb[1].mxu1  ;;  %v917_v45 = vsel %vm869_vm1, %v910_v43, -inf }
 0x25d   : > { %918 = vmax.xlane.f32.xlu0 %v917_v45  ;;  %v913_v46 = vpop.f32.mrb[2].mxu1 }
 0x25e   : > { %v3030_v47 = vpop.f32.mrb[3].mxu1  ;;  %v920_v48 = vsel %vm869_vm1, %v913_v46, -inf }
 0x25f   : > { %921 = vmax.xlane.f32.xlu1 %v920_v48 }
 0x2ea   : > { %v919_v49 = vpop.xlane.xlu0 %918 }
 0x2eb   : > { %v923_v50 = vsub.f32 %v910_v43, %v919_v49 }
 0x2ec   : > { %v922_v51 = vpop.xlane.xlu1 %921 }
 0x2ed   : > { %v925_v52 = vmul.f32 1.442695, %v923_v50  ;;  %v924_v53 = vsub.f32 %v913_v46, %v922_v51 }
 0x2ef   : > { %3321 = vpow2.f32 %v925_v52  ;;  %v927_v54 = vmul.f32 1.442695, %v924_v53 }
 0x2f1   : > { %3323 = vpow2.f32 %v927_v54 }
 0x2f9   : > { %v3322_v55 = vpop.eup %3321 }
 0x2fa   : > { %v929_v56 = vsel %vm869_vm1, %v3322_v55, 0.0 }
 0x2fb   : > { %v3324_v57 = vpop.eup %3323  ;;  %930 = vadd.xlane.f32.xlu1 %v929_v56 }
 0x2fc   : > { %v932_v58 = vsel %vm869_vm1, %v3324_v57, 0.0 }
 0x2ff   : > { %933 = vadd.xlane.f32.xlu1 %v932_v58 }
 0x310   : > { %987 = vrot.lane.b32.xlu1 %v3616_v38, %s4092_s5 }
 0x314   : > { %985 = vrot.lane.b32.xlu1 %v3620_v40, %s3410_s24 }
 0x388   : > { %v931_v59 = vpop.xlane.xlu1 %930 }
 0x389   : > { %3325 = vrcp.f32 %v931_v59 }
 0x38c   : > { %v934_v60 = vpop.xlane.xlu1 %933 }
 0x38d   : > { %3327 = vrcp.f32 %v934_v60 }
 0x390   : > { %v988_v1 = vpop.permute.xlu1 %987 }
 0x391   : > { %v993_v4 = vsel %vm869_vm1, %v988_v1, 0 }
 0x393   : > { %v3326_v61 = vpop.eup %3325 }
 0x394   : > { %v937_v63 = vmul.f32 %v3326_v61, %v3322_v55  ;;  %v986_v5 = vpop.permute.xlu1 %985 }
 0x397   : > { %v3328_v62 = vpop.eup %3327 }
 0x398   : > { %v938_v0 = vmul.f32 %v3328_v62, %v3324_v57 }
 0x39a   : > { %v939_v3 = vpack.c.bf16 %v938_v0, %v937_v63 }
 0x39c   : > { %3034 = vmatmul.mubr.msk.bf16.vlgmr.msra.gmra.mrb[4].mxu1 %vm869_vm1, %v939_v3 }
 0x39d   : > { %3038 = vmatpush3.bf16.xpose.msra.mxu1 %v993_v4  ;;  %3039 = vmatprep.mubr.msk.bf16.mxu1 %vm3407_vm0, %v3406_v24 }
 0x39e   : > { %3043 = vmatprep.subr.bf16.mxu1 %v3406_v24 }
 0x3a4   : > { %3040 = vmatmul.mubr.msk.bf16.vlgmr.msra.gmra.mrb[8].mxu1 %vm869_vm1, %v986_v5 }
 0x3a5   : > { %3045 = vmatprep.mubr.msk.bf16.mxu1 %vm3407_vm0, %v3406_v24 }
 0x46f   : > { %v3648_v6 = vpop.f32.mrb[4].mxu1 }
 0x470   : > { %v3035_v7 = vpop.f32.mrb[5].mxu1 }
 0x471   : > { %v3650_v8 = vpop.f32.mrb[6].mxu1 }
 0x472   : > { %v3036_v9 = vpop.f32.mrb[7].mxu1 }
 0x477   : > { %v1029_v10 = vpop.f32.mrb[8].mxu1 }
 0x478   : > { %v3041_v11 = vpop.f32.mrb[9].mxu1  ;;  %v1036_v12 = vsel %vm869_vm1, %v1029_v10, -inf }
 0x479   : > { %1037 = vmax.xlane.f32.xlu1 %v1036_v12  ;;  %v1032_v13 = vpop.f32.mrb[10].mxu1 }
 0x47a   : > { %v3042_v14 = vpop.f32.mrb[11].mxu1  ;;  %v1039_v15 = vsel %vm869_vm1, %v1032_v13, -inf }
 0x47b   : > { %1040 = vmax.xlane.f32.xlu0 %v1039_v15 }
 0x48a   : > { %1107 = vrot.lane.b32.xlu1 %v3620_v40, %s4098_s6 }
 0x491   : > { %1060 = vrot.lane.b32.xlu0 %v3618_v39, %s3410_s24 }
 0x506   : > { %v1038_v16 = vpop.xlane.xlu1 %1037 }
 0x507   : > { %v1042_v19 = vsub.f32 %v1029_v10, %v1038_v16 }
 0x508   : > { %v1041_v20 = vpop.xlane.xlu0 %1040 }
 0x509   : > { %v1044_v23 = vmul.f32 1.442695, %v1042_v19  ;;  %v1043_v26 = vsub.f32 %v1032_v13, %v1041_v20 }
 0x50b   : > { %3329 = vpow2.f32 %v1044_v23  ;;  %v1046_v27 = vmul.f32 1.442695, %v1043_v26 }
 0x50c   : > { %v1061_v28 = vpop.permute.xlu0 %1060 }
 0x50d   : > { %3331 = vpow2.f32 %v1046_v27  ;;  %3044 = vmatpush3.bf16.msra.mxu1 %v1061_v28 }
 0x50e   : > { %3049 = vmatprep.subr.bf16.mxu1 %v3406_v24 }
 0x515   : > { %v3330_v29 = vpop.eup %3329 }
 0x516   : > { %v1048_v30 = vsel %vm869_vm1, %v3330_v29, 0.0 }
 0x517   : > { %v3332_v31 = vpop.eup %3331  ;;  %1049 = vadd.xlane.f32.xlu0 %v1048_v30 }
 0x518   : > { %v1051_v32 = vsel %vm869_vm1, %v3332_v31, 0.0 }
 0x51b   : > { %1052 = vadd.xlane.f32.xlu0 %v1051_v32 }
 0x531   : > { %1109 = vrot.lane.b32.xlu0 %v3616_v38, %s4094_s25 }
 0x535   : > { %1230 = vrot.lane.b32.xlu0 %v3616_v38, %s4089_s26 }
 0x539   : > { %1228 = vrot.lane.b32.xlu0 %v3620_v40, %s4096_s2  ;;  %v1108_v40 = vpop.permute.xlu1 %1107 }
 0x5a4   : > { %v1050_v33 = vpop.xlane.xlu0 %1049 }
 0x5a5   : > { %3333 = vrcp.f32 %v1050_v33 }
 0x5a8   : > { %v1053_v34 = vpop.xlane.xlu0 %1052 }
 0x5a9   : > { %3335 = vrcp.f32 %v1053_v34 }
 0x5ac   : > { %v1110_v35 = vpop.permute.xlu0 %1109 }
 0x5ad   : > { %v1115_v45 = vsel %vm869_vm1, %v1110_v35, 0 }
 0x5af   : > { %v3334_v37 = vpop.eup %3333 }
 0x5b0   : > { %v1231_v36 = vpop.permute.xlu0 %1230  ;;  %v1056_v43 = vmul.f32 %v3334_v37, %v3330_v29 }
 0x5b1   : > { %v1236_v41 = vsel %vm869_vm1, %v1231_v36, 0 }
 0x5b2   : > { %3062 = vmatpush3.bf16.xpose.msra.mxu0 %v1236_v41 }
 0x5b3   : > { %v3336_v42 = vpop.eup %3335  ;;  %3073 = vmatprep.subr.bf16.mxu0 %v3406_v24 }
 0x5b4   : > { %v1057_v44 = vmul.f32 %v3336_v42, %v3332_v31  ;;  %v1229_v46 = vpop.permute.xlu0 %1228 }
 0x5b6   : > { %v1058_v38 = vpack.c.bf16 %v1057_v44, %v1056_v43 }
 0x5b8   : > { %3046 = vmatmul.mubr.msk.bf16.vlgmr.msra.gmra.mrb[12].mxu1 %vm869_vm1, %v1058_v38 }
 0x5b9   : > { %3050 = vmatpush3.bf16.xpose.msra.mxu1 %v1115_v45  ;;  %3064 = vmatmul.mubr.msk.bf16.vlgmr.msra.gmra.mrb[4].mxu0 %vm869_vm1, %v1229_v46  ;;  %v3257_v46 = vld [vmem:[%s4110_s29] sm:$0xff]  }
 0x5ba   : > { %3051 = vmatprep.mubr.msk.bf16.mxu1 %vm3407_vm0, %v3406_v24  ;;  %3055 = vmatprep.subr.bf16.mxu1 %v3406_v24 }
 0x5bb   : > { %3081 = vmatprep.mubr.msk.bf16.mxu0 %vm3407_vm0, %v3406_v24  ;;  %3074 = vmatpush3.bf16.msra.mxu0 %v3257_v46  ;;  %v3273_v46 = vld [vmem:[%s4074_s10 + $0x38] sm:$0xff]  }
 0x5bc   : > { %3075 = vmatprep.subr.bf16.mxu0 %v3406_v24 }
 0x5c0   : > { %3052 = vmatmul.mubr.msk.bf16.vlgmr.msra.gmra.mrb[16].mxu1 %vm869_vm1, %v1108_v40  ;;  %v3258_v40 = vld [vmem:[%s4110_s29 + $0x8] sm:$0xff]  }
 0x5c1   : > { %3057 = vmatprep.mubr.msk.bf16.mxu1 %vm3407_vm0, %v3406_v24  ;;  %3076 = vmatpush3.bf16.msra.mxu0 %v3258_v40 }
 0x5c2   : > { %3077 = vmatprep.subr.bf16.mxu0 %v3406_v24 }
 0x68b   : > { %v1100_v47 = vpop.f32.mrb[12].mxu1 }
 0x68c   : > { %v3047_v48 = vpop.f32.mrb[13].mxu1  ;;  %v1272_v49 = vpop.f32.mrb[4].mxu0 }
 0x68d   : > { %v1103_v50 = vpop.f32.mrb[14].mxu1  ;;  %v3065_v51 = vpop.f32.mrb[5].mxu0  ;;  %v1279_v62 = vsel %vm869_vm1, %v1272_v49, -inf }
 0x68e   : > { %v3203_v52 = vpack.i.bf16 %v1103_v50, %v1100_v47  ;;  %v3048_v53 = vpop.f32.mrb[15].mxu1  ;;  %v1275_v54 = vpop.f32.mrb[6].mxu0  ;;  %v3259_v47 = vld [vmem:[%s4110_s29 + $0x10] sm:$0xff]   ;;  %v3260_v50 = vld [vmem:[%s4110_s29 + $0x18] sm:$0xff]  }
 0x68f   : > { %v3066_v55 = vpop.f32.mrb[7].mxu0  ;;  %v1282_v63 = vsel %vm869_vm1, %v1275_v54, -inf  ;;  %3078 = vmatpush3.bf16.msra.mxu0 %v3259_v47 }
 0x690   : > { %3079 = vmatprep.subr.bf16.mxu0 %v3406_v24 }
 0x693   : > { %v1151_v56 = vpop.f32.mrb[16].mxu1  ;;  %3080 = vmatpush3.bf16.msra.mxu0 %v3260_v50  ;;  %v3275_v50 = vld [vmem:[%s4072_s8 + $0x30] sm:$0xff]  }
 0x694   : > { %v3053_v57 = vpop.f32.mrb[17].mxu1  ;;  %v1158_v58 = vsel %vm869_vm1, %v1151_v56, -inf  ;;  %3105 = vmatprep.subr.bf16.mxu0 %v3406_v24 }
 0x695   : > { %1159 = vmax.xlane.f32.xlu0 %v1158_v58  ;;  %v1154_v59 = vpop.f32.mrb[18].mxu1 }
 0x696   : > { %v3054_v60 = vpop.f32.mrb[19].mxu1  ;;  %v1161_v61 = vsel %vm869_vm1, %v1154_v59, -inf }
 0x697   : > { %1162 = vmax.xlane.f32.xlu1 %v1161_v61 }
 0x699   : > { %1280 = vmax.xlane.f32.xlu0 %v1279_v62 }
 0x69d   : > { %1283 = vmax.xlane.f32.xlu0 %v1282_v63 }
 0x722   : > { %v1160_v0 = vpop.xlane.xlu0 %1159 }
 0x723   : > { %v1164_v1 = vsub.f32 %v1151_v56, %v1160_v0 }
 0x724   : > { %v1163_v3 = vpop.xlane.xlu1 %1162 }
 0x725   : > { %v1166_v7 = vmul.f32 1.442695, %v1164_v1  ;;  %v1165_v9 = vsub.f32 %v1154_v59, %v1163_v3 }
 0x726   : > { %v1281_v4 = vpop.xlane.xlu0 %1280 }
 0x727   : > { %v1285_v5 = vsub.f32 %v1272_v49, %v1281_v4  ;;  %v1168_v13 = vmul.f32 1.442695, %v1165_v9 }
 0x729   : > { %v1287_v10 = vmul.f32 1.442695, %v1285_v5 }
 0x72a   : > { %v1284_v11 = vpop.xlane.xlu0 %1283 }
 0x72b   : > { %3337 = vpow2.f32 %v1287_v10  ;;  %v1286_v12 = vsub.f32 %v1275_v54, %v1284_v11 }
 0x72c   : > { %3339 = vpow2.f32 %v1166_v7 }
 0x72d   : > { %v1289_v14 = vmul.f32 1.442695, %v1286_v12 }
 0x72f   : > { %3341 = vpow2.f32 %v1289_v14 }
 0x730   : > { %3343 = vpow2.f32 %v1168_v13 }
 0x735   : > { %v3338_v15 = vpop.eup %3337 }
 0x736   : > { %v1291_v16 = vsel %vm869_vm1, %v3338_v15, 0.0  ;;  %v3340_v19 = vpop.eup %3339 }
 0x737   : > { %1292 = vadd.xlane.f32.xlu0 %v1291_v16  ;;  %v1170_v23 = vsel %vm869_vm1, %v3340_v19, 0.0 }
 0x739   : > { %v3342_v20 = vpop.eup %3341 }
 0x73a   : > { %v1294_v26 = vsel %vm869_vm1, %v3342_v20, 0.0  ;;  %v3344_v27 = vpop.eup %3343 }
 0x73b   : > { %1171 = vadd.xlane.f32.xlu0 %v1170_v23  ;;  %1295 = vadd.xlane.f32.xlu1 %v1294_v26  ;;  %v1173_v28 = vsel %vm869_vm1, %v3344_v27, 0.0 }
 0x73f   : > { %1174 = vadd.xlane.f32.xlu1 %v1173_v28  ;;  %v3264_v28 = vld [vmem:[%s4072_s8] sm:$0xff]  }
 0x750   : > { %1302 = vrot.lane.b32.xlu1 %v3618_v39, %s4096_s2  ;;  %s4112_s2 = sld [smem:[#allocation3_spill]] }
 0x751   : > { %1181 = vrot.lane.b32.xlu0 %v3618_v39, %s4098_s6 }
 0x754   : > { %3204 = vrot.lane.b32.xlu1 %v3203_v52, %s4089_s26  ;;  %s4114_s26 = smov 96  }
 0x756   : > { %s698_s6 = scalar_lea.vmem %s4112_s2, %s3560_s0 }
 0x757   : > { %v707_v40 = vld [vmem:[%s698_s6] sm:$0xff]  ;;  %v708_v47 = vld [vmem:[%s698_s6 + $0x8] sm:$0xff] }
 0x7c4   : > { %v1293_v29 = vpop.xlane.xlu0 %1292 }
 0x7c8   : > { %v1172_v30 = vpop.xlane.xlu0 %1171  ;;  %v1296_v31 = vpop.xlane.xlu1 %1295 }
 0x7c9   : > { %3345 = vrcp.f32 %v1172_v30 }
 0x7cc   : > { %v1182_v32 = vpop.permute.xlu0 %1181  ;;  %v1175_v33 = vpop.xlane.xlu1 %1174 }
 0x7cd   : > { %3347 = vrcp.f32 %v1175_v33  ;;  %3056 = vmatpush3.bf16.msra.mxu1 %v1182_v32 }
 0x7ce   : > { %3067 = vmatprep.subr.bf16.mxu1 %v3406_v24  ;;  %3349 = vrcp.f32 %v1296_v31 }
 0x7cf   : > { %3351 = vrcp.f32 %v1293_v29  ;;  %v3265_v29 = vld [vmem:[%s4074_s10 + $0x18] sm:$0xff]  }
 0x7d0   : > { %v1303_v42 = vpop.permute.xlu1 %1302 }
 0x7d3   : > { %v3346_v34 = vpop.eup %3345 }
 0x7d4   : > { %v1178_v36 = vmul.f32 %v3346_v34, %v3340_v19  ;;  %v3205_v59 = vpop.permute.xlu1 %3204 }
 0x7d5   : > { %v3207_v61 = vunpack.i.h.bf16 %v3205_v59  ;;  %v3206_v62 = vunpack.i.l.bf16 %v3205_v59 }
 0x7d7   : > { %v3348_v35 = vpop.eup %3347  ;;  %v1374_v3 = vsel %vm869_vm1, %v3650_v8, %v3207_v61  ;;  %v1373_v4 = vsel %vm869_vm1, %v3648_v6, %v3206_v62  ;;  %v2866_v6 = vld [vmem:[%s4111_s30] ss:$0 sm:$0xff] }
 0x7d8   : > { %v1179_v37 = vmul.f32 %v3348_v35, %v3344_v27  ;;  %v3350_v39 = vpop.eup %3349  ;;  %v3261_v27 = vld [vmem:[%s4074_s10] sm:$0xff]  }
 0x7d9   : > { %v3352_v43 = vpop.eup %3351  ;;  %v1300_v44 = vmul.f32 %v3350_v39, %v3342_v20  ;;  %v3267_v39 = vld [vmem:[%s4074_s10 + $0x20] sm:$0xff]  }
 0x7da   : > { %v1180_v41 = vpack.c.bf16 %v1179_v37, %v1178_v36  ;;  %v1299_v38 = vmul.f32 %v3352_v43, %v3338_v15  ;;  %v3269_v43 = vld [vmem:[%s4074_s10 + $0x28] sm:$0xff]  }
 0x7dc   : > { %3058 = vmatmul.mubr.msk.bf16.vlgmr.msra.gmra.mrb[20].mxu1 %vm869_vm1, %v1180_v41  ;;  %v1301_v45 = vpack.c.bf16 %v1300_v44, %v1299_v38  ;;  %v3266_v41 = vld [vmem:[%s4072_s8 + $0x8] sm:$0xff]   ;;  %v3270_v44 = vld [vmem:[%s4072_s8 + $0x18] sm:$0xff]   ;;  %v3271_v38 = vld [vmem:[%s4074_s10 + $0x30] sm:$0xff]  }
 0x7dd   : > { %3068 = vmatpush3.bf16.msra.mxu1 %v1303_v42  ;;  %3069 = vmatprep.mubr.msk.bf16.mxu1 %vm3407_vm0, %v3406_v24  ;;  %v3268_v42 = vld [vmem:[%s4072_s8 + $0x10] sm:$0xff]  }
 0x7de   : > { %3085 = vmatprep.subr.bf16.mxu1 %v3406_v24 }
 0x7e4   : > { %3070 = vmatmul.mubr.msk.bf16.vlgmr.msra.gmra.mrb[24].mxu1 %vm869_vm1, %v1301_v45  ;;  %v3272_v45 = vld [vmem:[%s4072_s8 + $0x20] sm:$0xff]  }
 0x7e5   : > { %3101 = vmatprep.mubr.msk.bf16.mxu1 %vm3407_vm0, %v3406_v24  ;;  %3086 = vmatpush3.bf16.msra.mxu1 %v3264_v28 }
 0x7e6   : > { %3087 = vmatprep.subr.bf16.mxu1 %v3406_v24 }
 0x7e9   : > { %3088 = vmatpush3.bf16.msra.mxu1 %v3266_v41 }
 0x7ea   : > { %3089 = vmatprep.subr.bf16.mxu1 %v3406_v24 }
 0x7ed   : > { %3090 = vmatpush3.bf16.msra.mxu1 %v3268_v42 }
 0x7ee   : > { %3091 = vmatprep.subr.bf16.mxu1 %v3406_v24 }
 0x7f1   : > { %3092 = vmatpush3.bf16.msra.mxu1 %v3270_v44 }
 0x7f2   : > { %3093 = vmatprep.subr.bf16.mxu1 %v3406_v24 }
 0x7f5   : > { %3094 = vmatpush3.bf16.msra.mxu1 %v3272_v45 }
 0x7f6   : > { %3095 = vmatprep.subr.bf16.mxu1 %v3406_v24 }
 0x8af   : > { %v1221_v48 = vpop.f32.mrb[20].mxu1 }
 0x8b0   : > { %v3059_v49 = vpop.f32.mrb[21].mxu1 }
 0x8b1   : > { %v1224_v51 = vpop.f32.mrb[22].mxu1  ;;  %v3274_v49 = vld [vmem:[%s4072_s8 + $0x28] sm:$0xff]  }
 0x8b2   : > { %v3208_v52 = vpack.i.bf16 %v1224_v51, %v1221_v48  ;;  %v3060_v53 = vpop.f32.mrb[23].mxu1  ;;  %v1624_v48 = vpack.c.bf16 %v708_v47, %v707_v40  ;;  %3096 = vmatpush3.bf16.msra.mxu1 %v3274_v49  ;;  %v3276_v51 = vld [vmem:[%s4072_s8 + $0x38] sm:$0xff]  }
 0x8b3   : > { %3097 = vmatprep.subr.bf16.mxu1 %v3406_v24 }
 0x8b4   : > { %3209 = vrot.lane.b32.xlu0 %v3208_v52, %s4094_s25  ;;  %s4113_s25 = sld [smem:[#allocation8_spill]] }
 0x8b6   : > { %3098 = vmatpush3.bf16.msra.mxu1 %v3275_v50 }
 0x8b7   : > { %v1342_v54 = vpop.f32.mrb[24].mxu1  ;;  %3099 = vmatprep.subr.bf16.mxu1 %v3406_v24 }
 0x8b8   : > { %v3071_v55 = vpop.f32.mrb[25].mxu1 }
 0x8b9   : > { %v1345_v56 = vpop.f32.mrb[26].mxu1 }
 0x8ba   : > { %v3213_v57 = vpack.i.bf16 %v1345_v56, %v1342_v54  ;;  %v3072_v58 = vpop.f32.mrb[27].mxu1  ;;  %3100 = vmatpush3.bf16.msra.mxu1 %v3276_v51 }
 0x8bb   : > { %3125 = vmatprep.subr.bf16.mxu1 %v3406_v24 }
 0x8bc   : > { %3214 = vrot.lane.b32.xlu1 %v3213_v57, %s4092_s5  ;;  %s4115_s5 = smov 80  }
 0x926   : > { %v3210_v60 = vpop.permute.xlu0 %3209 }
 0x927   : > { %v3212_v63 = vunpack.i.h.bf16 %v3210_v60  ;;  %v3211_v0 = vunpack.i.l.bf16 %v3210_v60  ;;  %v2867_v60 = vld [vmem:[%s4113_s25] ss:$0 sm:$0xff]  ;;  %s4118_s25 = smov 16  }
 0x929   : > { %v1377_v9 = vsel %vm1375_vm2, %v1374_v3, %v3212_v63  ;;  %v1376_v10 = vsel %vm1375_vm2, %v1373_v4, %v3211_v0  ;;  %v2868_v0 = vld [vmem:[%s4071_s7] ss:$0 sm:$0xff] }
 0x92e   : > { %v3215_v1 = vpop.permute.xlu1 %3214 }
 0x92f   : > { %v3217_v5 = vunpack.i.h.bf16 %v3215_v1  ;;  %v3216_v7 = vunpack.i.l.bf16 %v3215_v1 }
 0x931   : > { %v1380_v11 = vsel %vm1378_vm3, %v1377_v9, %v3217_v5  ;;  %v1379_v12 = vsel %vm1378_vm3, %v1376_v10, %v3216_v7  ;;  %v2878_v7 = vld [vmem:[%s4075_s11] ss:$0 sm:$0xff] }
 0x932   : > { %v1381_v13 = vpack.c.bf16 %v1380_v11, %v1379_v12 }
 0x934   : > { %3082 = vmatmul.mubr.msk.bf16.vlgmr.msra.gmra.mrb[8].mxu0 %vm1414_vm4, %v1381_v13 }
 0x935   : > { %3121 = vmatprep.mubr.msk.bf16.mxu0 %vm3407_vm0, %v3406_v24  ;;  %3106 = vmatpush3.bf16.msra.mxu0 %v3261_v27 }
 0x936   : > { %3107 = vmatprep.subr.bf16.mxu0 %v3406_v24 }
 0xa07   : > { %v1452_v8 = vpop.f32.mrb[8].mxu0 }
 0xa08   : > { %v1459_v14 = vadd.f32 %v1452_v8, %v3593_v17  ;;  %v3083_v15 = vpop.f32.mrb[9].mxu0  ;;  %v3262_v17 = vld [vmem:[%s4074_s10 + $0x8] sm:$0xff]  }
 0xa09   : > { %v1455_v16 = vpop.f32.mrb[10].mxu0  ;;  %3108 = vmatpush3.bf16.msra.mxu0 %v3262_v17 }
 0xa0a   : > { %v1460_v19 = vadd.f32 %v1455_v16, %v3595_v18  ;;  %v3084_v20 = vpop.f32.mrb[11].mxu0  ;;  %v1468_v23 = vadd.f32 %v2866_v6, %v1459_v14  ;;  %v3263_v18 = vld [vmem:[%s4074_s10 + $0x10] sm:$0xff]   ;;  %3109 = vmatprep.subr.bf16.mxu0 %v3406_v24 }
 0xa0c   : > { %1472 = vadd.xlane.f32.xlu0 %v1468_v23  ;;  %v1469_v26 = vadd.f32 %v2866_v6, %v1460_v19  ;;  %v2869_v19 = vld [vmem:[%s4073_s9] ss:$0 sm:$0xff] }
 0xa0d   : > { %3110 = vmatpush3.bf16.msra.mxu0 %v3263_v18 }
 0xa0e   : > { %1474 = vadd.xlane.f32.xlu1 %v1469_v26  ;;  %3111 = vmatprep.subr.bf16.mxu0 %v3406_v24 }
 0xa11   : > { %3112 = vmatpush3.bf16.msra.mxu0 %v3265_v29 }
 0xa12   : > { %3113 = vmatprep.subr.bf16.mxu0 %v3406_v24 }
 0xa15   : > { %3114 = vmatpush3.bf16.msra.mxu0 %v3267_v39 }
 0xa16   : > { %3115 = vmatprep.subr.bf16.mxu0 %v3406_v24 }
 0xa19   : > { %3116 = vmatpush3.bf16.msra.mxu0 %v3269_v43 }
 0xa1a   : > { %3117 = vmatprep.subr.bf16.mxu0 %v3406_v24 }
 0xa1d   : > { %3118 = vmatpush3.bf16.msra.mxu0 %v3271_v38 }
 0xa1e   : > { %3119 = vmatprep.subr.bf16.mxu0 %v3406_v24 }
 0xa21   : > { %3120 = vmatpush3.bf16.msra.mxu0 %v3273_v46 }
 0xa22   : > { %3137 = vmatprep.subr.bf16.mxu0 %v3406_v24 }
 0xa24   : > { %3122 = vmatmul.mubr.bf16.vlgmr.msra.gmra.mrb[12].mxu0 %v1624_v48 }
 0xa25   : > { %3139 = vmatprep.mubr.msk.bf16.mxu0 %vm3407_vm0, %v3406_v24 }
 0xa99   : > { %v1473_v30 = vpop.xlane.xlu0 %1472 }
 0xa9a   : > { %v1477_v31 = vmul.f32 0.0078125, %v1473_v30 }
 0xa9b   : > { %v1475_v32 = vpop.xlane.xlu1 %1474 }
 0xa9c   : > { %v1479_v33 = vsub.f32 %v1468_v23, %v1477_v31  ;;  %v1478_v34 = vmul.f32 0.0078125, %v1475_v32 }
 0xa9e   : > { %v1480_v35 = vsub.f32 %v1469_v26, %v1478_v34  ;;  %v1481_v36 = vmul.f32 %v1479_v33, %v1479_v33 }
 0xaa0   : > { %1483 = vadd.xlane.f32.xlu0 %v1481_v36  ;;  %v1482_v37 = vmul.f32 %v1480_v35, %v1480_v35 }
 0xaa4   : > { %1485 = vadd.xlane.f32.xlu0 %v1482_v37 }
 0xaf7   : > { %v1730_v9 = vpop.f32.mrb[12].mxu0 }
 0xaf8   : > { %v1731_v10 = vadd.f32 %v2878_v7, %v1730_v9  ;;  %v3123_v11 = vpop.f32.mrb[13].mxu0 }
 0xaf9   : > { %v1733_v12 = vpop.f32.mrb[14].mxu0 }
 0xafa   : > { %v1734_v13 = vadd.f32 %v2878_v7, %v1733_v12  ;;  %v3124_v8 = vpop.f32.mrb[15].mxu0 }
 0xafc   : > { %v3822_v6 = vpack.c.bf16 %v1734_v13, %v1731_v10 }
 0xafe   : > { %1862 = vrot.lane.b32.xlu1 %v3822_v6, %s3410_s24  ;;  %v1745_v14 = vsel %vm869_vm1, %v3822_v6, 0 }
 0xb02   : > { %1983 = vrot.lane.b32.xlu1 %v3822_v6, %s4114_s26 }
 0xb2d   : > { %v1484_v52 = vpop.xlane.xlu0 %1483 }
 0xb2e   : > { %v1487_v53 = vmul.f32 0.0078125, %v1484_v52 }
 0xb30   : > { %v1489_v54 = vadd.f32 1e-05, %v1487_v53 }
 0xb31   : > { %v1486_v55 = vpop.xlane.xlu0 %1485 }
 0xb32   : > { %3353 = vrsqrt.f32 %v1489_v54  ;;  %v1488_v56 = vmul.f32 0.0078125, %v1486_v55 }
 0xb34   : > { %v1490_v57 = vadd.f32 1e-05, %v1488_v56 }
 0xb36   : > { %3355 = vrsqrt.f32 %v1490_v57 }
 0xb3c   : > { %v3354_v58 = vpop.eup %3353 }
 0xb3d   : > { %v1493_v59 = vmul.f32 %v3354_v58, %v1479_v33 }
 0xb3f   : > { %v1501_v63 = vmul.f32 %v2867_v60, %v1493_v59 }
 0xb40   : > { %v3356_v61 = vpop.eup %3355 }
 0xb41   : > { %v1494_v62 = vmul.f32 %v3356_v61, %v1480_v35  ;;  %v3811_v3 = vadd.f32 %v2868_v0, %v1501_v63 }
 0xb43   : > { %v1502_v1 = vmul.f32 %v2867_v60, %v1494_v62 }
 0xb45   : > { %v3813_v4 = vadd.f32 %v2868_v0, %v1502_v1 }
 0xb47   : > { %v1511_v5 = vpack.c.bf16 %v3813_v4, %v3811_v3 }
 0xb49   : > { %3102 = vmatmul.mubr.bf16.vlgmr.msra.gmra.mrb[28].mxu1 %v1511_v5 }
 0xb4a   : > { %3127 = vmatprep.mubr.msk.bf16.mxu1 %vm3407_vm0, %v3406_v24  ;;  %3126 = vmatpush3.bf16.xpose.msra.mxu1 %v1745_v14 }
 0xb4b   : > { %3131 = vmatprep.subr.bf16.mxu1 %v3406_v24 }
 0xb70   : > { %v1863_v15 = vpop.permute.xlu1 %1862 }
 0xb71   : > { %v1868_v16 = vsel %vm869_vm1, %v1863_v15, 0 }
 0xb72   : > { %3138 = vmatpush3.bf16.xpose.msra.mxu0 %v1868_v16 }
 0xb73   : > { %3149 = vmatprep.subr.bf16.mxu0 %v3406_v24 }
 0xb74   : > { %v1984_v31 = vpop.permute.xlu1 %1983 }
 0xb75   : > { %v1989_v33 = vsel %vm869_vm1, %v1984_v31, 0 }
 0xc1c   : > { %v1617_v20 = vpop.f32.mrb[28].mxu1 }
 0xc1d   : > { %v1618_v23 = vadd.f32 %v2869_v19, %v1617_v20  ;;  %v3103_v26 = vpop.f32.mrb[29].mxu1 }
 0xc1e   : > { %v1620_v27 = vpop.f32.mrb[30].mxu1 }
 0xc1f   : > { %v1621_v28 = vadd.f32 %v2869_v19, %v1620_v27  ;;  %v3104_v17 = vpop.f32.mrb[31].mxu1  ;;  %v1737_v18 = vmul.f32 0.25, %v1618_v23 }
 0xc21   : > { %v1738_v29 = vmul.f32 0.25, %v1621_v28 }
 0xc23   : > { %v1739_v30 = vpack.c.bf16 %v1738_v29, %v1737_v18 }
 0xc25   : > { %1981 = vrot.lane.b32.xlu1 %v1739_v30, %s4114_s26  ;;  %1860 = vrot.lane.b32.xlu0 %v1739_v30, %s3410_s24  ;;  %s4116_s24 = smov 64  }
 0xc26   : > { %3128 = vmatmul.mubr.msk.bf16.vlgmr.msra.gmra.mrb[32].mxu1 %vm869_vm1, %v1739_v30 }
 0xc27   : > { %3133 = vmatprep.mubr.msk.bf16.mxu1 %vm3407_vm0, %v3406_v24 }
 0xc29   : > { %2102 = vrot.lane.b32.xlu1 %v1739_v30, %s4115_s5  ;;  %2104 = vrot.lane.b32.xlu0 %v3822_v6, %s4115_s5 }
 0xc97   : > { %v1861_v32 = vpop.permute.xlu0 %1860  ;;  %v1982_v35 = vpop.permute.xlu1 %1981 }
 0xc98   : > { %3140 = vmatmul.mubr.msk.bf16.vlgmr.msra.gmra.mrb[16].mxu0 %vm869_vm1, %v1861_v32 }
 0xc99   : > { %3150 = vmatpush3.bf16.xpose.msra.mxu0 %v1989_v33  ;;  %3151 = vmatprep.mubr.msk.bf16.mxu0 %vm3407_vm0, %v3406_v24 }
 0xc9a   : > { %3161 = vmatprep.subr.bf16.mxu0 %v3406_v24 }
 0xc9b   : > { %v2105_v34 = vpop.permute.xlu0 %2104  ;;  %v2103_v37 = vpop.permute.xlu1 %2102 }
 0xc9c   : > { %v2110_v36 = vsel %vm869_vm1, %v2105_v34, 0 }
 0xca0   : > { %3152 = vmatmul.mubr.msk.bf16.vlgmr.msra.gmra.mrb[20].mxu0 %vm869_vm1, %v1982_v35 }
 0xca1   : > { %3162 = vmatpush3.bf16.xpose.msra.mxu0 %v2110_v36  ;;  %3163 = vmatprep.mubr.msk.bf16.mxu0 %vm3407_vm0, %v3406_v24 }
 0xca2   : > { %3173 = vmatprep.subr.bf16.mxu0 %v3406_v24 }
 0xca8   : > { %3164 = vmatmul.mubr.msk.bf16.vlgmr.msra.gmra.mrb[24].mxu0 %vm869_vm1, %v2103_v37 }
 0xca9   : > { %3181 = vmatprep.mubr.msk.bf16.mxu0 %vm3407_vm0, %v3406_v24 }
 0xcf9   : > { %v1781_v41 = vpop.f32.mrb[32].mxu1 }
 0xcfa   : > { %v3129_v39 = vpop.f32.mrb[33].mxu1  ;;  %v1788_v42 = vsel %vm869_vm1, %v1781_v41, -inf }
 0xcfb   : > { %1789 = vmax.xlane.f32.xlu0 %v1788_v42  ;;  %v1784_v43 = vpop.f32.mrb[34].mxu1 }
 0xcfc   : > { %v3130_v44 = vpop.f32.mrb[35].mxu1  ;;  %v1791_v38 = vsel %vm869_vm1, %v1784_v43, -inf }
 0xcfd   : > { %1792 = vmax.xlane.f32.xlu1 %v1791_v38 }
 0xd6b   : > { %v1904_v45 = vpop.f32.mrb[16].mxu0 }
 0xd6c   : > { %v3141_v46 = vpop.f32.mrb[17].mxu0  ;;  %v1911_v40 = vsel %vm869_vm1, %v1904_v45, -inf }
 0xd6d   : > { %v1907_v47 = vpop.f32.mrb[18].mxu0  ;;  %1912 = vmax.xlane.f32.xlu0 %v1911_v40 }
 0xd6e   : > { %v3142_v48 = vpop.f32.mrb[19].mxu0  ;;  %v1914_v49 = vsel %vm869_vm1, %v1907_v47, -inf }
 0xd71   : > { %1915 = vmax.xlane.f32.xlu0 %v1914_v49 }
 0xd73   : > { %v2025_v50 = vpop.f32.mrb[20].mxu0 }
 0xd74   : > { %v3153_v51 = vpop.f32.mrb[21].mxu0  ;;  %v2032_v52 = vsel %vm869_vm1, %v2025_v50, -inf }
 0xd75   : > { %v2028_v53 = vpop.f32.mrb[22].mxu0  ;;  %2033 = vmax.xlane.f32.xlu1 %v2032_v52 }
 0xd76   : > { %v3154_v54 = vpop.f32.mrb[23].mxu0  ;;  %v2035_v55 = vsel %vm869_vm1, %v2028_v53, -inf }
 0xd77   : > { %2036 = vmax.xlane.f32.xlu0 %v2035_v55 }
 0xd7b   : > { %v2146_v56 = vpop.f32.mrb[24].mxu0 }
 0xd7c   : > { %v3165_v57 = vpop.f32.mrb[25].mxu0  ;;  %v2153_v58 = vsel %vm869_vm1, %v2146_v56, -inf }
 0xd7d   : > { %v2149_v59 = vpop.f32.mrb[26].mxu0  ;;  %2154 = vmax.xlane.f32.xlu1 %v2153_v58 }
 0xd7e   : > { %v3166_v60 = vpop.f32.mrb[27].mxu0  ;;  %v2156_v61 = vsel %vm869_vm1, %v2149_v59, -inf }
 0xd7f   : > { %2157 = vmax.xlane.f32.xlu0 %v2156_v61 }
 0xd88   : > { %v1790_v5 = vpop.xlane.xlu0 %1789 }
 0xd89   : > { %v1794_v9 = vsub.f32 %v1781_v41, %v1790_v5 }
 0xd8a   : > { %v1793_v62 = vpop.xlane.xlu1 %1792 }
 0xd8b   : > { %v1795_v63 = vsub.f32 %v1784_v43, %v1793_v62  ;;  %v1796_v10 = vmul.f32 1.442695, %v1794_v9 }
 0xd8d   : > { %v1798_v0 = vmul.f32 1.442695, %v1795_v63 }
 0xd8e   : > { %1812 = vrot.lane.b32.xlu1 %v3822_v6, %s4116_s24 }
 0xd8f   : > { %3357 = vpow2.f32 %v1798_v0 }
 0xd90   : > { %3359 = vpow2.f32 %v1796_v10 }
 0xd99   : > { %v3867_v1 = vpop.eup %3357 }
 0xd9a   : > { %v1803_v7 = vsel %vm869_vm1, %v3867_v1, 0.0  ;;  %v3360_v11 = vpop.eup %3359 }
 0xd9b   : > { %1804 = vadd.xlane.f32.xlu0 %v1803_v7  ;;  %v1800_v12 = vsel %vm869_vm1, %v3360_v11, 0.0 }
 0xdb2   : > { %1801 = vadd.xlane.f32.xlu1 %v1800_v12 }
 0xdfa   : > { %v1913_v13 = vpop.xlane.xlu0 %1912 }
 0xdfb   : > { %v1917_v8 = vsub.f32 %v1904_v45, %v1913_v13 }
 0xdfd   : > { %v1919_v14 = vmul.f32 1.442695, %v1917_v8 }
 0xdfe   : > { %v1916_v15 = vpop.xlane.xlu0 %1915 }
 0xdff   : > { %3361 = vpow2.f32 %v1919_v14  ;;  %v1918_v16 = vsub.f32 %v1907_v47, %v1916_v15 }
 0xe01   : > { %v1921_v19 = vmul.f32 1.442695, %v1918_v16 }
 0xe02   : > { %v2034_v20 = vpop.xlane.xlu1 %2033 }
 0xe03   : > { %3363 = vpow2.f32 %v1921_v19  ;;  %v2038_v23 = vsub.f32 %v2025_v50, %v2034_v20 }
 0xe04   : > { %v2037_v26 = vpop.xlane.xlu0 %2036 }
 0xe05   : > { %v2040_v27 = vmul.f32 1.442695, %v2038_v23  ;;  %v2039_v28 = vsub.f32 %v2028_v53, %v2037_v26 }
 0xe07   : > { %3365 = vpow2.f32 %v2040_v27  ;;  %v2042_v17 = vmul.f32 1.442695, %v2039_v28  ;;  %v3277_v27 = vld [vmem:[%s4076_s12] sm:$0xff]  }
 0xe08   : > { %3174 = vmatpush3.bf16.msra.mxu0 %v3277_v27  ;;  %v3293_v27 = vld [vmem:[%s4080_s16 + $0x40] ss:$8 sps:$4 sm:$0xff]  }
 0xe09   : > { %v3362_v18 = vpop.eup %3361  ;;  %3367 = vpow2.f32 %v2042_v17  ;;  %3175 = vmatprep.subr.bf16.mxu0 %v3406_v24 }
 0xe0a   : > { %v2155_v29 = vpop.xlane.xlu1 %2154  ;;  %v1923_v30 = vsel %vm869_vm1, %v3362_v18, 0.0 }
 0xe0b   : > { %v2159_v31 = vsub.f32 %v2146_v56, %v2155_v29  ;;  %1924 = vadd.xlane.f32.xlu1 %v1923_v30 }
 0xe0c   : > { %v2158_v32 = vpop.xlane.xlu0 %2157 }
 0xe0d   : > { %v3364_v33 = vpop.eup %3363  ;;  %v2161_v34 = vmul.f32 1.442695, %v2159_v31  ;;  %v2160_v35 = vsub.f32 %v2149_v59, %v2158_v32  ;;  %v3279_v31 = vld [vmem:[%s4076_s12 + $0x10] sm:$0xff]  }
 0xe0e   : > { %v1813_v36 = vpop.permute.xlu1 %1812  ;;  %v1926_v37 = vsel %vm869_vm1, %v3364_v33, 0.0 }
 0xe0f   : > { %3369 = vpow2.f32 %v2161_v34  ;;  %v2163_v41 = vmul.f32 1.442695, %v2160_v35  ;;  %1927 = vadd.xlane.f32.xlu0 %v1926_v37  ;;  %3132 = vmatpush3.bf16.msra.mxu1 %v1813_v36  ;;  %v3280_v34 = vld [vmem:[%s4076_s12 + $0x18] sm:$0xff]  }
 0xe10   : > { %3143 = vmatprep.subr.bf16.mxu1 %v3406_v24 }
 0xe11   : > { %v3366_v39 = vpop.eup %3365  ;;  %3371 = vpow2.f32 %v2163_v41 }
 0xe12   : > { %v2044_v42 = vsel %vm869_vm1, %v3366_v39, 0.0 }
 0xe13   : > { %v3368_v43 = vpop.eup %3367  ;;  %2045 = vadd.xlane.f32.xlu1 %v2044_v42 }
 0xe14   : > { %v2047_v44 = vsel %vm869_vm1, %v3368_v43, 0.0 }
 0xe15   : > { %2048 = vadd.xlane.f32.xlu0 %v2047_v44 }
 0xe19   : > { %v3370_v38 = vpop.eup %3369 }
 0xe1a   : > { %v2165_v45 = vsel %vm869_vm1, %v3370_v38, 0.0 }
 0xe1b   : > { %v3372_v46 = vpop.eup %3371  ;;  %2166 = vadd.xlane.f32.xlu1 %v2165_v45 }
 0xe1c   : > { %v2168_v40 = vsel %vm869_vm1, %v3372_v46, 0.0 }
 0xe1d   : > { %2169 = vadd.xlane.f32.xlu0 %v2168_v40 }
 0xe28   : > { %v1805_v47 = vpop.xlane.xlu0 %1804 }
 0xe29   : > { %3373 = vrcp.f32 %v1805_v47 }
 0xe2c   : > { %2055 = vrot.lane.b32.xlu1 %v3822_v6, %s4117_s23 }
 0xe30   : > { %2176 = vrot.lane.b32.xlu1 %v3822_v6, %s4118_s25 }
 0xe33   : > { %1934 = vrot.lane.b32.xlu0 %v3822_v6, %s4119_s28  ;;  %v3374_v49 = vpop.eup %3373 }
 0xe34   : > { %v1809_v51 = vmul.f32 %v3374_v49, %v3867_v1 }
 0xe3f   : > { %v1802_v48 = vpop.xlane.xlu1 %1801 }
 0xe40   : > { %3375 = vrcp.f32 %v1802_v48 }
 0xe4a   : > { %v3376_v50 = vpop.eup %3375 }
 0xe4b   : > { %v1808_v52 = vmul.f32 %v3376_v50, %v3360_v11 }
 0xe4d   : > { %v1810_v53 = vpack.c.bf16 %v1809_v51, %v1808_v52 }
 0xe4f   : > { %3134 = vmatmul.mubr.msk.bf16.vlgmr.msra.gmra.mrb[36].mxu1 %vm869_vm1, %v1810_v53 }
 0xe50   : > { %3145 = vmatprep.mubr.msk.bf16.mxu1 %vm3407_vm0, %v3406_v24 }
 0xe98   : > { %v1925_v55 = vpop.xlane.xlu1 %1924 }
 0xe9c   : > { %v1928_v54 = vpop.xlane.xlu0 %1927 }
 0xe9d   : > { %3377 = vrcp.f32 %v1928_v54 }
 0xe9e   : > { %3379 = vrcp.f32 %v1925_v55 }
 0xea0   : > { %v2046_v56 = vpop.xlane.xlu1 %2045 }
 0xea2   : > { %v2049_v6 = vpop.xlane.xlu0 %2048 }
 0xea3   : > { %3381 = vrcp.f32 %v2049_v6 }
 0xea4   : > { %3383 = vrcp.f32 %v2046_v56 }
 0xea7   : > { %v3378_v57 = vpop.eup %3377 }
 0xea8   : > { %v3380_v59 = vpop.eup %3379  ;;  %v1932_v60 = vmul.f32 %v3378_v57, %v3364_v33  ;;  %v2167_v61 = vpop.xlane.xlu1 %2166 }
 0xea9   : > { %v1931_v62 = vmul.f32 %v3380_v59, %v3362_v18  ;;  %v3278_v18 = vld [vmem:[%s4076_s12 + $0x8] sm:$0xff]  }
 0xeaa   : > { %v2170_v58 = vpop.xlane.xlu0 %2169  ;;  %3176 = vmatpush3.bf16.msra.mxu0 %v3278_v18  ;;  %v3301_v18 = vld [vmem:[%s4080_s16 + $0x64] ss:$8 sps:$4 sm:$0xff]  }
 0xeab   : > { %3385 = vrcp.f32 %v2170_v58  ;;  %v1933_v0 = vpack.c.bf16 %v1932_v60, %v1931_v62  ;;  %3177 = vmatprep.subr.bf16.mxu0 %v3406_v24  ;;  %v2900_v58 = vld [vmem:[%s4077_s13] ss:$0 sm:$0xff] }
 0xeac   : > { %3387 = vrcp.f32 %v2167_v61  ;;  %v2056_v5 = vpop.permute.xlu1 %2055 }
 0xead   : > { %v3382_v1 = vpop.eup %3381 }
 0xeae   : > { %v1935_v63 = vpop.permute.xlu0 %1934  ;;  %v3384_v7 = vpop.eup %3383  ;;  %v2053_v9 = vmul.f32 %v3382_v1, %v3368_v43  ;;  %3178 = vmatpush3.bf16.msra.mxu0 %v3279_v31  ;;  %v3305_v31 = vld [vmem:[%s4082_s18 + $0x40] sm:$0xff]  }
 0xeaf   : > { %3144 = vmatpush3.bf16.msra.mxu1 %v1935_v63  ;;  %v2052_v10 = vmul.f32 %v3384_v7, %v3366_v39  ;;  %3179 = vmatprep.subr.bf16.mxu0 %v3406_v24  ;;  %v3283_v7 = vld [vmem:[%s4080_s16 + $0x4] ss:$8 sps:$4 sm:$0xff]  }
 0xeb0   : > { %3155 = vmatprep.subr.bf16.mxu1 %v3406_v24  ;;  %v2177_v13 = vpop.permute.xlu1 %2176 }
 0xeb1   : > { %v2054_v11 = vpack.c.bf16 %v2053_v9, %v2052_v10 }
 0xeb2   : > { %3146 = vmatmul.mubr.msk.bf16.vlgmr.msra.gmra.mrb[40].mxu1 %vm869_vm1, %v1933_v0  ;;  %3180 = vmatpush3.bf16.msra.mxu0 %v3280_v34  ;;  %v3308_v34 = vld [vmem:[%s4082_s18 + $0x8] sm:$0xff]  }
 0xeb3   : > { %3156 = vmatpush3.bf16.msra.mxu1 %v2056_v5  ;;  %3157 = vmatprep.mubr.msk.bf16.mxu1 %vm3407_vm0, %v3406_v24  ;;  %v3281_v5 = vld [vmem:[%s4080_s16] ss:$8 sps:$4 sm:$0xff]  }
 0xeb4   : > { %3167 = vmatprep.subr.bf16.mxu1 %v3406_v24  ;;  %3003 = vmatprep.subr.bf16.mxu0 %v3305_v31 }
 0xeb5   : > { %v3386_v12 = vpop.eup %3385 }
 0xeb6   : > { %v3388_v8 = vpop.eup %3387  ;;  %v2174_v14 = vmul.f32 %v3386_v12, %v3372_v46 }
 0xeb7   : > { %v2173_v15 = vmul.f32 %v3388_v8, %v3370_v38 }
 0xeb9   : > { %v2175_v16 = vpack.c.bf16 %v2174_v14, %v2173_v15 }
 0xeba   : > { %3158 = vmatmul.mubr.msk.bf16.vlgmr.msra.gmra.mrb[44].mxu1 %vm869_vm1, %v2054_v11 }
 0xebb   : > { %3168 = vmatpush3.bf16.msra.mxu1 %v2177_v13  ;;  %3169 = vmatprep.mubr.msk.bf16.mxu1 %vm3407_vm0, %v3406_v24 }
 0xebc   : > { %2490 = vmatprep.subr.bf16.mxu1 %v3283_v7 }
 0xec2   : > { %3170 = vmatmul.mubr.msk.bf16.vlgmr.msra.gmra.mrb[48].mxu1 %vm869_vm1, %v2175_v16  ;;  %v3289_v16 = vld [vmem:[%s4080_s16 + $0x24] ss:$8 sps:$4 sm:$0xff]  }
 0xec3   : > { %2522 = vmatprep.mubr.bf16.mxu1 %v3405_v2  ;;  %2491 = vmatpush1.bf16.msra.mxu1 %v3281_v5 }
 0xf22   : > { %v1852_v19 = vpop.f32.mrb[36].mxu1 }
 0xf23   : > { %v3135_v20 = vpop.f32.mrb[37].mxu1 }
 0xf24   : > { %v1855_v23 = vpop.f32.mrb[38].mxu1  ;;  %v3292_v20 = vld [vmem:[%s4080_s16 + $0x34] ss:$8 sps:$4 sm:$0xff]  }
 0xf25   : > { %v3136_v26 = vpop.f32.mrb[39].mxu1 }
 0xf26   : > { %v3295_v26 = vld [vmem:[%s4080_s16 + $0x44] ss:$8 sps:$4 sm:$0xff]  }
 0xf85   : > { %v1974_v28 = vpop.f32.mrb[40].mxu1 }
 0xf86   : > { %v3147_v17 = vpop.f32.mrb[41].mxu1 }
 0xf87   : > { %v1977_v29 = vpop.f32.mrb[42].mxu1  ;;  %v3296_v17 = vld [vmem:[%s4080_s16 + $0x50] ss:$8 sps:$4 sm:$0xff]  }
 0xf88   : > { %v3218_v30 = vpack.i.bf16 %v1977_v29, %v1974_v28  ;;  %v3148_v2 = vpop.f32.mrb[43].mxu1  ;;  %v3298_v28 = vld [vmem:[%s4080_s16 + $0x54] ss:$8 sps:$4 sm:$0xff]   ;;  %v3299_v29 = vld [vmem:[%s4080_s16 + $0x60] ss:$8 sps:$4 sm:$0xff]  }
 0xf89   : > { %v3302_v2 = vld [vmem:[%s4080_s16 + $0x70] ss:$8 sps:$4 sm:$0xff]  }
 0xf8a   : > { %3219 = vrot.lane.b32.xlu0 %v3218_v30, %s4118_s25  ;;  %v3304_v30 = vld [vmem:[%s4080_s16 + $0x74] ss:$8 sps:$4 sm:$0xff]  }
 0xf8d   : > { %v2095_v32 = vpop.f32.mrb[44].mxu1 }
 0xf8e   : > { %v3159_v33 = vpop.f32.mrb[45].mxu1 }
 0xf8f   : > { %v2098_v35 = vpop.f32.mrb[46].mxu1  ;;  %v3307_v33 = vld [vmem:[%s4082_s18 + $0x48] sm:$0xff]  }
 0xf90   : > { %v3223_v36 = vpack.i.bf16 %v2098_v35, %v2095_v32  ;;  %v3160_v37 = vpop.f32.mrb[47].mxu1  ;;  %v3306_v32 = vld [vmem:[%s4082_s18] sm:$0xff]   ;;  %v3309_v35 = vld [vmem:[%s4082_s18 + $0x50] sm:$0xff]  }
 0xf91   : > { %v3311_v37 = vld [vmem:[%s4082_s18 + $0x58] sm:$0xff]  }
 0xf92   : > { %3224 = vrot.lane.b32.xlu1 %v3223_v36, %s4117_s23  ;;  %v3310_v36 = vld [vmem:[%s4082_s18 + $0x10] sm:$0xff]  }
 0xf95   : > { %v2216_v41 = vpop.f32.mrb[48].mxu1 }
 0xf96   : > { %v3171_v39 = vpop.f32.mrb[49].mxu1 }
 0xf97   : > { %v2219_v42 = vpop.f32.mrb[50].mxu1  ;;  %v3313_v39 = vld [vmem:[%s4082_s18 + $0x60] sm:$0xff]  }
 0xf98   : > { %v3228_v43 = vpack.i.bf16 %v2219_v42, %v2216_v41  ;;  %v3172_v44 = vpop.f32.mrb[51].mxu1  ;;  %v3312_v41 = vld [vmem:[%s4082_s18 + $0x18] sm:$0xff]   ;;  %v3314_v42 = vld [vmem:[%s4082_s18 + $0x20] sm:$0xff]  }
 0xf9a   : > { %3229 = vrot.lane.b32.xlu0 %v3228_v43, %s4119_s28  ;;  %v3315_v43 = vld [vmem:[%s4082_s18 + $0x68] sm:$0xff]  }
 0xffc   : > { %v3220_v38 = vpop.permute.xlu0 %3219 }
 0xffd   : > { %v3222_v45 = vunpack.i.h.bf16 %v3220_v38  ;;  %v3221_v46 = vunpack.i.l.bf16 %v3220_v38 }
 0xfff   : > { %v2248_v49 = vsel %vm869_vm1, %v1855_v23, %v3222_v45  ;;  %v2247_v50 = vsel %vm869_vm1, %v1852_v19, %v3221_v46  ;;  %v3287_v19 = vld [vmem:[%s4080_s16 + $0x20] ss:$8 sps:$4 sm:$0xff]   ;;  %v3290_v23 = vld [vmem:[%s4080_s16 + $0x30] ss:$8 sps:$4 sm:$0xff]  }
0x1004   : > { %v3225_v24 = vpop.permute.xlu1 %3224 }
0x1005   : > { %v3227_v40 = vunpack.i.h.bf16 %v3225_v24  ;;  %v3226_v47 = vunpack.i.l.bf16 %v3225_v24 }
0x1007   : > { %v2250_v53 = vsel %vm1375_vm2, %v2248_v49, %v3227_v40  ;;  %v2249_v54 = vsel %vm1375_vm2, %v2247_v50, %v3226_v47 }
0x100c   : > { %v3230_v48 = vpop.permute.xlu0 %3229 }
0x100d   : > { %v3232_v51 = vunpack.i.h.bf16 %v3230_v48  ;;  %v3231_v52 = vunpack.i.l.bf16 %v3230_v48  ;;  %v2901_v48 = vld [vmem:[%s4078_s14] ss:$0 sm:$0xff] }
0x100f   : > { %v2252_v55 = vsel %vm1378_vm3, %v2250_v53, %v3232_v51  ;;  %v2251_v6 = vsel %vm1378_vm3, %v2249_v54, %v3231_v52  ;;  %v2902_v53 = vld [vmem:[%s4079_s15] ss:$0 sm:$0xff] }
0x1010   : > { %v2253_v56 = vpack.c.bf16 %v2252_v55, %v2251_v6 }
0x1012   : > { %3182 = vmatmul.mubr.msk.bf16.vlgmr.msra.gmra.mrb[28].mxu0 %vm1414_vm4, %v2253_v56 }
0x1013   : > { %3004 = vmatpush3.bf16.msra.mxu0 %v3306_v32 }
0x1014   : > { %3005 = vmatprep.subr.bf16.mxu0 %v3307_v33 }
0x1017   : > { %3006 = vmatpush3.bf16.msra.mxu0 %v3308_v34 }
0x1018   : > { %3007 = vmatprep.subr.bf16.mxu0 %v3309_v35 }
0x101b   : > { %3008 = vmatpush3.bf16.msra.mxu0 %v3310_v36 }
0x101c   : > { %3009 = vmatprep.subr.bf16.mxu0 %v3311_v37 }
0x101f   : > { %3010 = vmatpush3.bf16.msra.mxu0 %v3312_v41 }
0x1020   : > { %3011 = vmatprep.subr.bf16.mxu0 %v3313_v39 }
0x1023   : > { %3012 = vmatpush3.bf16.msra.mxu0 %v3314_v42 }
0x1024   : > { %3013 = vmatprep.subr.bf16.mxu0 %v3315_v43 }
0x10e5   : > { %v2323_v57 = vpop.f32.mrb[28].mxu0 }
0x10e6   : > { %v2330_v59 = vadd.f32 %v2323_v57, %v3811_v3  ;;  %v3183_v60 = vpop.f32.mrb[29].mxu0  ;;  %v3286_v3 = vld [vmem:[%s4080_s16 + $0x14] ss:$8 sps:$4 sm:$0xff]   ;;  %v3316_v57 = vld [vmem:[%s4082_s18 + $0x28] sm:$0xff]  }
0x10e7   : > { %v2326_v61 = vpop.f32.mrb[30].mxu0  ;;  %2492 = vmatprep.subr.bf16.mxu1 %v3286_v3  ;;  %3014 = vmatpush3.bf16.msra.mxu0 %v3316_v57  ;;  %v3319_v60 = vld [vmem:[%s4082_s18 + $0x78] sm:$0xff]  }
0x10e8   : > { %v2331_v62 = vadd.f32 %v2326_v61, %v3813_v4  ;;  %v3184_v63 = vpop.f32.mrb[31].mxu0  ;;  %v2339_v0 = vadd.f32 %v2900_v58, %v2330_v59  ;;  %v3284_v4 = vld [vmem:[%s4080_s16 + $0x10] ss:$8 sps:$4 sm:$0xff]  }
0x10e9   : > { %2493 = vmatpush1.bf16.msra.mxu1 %v3284_v4  ;;  %v3318_v59 = vld [vmem:[%s4082_s18 + $0x30] sm:$0xff]   ;;  %v3320_v61 = vld [vmem:[%s4082_s18 + $0x38] sm:$0xff]  }
0x10ea   : > { %2343 = vadd.xlane.f32.xlu1 %v2339_v0  ;;  %v2340_v1 = vadd.f32 %v2900_v58, %v2331_v62  ;;  %2494 = vmatprep.subr.bf16.mxu1 %v3289_v16  ;;  %v3317_v58 = vld [vmem:[%s4082_s18 + $0x70] sm:$0xff]   ;;  %v2398_v62 = vld [vmem:[%s4081_s17] sm:$0x3] }
0x10eb   : > { %3015 = vmatprep.subr.bf16.mxu0 %v3317_v58  ;;  %v2403_v63 = vrot.slane %v2398_v62, %v730_v22 }
0x10ec   : > { %2345 = vadd.xlane.f32.xlu0 %v2340_v1  ;;  %3016 = vmatpush3.bf16.msra.mxu0 %v3318_v59 }
0x10ed   : > { %2495 = vmatpush1.bf16.msra.mxu1 %v3287_v19  ;;  %3017 = vmatprep.subr.bf16.mxu0 %v3319_v60 }
0x10ee   : > { %2496 = vmatprep.subr.bf16.mxu1 %v3292_v20 }
0x10f0   : > { %3018 = vmatpush3.bf16.msra.mxu0 %v3320_v61 }
0x10f1   : > { %2497 = vmatpush1.bf16.msra.mxu1 %v3290_v23 }
0x10f2   : > { %2498 = vmatprep.subr.bf16.mxu1 %v3295_v26 }
0x10f5   : > { %2499 = vmatpush1.bf16.msra.mxu1 %v3293_v27 }
0x10f6   : > { %2500 = vmatprep.subr.bf16.mxu1 %v3298_v28 }
0x10f9   : > { %2501 = vmatpush1.bf16.msra.mxu1 %v3296_v17 }
0x10fa   : > { %2502 = vmatprep.subr.bf16.mxu1 %v3301_v18 }
0x10fd   : > { %2503 = vmatpush1.bf16.msra.mxu1 %v3299_v29 }
0x10fe   : > { %2504 = vmatprep.subr.bf16.mxu1 %v3304_v30 }
0x1101   : > { %2505 = vmatpush1.bf16.msra.mxu1 %v3302_v2 }
0x1177   : > { %v2344_v9 = vpop.xlane.xlu1 %2343 }
0x1178   : > { %v2347_v10 = vmul.f32 0.0078125, %v2344_v9 }
0x1179   : > { %v2346_v11 = vpop.xlane.xlu0 %2345 }
0x117a   : > { %v3941_v12 = vsub.f32 %v2339_v0, %v2347_v10  ;;  %v2348_v13 = vmul.f32 0.0078125, %v2346_v11  ;;  %v2407_v0 = vrot.slane %v2398_v62, %v734_v25 }
0x117c   : > { %v3943_v8 = vsub.f32 %v2340_v1, %v2348_v13  ;;  %v2351_v14 = vmul.f32 %v3941_v12, %v3941_v12 }
0x117e   : > { %2353 = vadd.xlane.f32.xlu0 %v2351_v14  ;;  %v2352_v15 = vmul.f32 %v3943_v8, %v3943_v8 }
0x1180   : > { %2355 = vadd.xlane.f32.xlu1 %v2352_v15 }
0x120b   : > { %v2354_v44 = vpop.xlane.xlu0 %2353 }
0x120c   : > { %v2357_v38 = vmul.f32 0.0078125, %v2354_v44 }
0x120d   : > { %v2356_v24 = vpop.xlane.xlu1 %2355 }
0x120e   : > { %v2359_v45 = vadd.f32 1e-05, %v2357_v38  ;;  %v2358_v46 = vmul.f32 0.0078125, %v2356_v24  ;;  %v2936_v38 = vld [vmem:[%s4084_s20] ss:$0 sm:$0xff] }
0x1210   : > { %3389 = vrsqrt.f32 %v2359_v45  ;;  %v2360_v40 = vadd.f32 1e-05, %v2358_v46  ;;  %v2937_v46 = vld [vmem:[%s4085_s21] ss:$0 sm:$0xff] }
0x1212   : > { %3391 = vrsqrt.f32 %v2360_v40 }
0x121a   : > { %v3390_v47 = vpop.eup %3389 }
0x121b   : > { %v2363_v49 = vmul.f32 %v3390_v47, %v3941_v12 }
0x121c   : > { %v3392_v50 = vpop.eup %3391 }
0x121d   : > { %v2364_v51 = vmul.f32 %v3392_v50, %v3943_v8  ;;  %v2371_v52 = vmul.f32 %v2901_v48, %v2363_v49 }
0x121f   : > { %v2372_v54 = vmul.f32 %v2901_v48, %v2364_v51  ;;  %v2379_v55 = vadd.f32 %v2902_v53, %v2371_v52 }
0x1221   : > { %v2380_v6 = vadd.f32 %v2902_v53, %v2372_v54 }
0x1223   : > { %v2381_v56 = vpack.c.bf16 %v2380_v6, %v2379_v55 }
0x1225   : > { %2523 = vmatmul.mubr.bf16.vlgmr.msra.gmra.mrb[52].mxu1 %v2381_v56 }
0x12f8   : > { %v2524_v1 = vpop.f32.mrb[52].mxu1 }
0x12f9   : > { %v2525_v5 = vadd.f32 %v2524_v1, %v2403_v63  ;;  %v2526_v7 = vpop.f32.mrb[53].mxu1 }
0x12fa   : > { %v2527_v3 = vadd.f32 %v2526_v7, %v2407_v0  ;;  %v2528_v4 = vpop.f32.mrb[54].mxu1 }
0x12fb   : > { %v2529_v9 = vadd.f32 %v2528_v4, %v2403_v63  ;;  %v2530_v10 = vpop.f32.mrb[55].mxu1  ;;  %v2533_v12 = vmax.f32 %v2525_v5, 0.0 }
0x12fc   : > { %v2531_v11 = vadd.f32 %v2530_v10, %v2407_v0  ;;  %v2534_v8 = vmax.f32 %v2527_v3, 0.0 }
0x12fd   : > { %v2535_v13 = vmax.f32 %v2529_v9, 0.0 }
0x12fe   : > { %v2536_v14 = vmax.f32 %v2531_v11, 0.0 }
0x12ff   : > { %v2537_v15 = vpack.c.bf16 %v2535_v13, %v2533_v12 }
0x1300   : > { %v2538_v16 = vpack.c.bf16 %v2536_v14, %v2534_v8 }
0x1302   : > { %2706 = vmatprep.mubr.bf16.mxu0 %v2538_v16 }
0x1303   : > { %2707 = vmatmul.mubr.bf16.vlgmr.msra.gmra.mrb[32].mxu0 %v2537_v15 }
0x13d6   : > { %v3019_v22 = vpop.f32.mrb[32].mxu0 }
0x13d7   : > { %v3020_v25 = vpop.f32.mrb[33].mxu0 }
0x13d8   : > { %v3021_v19 = vadd.f32 %v3020_v25, %v3019_v22  ;;  %v3022_v20 = vpop.f32.mrb[34].mxu0 }
0x13d9   : > { %v3023_v23 = vpop.f32.mrb[35].mxu0 }
0x13da   : > { %v2709_v26 = vadd.f32 %v3021_v19, %v2919_v21  ;;  %v3024_v27 = vadd.f32 %v3023_v23, %v3022_v20 }
0x13dc   : > { %v2712_v28 = vadd.f32 %v3024_v27, %v2919_v21  ;;  %v2715_v17 = vadd.f32 %v2709_v26, %v2379_v55 }
0x13de   : > { %2719 = vadd.xlane.f32.xlu0 %v2715_v17  ;;  %v2716_v18 = vadd.f32 %v2712_v28, %v2380_v6 }
0x13e0   : > { %2721 = vadd.xlane.f32.xlu1 %v2716_v18 }
0x146b   : > { %v2720_v29 = vpop.xlane.xlu0 %2719 }
0x146c   : > { %v2723_v30 = vmul.f32 0.0078125, %v2720_v29 }
0x146d   : > { %v2722_v2 = vpop.xlane.xlu1 %2721 }
0x146e   : > { %v2725_v31 = vsub.f32 %v2715_v17, %v2723_v30  ;;  %v2724_v32 = vmul.f32 0.0078125, %v2722_v2 }
0x1470   : > { %v2726_v33 = vsub.f32 %v2716_v18, %v2724_v32  ;;  %v2727_v34 = vmul.f32 %v2725_v31, %v2725_v31 }
0x1472   : > { %2729 = vadd.xlane.f32.xlu0 %v2727_v34  ;;  %v2728_v35 = vmul.f32 %v2726_v33, %v2726_v33 }
0x1474   : > { %2731 = vadd.xlane.f32.xlu1 %v2728_v35 }
0x14ff   : > { %v2730_v36 = vpop.xlane.xlu0 %2729 }
0x1500   : > { %v2733_v37 = vmul.f32 0.0078125, %v2730_v36 }
0x1501   : > { %v2732_v41 = vpop.xlane.xlu1 %2731 }
0x1502   : > { %v2735_v39 = vadd.f32 1e-05, %v2733_v37  ;;  %v2734_v42 = vmul.f32 0.0078125, %v2732_v41 }
0x1504   : > { %3393 = vrsqrt.f32 %v2735_v39  ;;  %v2736_v43 = vadd.f32 1e-05, %v2734_v42 }
0x1506   : > { %3395 = vrsqrt.f32 %v2736_v43 }
0x150e   : > { %v3394_v44 = vpop.eup %3393 }
0x150f   : > { %v2739_v24 = vmul.f32 %v3394_v44, %v2725_v31 }
0x1510   : > { %v3396_v45 = vpop.eup %3395 }
0x1511   : > { %v2747_v40 = vmul.f32 %v2936_v38, %v2739_v24  ;;  %v2740_v47 = vmul.f32 %v3396_v45, %v2726_v33 }
0x1513   : > { %v2755_v48 = vadd.f32 %v2937_v46, %v2747_v40  ;;  %v2748_v49 = vmul.f32 %v2936_v38, %v2740_v47 }
0x1515   : > { %2757 = vst [vmem:[%s703_s27] sm:$0xff] %v2755_v48  ;;  %v2756_v50 = vadd.f32 %v2937_v46, %v2748_v49 }
0x1517   : > { %2758 = vst [vmem:[%s703_s27 + $0x8] sm:$0xff] %v2756_v50 }
0x1518 PF: > { %s32_s3 = sadd.s32 1, %s3403_s3  }
0x1519   : > { %p29_p4 = scmp.ge.s32.totalorder %s32_s3, 4  }
0x151b   :  { %31 = sbr.rel (!%p29_p4) target bundleno = 8 (0x8), region = 141 }

</bundles_post_ra>
